<compile_context>
chip_gen: v5e
topology: v5e:2x2
jax: 0.10.0
libtpu: 0.0.40
codegen_flags: <defaults>
</compile_context>

<pallas_src>
import jax
import jax.numpy as jnp
from jax.experimental import pallas as pl
from jax.experimental.pallas import tpu as pltpu

EPS = 1e-5


def bn_relu_kernel(x_ref, gb_ref, o_ref):
    """x_ref: (Cb, R) block; gb_ref: (Cb, 2) = [gamma | beta]; o_ref: (Cb, R)."""
    x = x_ref[...].astype(jnp.float32)
    inv_r = jnp.float32(1.0 / x.shape[-1])

    # Two-pass per-channel statistics (lane-axis reductions, keepdims).
    mean = jnp.sum(x, axis=-1, keepdims=True) * inv_r            # (Cb, 1)
    xc = x - mean
    var = jnp.sum(xc * xc, axis=-1, keepdims=True) * inv_r       # biased var
    inv_std = jax.lax.rsqrt(var + EPS)

    gb = gb_ref[...].astype(jnp.float32)                         # (Cb, 2)
    gamma = gb[:, 0:1]                                           # (Cb, 1)
    beta = gb[:, 1:2]                                            # (Cb, 1)
    scale = gamma * inv_std

    y = xc * scale + beta                                        # (x-mean)*g/std + b
    o_ref[...] = jnp.maximum(y, 0.0).astype(o_ref.dtype)


def _pick_channel_blocks(c):
    """2 blocks on single-TC chips (v5e/v6e); 4 on 2-TC chips (v4/v5p/v7x)."""
    try:
        kind = jax.devices()[0].device_kind.lower()
    except Exception:
        kind = ""
    two_tensorcores = any(t in kind for t in ("v7", "v4", "v5p"))
    want = 4 if two_tensorcores else 2
    for nb in (want, 2, 1):
        if c % nb == 0 and (c // nb) % 8 == 0:
            return nb
    return 1


@jax.jit
def batchnorm_relu(x_nchw, gamma, beta):
    """Train-mode BatchNorm2d (batch statistics) + ReLU.

    x_nchw: (1, C, H, W) float32.  gamma, beta: (C,) float32.
    """
    n, c, h, w = x_nchw.shape
    assert n == 1, "kernel assumes N == 1 (NCHW is (C, H*W) row-major)"
    r = h * w

    x2d = x_nchw.reshape(c, r)                    # logical view for N=1
    gb = jnp.stack([gamma, beta], axis=-1)        # (C, 2): one packed side input

    n_blocks = _pick_channel_blocks(c)
    c_block = c // n_blocks

    cost = pl.CostEstimate(
        flops=7 * c * r,                 # sums, center, square, scale/shift, relu
        transcendentals=c,               # one rsqrt per channel
        bytes_accessed=2 * c * r * 4 + 2 * c * 4,
    )

    out2d = pl.pallas_call(
        bn_relu_kernel,
        out_shape=jax.ShapeDtypeStruct((c, r), x_nchw.dtype),
        grid=(n_blocks,),
        in_specs=[
            pl.BlockSpec((c_block, r), lambda i: (i, 0)),
            pl.BlockSpec((c_block, 2), lambda i: (i, 0)),
        ],
        out_specs=pl.BlockSpec((c_block, r), lambda i: (i, 0)),
        compiler_params=pltpu.CompilerParams(
            dimension_semantics=("parallel",)),
        cost_estimate=cost,
    )(x2d, gb)

    # NOTE: in a full graph, keep activations in (C, H*W) across the
    # elementwise chain (and consider input_output_aliases under jit with
    # donated inputs) to avoid boundary relayout traffic.
    return out2d.reshape(n, c, h, w)


def reference(x_nchw, gamma, beta):
    mean = jnp.mean(x_nchw, axis=(0, 2, 3), keepdims=True)
    var = jnp.mean((x_nchw - mean) ** 2, axis=(0, 2, 3), keepdims=True)
    y = (x_nchw - mean) * jax.lax.rsqrt(var + EPS)
    y = y * gamma.reshape(1, -1, 1, 1) + beta.reshape(1, -1, 1, 1)
    return jnp.maximum(y, 0.0)


if __name__ == "__main__":
    key = jax.random.PRNGKey(0)
    kx, kg, kb = jax.random.split(key, 3)
    N, C, H, W = 1, 1056, 14, 14
    x = jax.random.normal(kx, (N, C, H, W), dtype=jnp.float32)

    # PyTorch default init is weight=1, bias=0; perturb deterministically so
    # the affine path is actually exercised.
    gamma = 1.0 + 0.1 * jax.random.normal(kg, (C,), dtype=jnp.float32)
    beta = 0.1 * jax.random.normal(kb, (C,), dtype=jnp.float32)

    out = batchnorm_relu(x, gamma, beta)
    jax.block_until_ready(out)

    ref = reference(x, gamma, beta)
    assert out.shape == (N, C, H, W)
    err = float(jnp.max(jnp.abs(out - ref)))
    assert jnp.allclose(out, ref, atol=1e-4, rtol=1e-4), err
    print("KERNEL_OK")
</pallas_src>

<mosaic_0001>
module attributes {stable_mosaic.version = 11 : i64} {
  func.func @bn_relu_kernel(%arg0: i32, %arg1: memref<528x196xf32, #tpu.memory_space<vmem>>, %arg2: memref<528x2xf32, #tpu.memory_space<vmem>>, %arg3: memref<528x196xf32, #tpu.memory_space<vmem>>) attributes {dimension_semantics = [#tpu.dimension_semantics<parallel>], iteration_bounds = array<i64: 2>, scalar_prefetch = 0 : i64, scratch_operands = 0 : i64, tpu.core_type = #tpu.core_type<tc>, window_params = [{transform_indices = @transform_0, window_bounds = array<i64: 528, 196>}, {transform_indices = @transform_1, window_bounds = array<i64: 528, 2>}, {transform_indices = @transform_2, window_bounds = array<i64: 528, 196>}]} {
    %c0 = arith.constant 0 : index
    %c0_0 = arith.constant 0 : index
    %0 = vector.load %arg1[%c0, %c0_0] : memref<528x196xf32, #tpu.memory_space<vmem>>, vector<528x196xf32>
    %cst = arith.constant dense<0.000000e+00> : vector<528xf32>
    %1 = vector.multi_reduction <add>, %0, %cst [1] : vector<528x196xf32> to vector<528xf32>
    %2 = vector.shape_cast %1 : vector<528xf32> to vector<528x1xf32>
    %cst_1 = arith.constant 0.00510204071 : f32
    %3 = vector.broadcast %cst_1 : f32 to vector<528x1xf32>
    %4 = arith.mulf %2, %3 : vector<528x1xf32>
    %5 = vector.broadcast %4 : vector<528x1xf32> to vector<528x196xf32>
    %6 = arith.subf %0, %5 : vector<528x196xf32>
    %7 = arith.mulf %6, %6 : vector<528x196xf32>
    %cst_2 = arith.constant dense<0.000000e+00> : vector<528xf32>
    %8 = vector.multi_reduction <add>, %7, %cst_2 [1] : vector<528x196xf32> to vector<528xf32>
    %9 = vector.shape_cast %8 : vector<528xf32> to vector<528x1xf32>
    %cst_3 = arith.constant 0.00510204071 : f32
    %10 = vector.broadcast %cst_3 : f32 to vector<528x1xf32>
    %11 = arith.mulf %9, %10 : vector<528x1xf32>
    %cst_4 = arith.constant 9.99999974E-6 : f32
    %12 = vector.broadcast %cst_4 : f32 to vector<528x1xf32>
    %13 = arith.addf %11, %12 : vector<528x1xf32>
    %14 = math.rsqrt %13 : vector<528x1xf32>
    %c0_5 = arith.constant 0 : index
    %c0_6 = arith.constant 0 : index
    %15 = vector.load %arg2[%c0_5, %c0_6] : memref<528x2xf32, #tpu.memory_space<vmem>>, vector<528x2xf32>
    %16 = vector.extract_strided_slice %15 {offsets = [0, 0], sizes = [528, 1], strides = [1, 1]} : vector<528x2xf32> to vector<528x1xf32>
    %17 = vector.extract_strided_slice %15 {offsets = [0, 1], sizes = [528, 1], strides = [1, 1]} : vector<528x2xf32> to vector<528x1xf32>
    %18 = arith.mulf %16, %14 : vector<528x1xf32>
    %19 = vector.broadcast %18 : vector<528x1xf32> to vector<528x196xf32>
    %20 = arith.mulf %6, %19 : vector<528x196xf32>
    %21 = vector.broadcast %17 : vector<528x1xf32> to vector<528x196xf32>
    %22 = arith.addf %20, %21 : vector<528x196xf32>
    %cst_7 = arith.constant 0.000000e+00 : f32
    %23 = vector.broadcast %cst_7 : f32 to vector<528x196xf32>
    %24 = arith.maximumf %22, %23 : vector<528x196xf32>
    %c0_8 = arith.constant 0 : index
    %c0_9 = arith.constant 0 : index
    %25 = vector.load %arg3[%c0_8, %c0_9] : memref<528x196xf32, #tpu.memory_space<vmem>>, vector<528x196xf32>
    tpu.vector_store %arg3[%c0_8, %c0_9], %24 {strides = array<i32>} : memref<528x196xf32, #tpu.memory_space<vmem>>, vector<528x196xf32>,
    return
  }
  func.func @transform_0(%arg0: i32) -> (i32, i32) {
    %c0_i32 = arith.constant 0 : i32
    %c0_i32_0 = arith.constant 0 : i32
    return %arg0, %c0_i32 : i32, i32
  }
  func.func @transform_1(%arg0: i32) -> (i32, i32) {
    %c0_i32 = arith.constant 0 : i32
    %c0_i32_0 = arith.constant 0 : i32
    return %arg0, %c0_i32 : i32, i32
  }
  func.func @transform_2(%arg0: i32) -> (i32, i32) {
    %c0_i32 = arith.constant 0 : i32
    %c0_i32_0 = arith.constant 0 : i32
    return %arg0, %c0_i32 : i32, i32
  }
}

</mosaic_0001>

<bundles_post_ra>
// kernel: batchnorm_relu.1
= control target key start
LH: loop header
LB: loop body
LE: loop exit
PB: predicated region body
PF: predicated region fallthrough
CT: control target
= control target key end

     0   :  { %s3616_s9 = smov 0   ;;  %s7405_s0 = inlined_call_operand.vmem [shape: f32[1056,196], index: 0, kind: input, shape index: {}]   ;;  %s7406_s1 = inlined_call_operand.vmem [shape: f32[1056,2], index: 1, kind: input, shape index: {}]   ;;  %s7407_s2 = inlined_call_operand.vmem [shape: f32[1056,196], index: 2, kind: output, shape index: {}]  }
   0x1 LB: > { %s3347_s10 = sadd.s32 4294967295, %s3597_s9   ;;  %p3351_p0 = scmp.ge.s32.totalorder %s3597_s9, 1  ;;  %s3597_s9 = sphi %s3616_s9, %s12_s9  }
   0x2   : > { %p125_p1 = scmp.lt.s32.totalorder %s3597_s9, 3 }
   0x4   : > { %p126_p2 = pnand %p3351_p0, %p125_p1 }
   0x6   : > { %129 = sbr.rel (%p126_p2) target bundleno = 873 (0x369), region = 28 }
   0xb   : > { %s154_s11 = smul.u32 66, %s3347_s10  ;;  %vm306_vm0 = vcmask 556032  }
   0xd   : > { %p155_p3 = scmp.lt.s32.totalorder %s154_s11, 131 }
   0xf   : > { %s8203_s11 = smov (!%p155_p3, %s154_s11), 131 }
  0x10   : > { %s3359_s12 = sshll.u32 %s8203_s11, 4  ;;  %s3354_s16 = sshll.u32 %s8203_s11, 3 }
  0x11   : > { %s3632_s15 = scalar_lea.vmem %s7405_s0, %s3359_s12  ;;  %s5157_s19 = scalar_lea.vmem %s7406_s1, %s3354_s16 }
  0x12   : > { %v3635_v0 = vld [vmem:[%s3632_s15 + $0x40] sm:$0xff]  ;;  %v3638_v1 = vld [vmem:[%s3632_s15 + $0x48] sm:$0xff]  ;;  %v3660_v10 = vld [vmem:[%s3632_s15 + $0x58] sm:$0xff]  ;;  %s6913_s22 = scalar_lea.vmem %s7407_s2, %s3359_s12 }
  0x13   : > { %v3641_v2 = vld [vmem:[%s3632_s15 + $0x20] sm:$0xff]  ;;  %v323_v3 = vsel %vm306_vm0, %v3638_v1, 0.0  ;;  %v3646_v4 = vld [vmem:[%s3632_s15 + $0x28] sm:$0xff]  ;;  %v3665_v13 = vld [vmem:[%s3632_s15 + $0x38] sm:$0xff]  ;;  %v327_v16 = vsel %vm306_vm0, %v3660_v10, 0.0 }
  0x14   : > { %v3649_v5 = vld [vmem:[%s3632_s15] sm:$0xff]  ;;  %v3652_v6 = vld [vmem:[%s3632_s15 + $0x8] sm:$0xff]  ;;  %v324_v7 = vadd.f32 %v323_v3, %v3635_v0  ;;  %v315_v8 = vsel %vm306_vm0, %v3646_v4, 0.0  ;;  %v3668_v14 = vld [vmem:[%s3632_s15 + $0x18] sm:$0xff]  ;;  %v319_v18 = vsel %vm306_vm0, %v3665_v13, 0.0 }
  0x15   : > { %v307_v9 = vsel %vm306_vm0, %v3652_v6, 0.0  ;;  %v316_v11 = vadd.f32 %v315_v8, %v3641_v2  ;;  %v3671_v15 = vld [vmem:[%s3632_s15 + $0x50] sm:$0xff]  ;;  %v311_v20 = vsel %vm306_vm0, %v3668_v14, 0.0  ;;  %v3689_v24 = vld [vmem:[%s3632_s15 + $0x88] sm:$0xff]  ;;  %v3692_v25 = vld [vmem:[%s3632_s15 + $0x78] sm:$0xff] }
  0x16   : > { %v308_v12 = vadd.f32 %v307_v9, %v3649_v5  ;;  %325 = vadd.xlane.f32.xlu2 %v324_v7  ;;  %v3676_v17 = vld [vmem:[%s3632_s15 + $0x30] sm:$0xff]  ;;  %v328_v21 = vadd.f32 %v327_v16, %v3671_v15  ;;  %v3695_v26 = vld [vmem:[%s3632_s15 + $0x68] sm:$0xff]  ;;  %v3698_v27 = vld [vmem:[%s3632_s15 + $0x80] sm:$0xff]  ;;  %v339_v28 = vsel %vm306_vm0, %v3689_v24, 0.0  ;;  %v335_v30 = vsel %vm306_vm0, %v3692_v25, 0.0 }
  0x17   : > { %317 = vadd.xlane.f32.xlu1 %v316_v11  ;;  %v3681_v19 = vld [vmem:[%s3632_s15 + $0x10] sm:$0xff]  ;;  %v320_v22 = vadd.f32 %v319_v18, %v3676_v17  ;;  %v3708_v31 = vld [vmem:[%s3632_s15 + $0x60] sm:$0xff]  ;;  %v331_v32 = vsel %vm306_vm0, %v3695_v26, 0.0  ;;  %v340_v33 = vadd.f32 %v339_v28, %v3698_v27  ;;  %v3716_v36 = vld [vmem:[%s3632_s15 + $0xb8] sm:$0xff] }
  0x18   : > { %309 = vadd.xlane.f32.xlu0 %v308_v12  ;;  %v312_v23 = vadd.f32 %v311_v20, %v3681_v19  ;;  %v3703_v29 = vld [vmem:[%s3632_s15 + $0x70] sm:$0xff]  ;;  %v332_v35 = vadd.f32 %v331_v32, %v3708_v31  ;;  %v3719_v37 = vld [vmem:[%s3632_s15 + $0xa8] sm:$0xff]  ;;  %v3722_v38 = vld [vmem:[%s3632_s15 + $0x98] sm:$0xff]  ;;  %v351_v40 = vsel %vm306_vm0, %v3716_v36, 0.0 }
  0x19   : > { %v336_v34 = vadd.f32 %v335_v30, %v3703_v29  ;;  %v3725_v39 = vld [vmem:[%s3632_s15 + $0xb0] sm:$0xff]  ;;  %v3730_v41 = vld [vmem:[%s3632_s15 + $0xa0] sm:$0xff]  ;;  %v347_v42 = vsel %vm306_vm0, %v3719_v37, 0.0  ;;  %v343_v44 = vsel %vm306_vm0, %v3722_v38, 0.0  ;;  %v3743_v48 = vld [vmem:[%s3632_s15 + $0xe8] sm:$0xff] }
  0x1a   : > { %v3735_v43 = vld [vmem:[%s3632_s15 + $0x90] sm:$0xff]  ;;  %v352_v45 = vadd.f32 %v351_v40, %v3725_v39  ;;  %v348_v46 = vadd.f32 %v347_v42, %v3730_v41  ;;  %v3746_v49 = vld [vmem:[%s3632_s15 + $0xd8] sm:$0xff]  ;;  %v3749_v50 = vld [vmem:[%s3632_s15 + $0xc8] sm:$0xff]  ;;  %v363_v52 = vsel %vm306_vm0, %v3743_v48, 0.0 }
  0x1b   : > { %v344_v47 = vadd.f32 %v343_v44, %v3735_v43  ;;  %v3752_v51 = vld [vmem:[%s3632_s15 + $0xe0] sm:$0xff]  ;;  %v3757_v53 = vld [vmem:[%s3632_s15 + $0xd0] sm:$0xff]  ;;  %v359_v54 = vsel %vm306_vm0, %v3746_v49, 0.0  ;;  %v355_v56 = vsel %vm306_vm0, %v3749_v50, 0.0  ;;  %v3770_v60 = vld [vmem:[%s3632_s15 + $0x118] sm:$0xff] }
  0x1c   : > { %v3762_v55 = vld [vmem:[%s3632_s15 + $0xc0] sm:$0xff]  ;;  %v364_v57 = vadd.f32 %v363_v52, %v3752_v51  ;;  %v360_v58 = vadd.f32 %v359_v54, %v3757_v53  ;;  %7636 = vst [vmem:[#allocation2_spill] sm:$0xff] %v3770_v60  ;;  %v3773_v61 = vld [vmem:[%s3632_s15 + $0x108] sm:$0xff]  ;;  %v3776_v62 = vld [vmem:[%s3632_s15 + $0xf8] sm:$0xff]  ;;  %v375_v3 = vsel %vm306_vm0, %v3770_v60, 0.0 }
  0x1d   : > { %v356_v59 = vadd.f32 %v355_v56, %v3762_v55  ;;  %7637 = vst [vmem:[#allocation3_spill] sm:$0xff] %v3773_v61  ;;  %v3779_v63 = vld [vmem:[%s3632_s15 + $0x110] sm:$0xff]  ;;  %v3784_v7 = vld [vmem:[%s3632_s15 + $0x100] sm:$0xff]  ;;  %v371_v8 = vsel %vm306_vm0, %v3773_v61, 0.0  ;;  %v367_v11 = vsel %vm306_vm0, %v3776_v62, 0.0  ;;  %v3797_v20 = vld [vmem:[%s3632_s15 + $0x148] sm:$0xff] }
  0x1e   : > { %329 = vadd.xlane.f32.xlu2 %v328_v21  ;;  %7638 = vst [vmem:[#allocation4_spill] sm:$0xff] %v3776_v62  ;;  %v3789_v9 = vld [vmem:[%s3632_s15 + $0xf0] sm:$0xff]  ;;  %v376_v12 = vadd.f32 %v375_v3, %v3779_v63  ;;  %v372_v16 = vadd.f32 %v371_v8, %v3784_v7  ;;  %v3800_v21 = vld [vmem:[%s3632_s15 + $0x138] sm:$0xff]  ;;  %v387_v28 = vsel %vm306_vm0, %v3797_v20, 0.0  ;;  %v3838_v54 = vld [vmem:[%s3632_s15 + $0x160] sm:$0xff] }
  0x1f   : > { %321 = vadd.xlane.f32.xlu1 %v320_v22  ;;  %7639 = vst [vmem:[#allocation5_spill] sm:$0xff] %v3779_v63  ;;  %v368_v18 = vadd.f32 %v367_v11, %v3789_v9  ;;  %v3803_v22 = vld [vmem:[%s3632_s15 + $0x128] sm:$0xff]  ;;  %v3811_v30 = vld [vmem:[%s3632_s15 + $0x130] sm:$0xff]  ;;  %v383_v32 = vsel %vm306_vm0, %v3800_v21, 0.0  ;;  %v3824_v44 = vld [vmem:[%s3632_s15 + $0x178] sm:$0xff] }
  0x20   : > { %313 = vadd.xlane.f32.xlu0 %v312_v23  ;;  %7640 = vst [vmem:[#allocation6_spill] sm:$0xff] %v3784_v7  ;;  %v3806_v23 = vld [vmem:[%s3632_s15 + $0x140] sm:$0xff]  ;;  %v384_v40 = vadd.f32 %v383_v32, %v3811_v30  ;;  %v399_v52 = vsel %vm306_vm0, %v3824_v44, 0.0  ;;  %v3851_v11 = vld [vmem:[%s3632_s15 + $0x1a8] sm:$0xff]  ;;  %v3865_v32 = vld [vmem:[%s3632_s15 + $0x190] sm:$0xff] }
  0x21   : > { %7641 = vst [vmem:[#allocation7_spill] sm:$0xff] %v3789_v9  ;;  %v288_v9 = vld [vmem:[%s3632_s15 + $0x390] sm:$0xff]  ;;  %v294_v62 = vld [vmem:[%s3632_s15 + $0x3c0] sm:$0xff] }
  0x22   : > { %7642 = vst [vmem:[#allocation8_spill] sm:$0xff] %v3797_v20  ;;  %v296_v7 = vld [vmem:[%s3632_s15 + $0x3d0] sm:$0xff] }
  0x23   : > { %7643 = vst [vmem:[#allocation9_spill] sm:$0xff] %v3800_v21  ;;  %v290_v21 = vld [vmem:[%s3632_s15 + $0x3a0] sm:$0xff]  ;;  %v304_v60 = vld [vmem:[%s3632_s15 + $0x410] sm:$0xff] }
  0x24   : > { %7644 = vst [vmem:[#allocation10_spill] sm:$0xff] %v3803_v22 }
  0x25   : > { %7645 = vst [vmem:[#allocation11_spill] sm:$0xff] %v3806_v23 }
  0x26   : > { %341 = vadd.xlane.f32.xlu2 %v340_v33  ;;  %7646 = vst [vmem:[#allocation12_spill] sm:$0xff] %v3811_v30  ;;  %v3816_v33 = vld [vmem:[%s3632_s15 + $0x120] sm:$0xff]  ;;  %v284_v30 = vld [vmem:[%s3632_s15 + $0x370] sm:$0xff] }
  0x27   : > { %337 = vadd.xlane.f32.xlu1 %v336_v34  ;;  %7647 = vst [vmem:[#allocation13_spill] sm:$0xff] %v3816_v33  ;;  %v379_v34 = vsel %vm306_vm0, %v3803_v22, 0.0  ;;  %v282_v22 = vld [vmem:[%s3632_s15 + $0x360] sm:$0xff] }
  0x28   : > { %333 = vadd.xlane.f32.xlu0 %v332_v35  ;;  %v388_v35 = vadd.f32 %v387_v28, %v3806_v23  ;;  %v380_v42 = vadd.f32 %v379_v34, %v3816_v33  ;;  %7648 = vst [vmem:[#allocation14_spill] sm:$0xff] %v3824_v44  ;;  %v411_v28 = vsel %vm306_vm0, %v3851_v11, 0.0  ;;  %v276_v33 = vld [vmem:[%s3632_s15 + $0x330] sm:$0xff] }
  0x29   : > { %7652 = vst [vmem:[#allocation18_spill] sm:$0xff] %v3838_v54 }
  0x2a   : > { %7654 = vst [vmem:[#allocation20_spill] sm:$0xff] %v3851_v11 }
  0x2b   : > { %7658 = vst [vmem:[#allocation24_spill] sm:$0xff] %v3865_v32 }
  0x2e   : > { %353 = vadd.xlane.f32.xlu2 %v352_v45  ;;  %v3827_v45 = vld [vmem:[%s3632_s15 + $0x168] sm:$0xff] }
  0x2f   : > { %349 = vadd.xlane.f32.xlu1 %v348_v46  ;;  %7649 = vst [vmem:[#allocation15_spill] sm:$0xff] %v3827_v45  ;;  %v3830_v46 = vld [vmem:[%s3632_s15 + $0x158] sm:$0xff]  ;;  %v395_v56 = vsel %vm306_vm0, %v3827_v45, 0.0  ;;  %v278_v45 = vld [vmem:[%s3632_s15 + $0x340] sm:$0xff] }
  0x30   : > { %345 = vadd.xlane.f32.xlu0 %v344_v47  ;;  %7650 = vst [vmem:[#allocation16_spill] sm:$0xff] %v3830_v46  ;;  %v3833_v47 = vld [vmem:[%s3632_s15 + $0x170] sm:$0xff]  ;;  %v396_v3 = vadd.f32 %v395_v56, %v3838_v54 }
  0x31   : > { %7651 = vst [vmem:[#allocation17_spill] sm:$0xff] %v3833_v47  ;;  %v272_v54 = vld [vmem:[%s3632_s15 + $0x310] sm:$0xff] }
  0x36   : > { %365 = vadd.xlane.f32.xlu2 %v364_v57  ;;  %v3843_v57 = vld [vmem:[%s3632_s15 + $0x150] sm:$0xff] }
  0x37   : > { %361 = vadd.xlane.f32.xlu1 %v360_v58  ;;  %7653 = vst [vmem:[#allocation19_spill] sm:$0xff] %v3843_v57  ;;  %v391_v58 = vsel %vm306_vm0, %v3830_v46, 0.0  ;;  %v270_v46 = vld [vmem:[%s3632_s15 + $0x300] sm:$0xff] }
  0x38   : > { %357 = vadd.xlane.f32.xlu0 %v356_v59  ;;  %v400_v59 = vadd.f32 %v399_v52, %v3833_v47  ;;  %v392_v8 = vadd.f32 %v391_v58, %v3843_v57  ;;  %v3878_v58 = vld [vmem:[%s3632_s15 + $0x1d8] sm:$0xff] }
  0x39   : > { %7660 = vst [vmem:[#allocation26_spill] sm:$0xff] %v3878_v58 }
  0x3e   : > { %377 = vadd.xlane.f32.xlu2 %v376_v12  ;;  %v3854_v12 = vld [vmem:[%s3632_s15 + $0x198] sm:$0xff] }
  0x3f   : > { %373 = vadd.xlane.f32.xlu1 %v372_v16  ;;  %7655 = vst [vmem:[#allocation21_spill] sm:$0xff] %v3854_v12  ;;  %v3857_v16 = vld [vmem:[%s3632_s15 + $0x188] sm:$0xff]  ;;  %v407_v34 = vsel %vm306_vm0, %v3854_v12, 0.0 }
  0x40   : > { %369 = vadd.xlane.f32.xlu0 %v368_v18  ;;  %7656 = vst [vmem:[#allocation22_spill] sm:$0xff] %v3857_v16  ;;  %v3860_v18 = vld [vmem:[%s3632_s15 + $0x1a0] sm:$0xff]  ;;  %v408_v52 = vadd.f32 %v407_v34, %v3865_v32 }
  0x41   : > { %7657 = vst [vmem:[#allocation23_spill] sm:$0xff] %v3860_v18  ;;  %v3892_v34 = vld [vmem:[%s3632_s15 + $0x1c0] sm:$0xff] }
  0x42   : > { %7664 = vst [vmem:[#allocation30_spill] sm:$0xff] %v3892_v34 }
  0x46   : > { %389 = vadd.xlane.f32.xlu2 %v388_v35  ;;  %v3870_v35 = vld [vmem:[%s3632_s15 + $0x180] sm:$0xff] }
  0x47   : > { %385 = vadd.xlane.f32.xlu1 %v384_v40  ;;  %7659 = vst [vmem:[#allocation25_spill] sm:$0xff] %v3870_v35  ;;  %v403_v40 = vsel %vm306_vm0, %v3857_v16, 0.0  ;;  %v262_v16 = vld [vmem:[%s3632_s15 + $0x2c0] sm:$0xff] }
  0x48   : > { %381 = vadd.xlane.f32.xlu0 %v380_v42  ;;  %v412_v42 = vadd.f32 %v411_v28, %v3860_v18  ;;  %v404_v56 = vadd.f32 %v403_v40, %v3870_v35  ;;  %v423_v28 = vsel %vm306_vm0, %v3878_v58, 0.0  ;;  %v3897_v35 = vld [vmem:[%s3632_s15 + $0x1b0] sm:$0xff]  ;;  %v3905_v58 = vld [vmem:[%s3632_s15 + $0x208] sm:$0xff]  ;;  %v3908_v18 = vld [vmem:[%s3632_s15 + $0x1f8] sm:$0xff] }
  0x49   : > { %7665 = vst [vmem:[#allocation31_spill] sm:$0xff] %v3897_v35 }
  0x4a   : > { %7666 = vst [vmem:[#allocation32_spill] sm:$0xff] %v3905_v58 }
  0x4b   : > { %7667 = vst [vmem:[#allocation33_spill] sm:$0xff] %v3908_v18 }
  0x4e   : > { %401 = vadd.xlane.f32.xlu2 %v400_v59  ;;  %v3881_v59 = vld [vmem:[%s3632_s15 + $0x1c8] sm:$0xff] }
  0x4f   : > { %397 = vadd.xlane.f32.xlu1 %v396_v3  ;;  %7661 = vst [vmem:[#allocation27_spill] sm:$0xff] %v3881_v59  ;;  %v3884_v3 = vld [vmem:[%s3632_s15 + $0x1b8] sm:$0xff]  ;;  %v419_v40 = vsel %vm306_vm0, %v3881_v59, 0.0  ;;  %v3911_v59 = vld [vmem:[%s3632_s15 + $0x1e8] sm:$0xff] }
  0x50   : > { %393 = vadd.xlane.f32.xlu0 %v392_v8  ;;  %7662 = vst [vmem:[#allocation28_spill] sm:$0xff] %v3884_v3  ;;  %v3887_v8 = vld [vmem:[%s3632_s15 + $0x1d0] sm:$0xff] }
  0x51   : > { %7663 = vst [vmem:[#allocation29_spill] sm:$0xff] %v3887_v8 }
  0x52   : > { %7668 = vst [vmem:[#allocation34_spill] sm:$0xff] %v3911_v59 }
  0x56   : > { %413 = vadd.xlane.f32.xlu2 %v412_v42  ;;  %v415_v42 = vsel %vm306_vm0, %v3884_v3, 0.0  ;;  %v3914_v3 = vld [vmem:[%s3632_s15 + $0x200] sm:$0xff] }
  0x57   : > { %409 = vadd.xlane.f32.xlu1 %v408_v52  ;;  %v424_v52 = vadd.f32 %v423_v28, %v3887_v8  ;;  %v416_v32 = vadd.f32 %v415_v42, %v3897_v35  ;;  %7669 = vst [vmem:[#allocation35_spill] sm:$0xff] %v3914_v3  ;;  %v435_v28 = vsel %vm306_vm0, %v3905_v58, 0.0  ;;  %v431_v42 = vsel %vm306_vm0, %v3908_v18, 0.0  ;;  %v3924_v35 = vld [vmem:[%s3632_s15 + $0x1e0] sm:$0xff]  ;;  %v3932_v58 = vld [vmem:[%s3632_s15 + $0x238] sm:$0xff]  ;;  %v3935_v8 = vld [vmem:[%s3632_s15 + $0x228] sm:$0xff] }
  0x58   : > { %405 = vadd.xlane.f32.xlu0 %v404_v56  ;;  %v420_v56 = vadd.f32 %v419_v40, %v3892_v34  ;;  %v3919_v40 = vld [vmem:[%s3632_s15 + $0x1f0] sm:$0xff]  ;;  %7671 = vst [vmem:[#allocation37_spill] sm:$0xff] %v3924_v35  ;;  %v3938_v18 = vld [vmem:[%s3632_s15 + $0x218] sm:$0xff] }
  0x59   : > { %7670 = vst [vmem:[#allocation36_spill] sm:$0xff] %v3919_v40 }
  0x5a   : > { %7672 = vst [vmem:[#allocation38_spill] sm:$0xff] %v3932_v58 }
  0x5b   : > { %7673 = vst [vmem:[#allocation39_spill] sm:$0xff] %v3935_v8 }
  0x5c   : > { %7674 = vst [vmem:[#allocation40_spill] sm:$0xff] %v3938_v18 }
  0x5e   : > { %425 = vadd.xlane.f32.xlu2 %v424_v52  ;;  %v427_v52 = vsel %vm306_vm0, %v3911_v59, 0.0  ;;  %v3941_v59 = vld [vmem:[%s3632_s15 + $0x230] sm:$0xff] }
  0x5f   : > { %421 = vadd.xlane.f32.xlu1 %v420_v56  ;;  %v432_v56 = vadd.f32 %v431_v42, %v3919_v40  ;;  %v428_v34 = vadd.f32 %v427_v52, %v3924_v35  ;;  %7675 = vst [vmem:[#allocation41_spill] sm:$0xff] %v3941_v59  ;;  %v3946_v42 = vld [vmem:[%s3632_s15 + $0x220] sm:$0xff]  ;;  %v443_v52 = vsel %vm306_vm0, %v3935_v8, 0.0  ;;  %v3951_v35 = vld [vmem:[%s3632_s15 + $0x210] sm:$0xff]  ;;  %v3965_v8 = vld [vmem:[%s3632_s15 + $0x248] sm:$0xff] }
  0x60   : > { %417 = vadd.xlane.f32.xlu0 %v416_v32  ;;  %v436_v32 = vadd.f32 %v435_v28, %v3914_v3  ;;  %v447_v28 = vsel %vm306_vm0, %v3932_v58, 0.0  ;;  %7676 = vst [vmem:[#allocation42_spill] sm:$0xff] %v3946_v42  ;;  %v3959_v58 = vld [vmem:[%s3632_s15 + $0x268] sm:$0xff]  ;;  %v3962_v3 = vld [vmem:[%s3632_s15 + $0x258] sm:$0xff] }
  0x61   : > { %7677 = vst [vmem:[#allocation43_spill] sm:$0xff] %v3951_v35 }
  0x62   : > { %7678 = vst [vmem:[#allocation44_spill] sm:$0xff] %v3959_v58 }
  0x63   : > { %7679 = vst [vmem:[#allocation45_spill] sm:$0xff] %v3962_v3 }
  0x64   : > { %7680 = vst [vmem:[#allocation46_spill] sm:$0xff] %v3965_v8 }
  0x66   : > { %437 = vadd.xlane.f32.xlu2 %v436_v32  ;;  %v439_v32 = vsel %vm306_vm0, %v3938_v18, 0.0  ;;  %v3968_v18 = vld [vmem:[%s3632_s15 + $0x260] sm:$0xff] }
  0x67   : > { %433 = vadd.xlane.f32.xlu1 %v432_v56  ;;  %v444_v56 = vadd.f32 %v443_v52, %v3946_v42  ;;  %v440_v40 = vadd.f32 %v439_v32, %v3951_v35  ;;  %7681 = vst [vmem:[#allocation47_spill] sm:$0xff] %v3968_v18  ;;  %v3973_v52 = vld [vmem:[%s3632_s15 + $0x250] sm:$0xff]  ;;  %v455_v32 = vsel %vm306_vm0, %v3962_v3, 0.0  ;;  %v3978_v35 = vld [vmem:[%s3632_s15 + $0x240] sm:$0xff]  ;;  %v3992_v3 = vld [vmem:[%s3632_s15 + $0x278] sm:$0xff] }
  0x68   : > { %429 = vadd.xlane.f32.xlu0 %v428_v34  ;;  %v448_v34 = vadd.f32 %v447_v28, %v3941_v59  ;;  %v459_v28 = vsel %vm306_vm0, %v3959_v58, 0.0  ;;  %7682 = vst [vmem:[#allocation48_spill] sm:$0xff] %v3973_v52  ;;  %v3986_v58 = vld [vmem:[%s3632_s15 + $0x298] sm:$0xff]  ;;  %v3989_v59 = vld [vmem:[%s3632_s15 + $0x288] sm:$0xff] }
  0x69   : > { %7683 = vst [vmem:[#allocation49_spill] sm:$0xff] %v3978_v35 }
  0x6a   : > { %7684 = vst [vmem:[#allocation50_spill] sm:$0xff] %v3986_v58 }
  0x6b   : > { %7685 = vst [vmem:[#allocation51_spill] sm:$0xff] %v3989_v59 }
  0x6c   : > { %7686 = vst [vmem:[#allocation52_spill] sm:$0xff] %v3992_v3 }
  0x6e   : > { %449 = vadd.xlane.f32.xlu2 %v448_v34  ;;  %v451_v34 = vsel %vm306_vm0, %v3965_v8, 0.0  ;;  %v3995_v8 = vld [vmem:[%s3632_s15 + $0x290] sm:$0xff] }
  0x6f   : > { %445 = vadd.xlane.f32.xlu1 %v444_v56  ;;  %v456_v56 = vadd.f32 %v455_v32, %v3973_v52  ;;  %v452_v42 = vadd.f32 %v451_v34, %v3978_v35  ;;  %7687 = vst [vmem:[#allocation53_spill] sm:$0xff] %v3995_v8  ;;  %v4000_v32 = vld [vmem:[%s3632_s15 + $0x280] sm:$0xff]  ;;  %v467_v34 = vsel %vm306_vm0, %v3989_v59, 0.0  ;;  %v4005_v35 = vld [vmem:[%s3632_s15 + $0x270] sm:$0xff]  ;;  %v259_v59 = vld [vmem:[%s3632_s15 + $0x2a8] sm:$0xff] }
  0x70   : > { %441 = vadd.xlane.f32.xlu0 %v440_v40  ;;  %v460_v40 = vadd.f32 %v459_v28, %v3968_v18  ;;  %v471_v28 = vsel %vm306_vm0, %v3986_v58, 0.0  ;;  %7688 = vst [vmem:[#allocation54_spill] sm:$0xff] %v4000_v32  ;;  %v4013_v58 = vld [vmem:[%s3632_s15 + $0x2c8] sm:$0xff]  ;;  %v4016_v18 = vld [vmem:[%s3632_s15 + $0x2b8] sm:$0xff] }
  0x71   : > { %7689 = vst [vmem:[#allocation55_spill] sm:$0xff] %v4005_v35 }
  0x72   : > { %7690 = vst [vmem:[#allocation56_spill] sm:$0xff] %v4013_v58 }
  0x73   : > { %7691 = vst [vmem:[#allocation57_spill] sm:$0xff] %v4016_v18 }
  0x76   : > { %461 = vadd.xlane.f32.xlu2 %v460_v40  ;;  %v463_v40 = vsel %vm306_vm0, %v3992_v3, 0.0 }
  0x77   : > { %457 = vadd.xlane.f32.xlu1 %v456_v56  ;;  %v468_v56 = vadd.f32 %v467_v34, %v4000_v32  ;;  %v464_v52 = vadd.f32 %v463_v40, %v4005_v35  ;;  %v260_v34 = vld [vmem:[%s3632_s15 + $0x2b0] sm:$0xff]  ;;  %v479_v40 = vsel %vm306_vm0, %v4016_v18, 0.0  ;;  %v258_v35 = vld [vmem:[%s3632_s15 + $0x2a0] sm:$0xff]  ;;  %v475_v32 = vsel %vm306_vm0, %v259_v59, 0.0 }
  0x78   : > { %453 = vadd.xlane.f32.xlu0 %v452_v42  ;;  %v472_v42 = vadd.f32 %v471_v28, %v3995_v8  ;;  %v483_v28 = vsel %vm306_vm0, %v4013_v58, 0.0  ;;  %v480_v3 = vadd.f32 %v479_v40, %v260_v34  ;;  %v476_v12 = vadd.f32 %v475_v32, %v258_v35  ;;  %v268_v58 = vld [vmem:[%s3632_s15 + $0x2f0] sm:$0xff]  ;;  %v266_v18 = vld [vmem:[%s3632_s15 + $0x2e0] sm:$0xff]  ;;  %v275_v34 = vld [vmem:[%s3632_s15 + $0x328] sm:$0xff] }
  0x79   : > { %v484_v8 = vadd.f32 %v483_v28, %v262_v16  ;;  %v264_v59 = vld [vmem:[%s3632_s15 + $0x2d0] sm:$0xff]  ;;  %v273_v40 = vld [vmem:[%s3632_s15 + $0x318] sm:$0xff] }
  0x7a   : > { %v503_v47 = vsel %vm306_vm0, %v273_v40, 0.0  ;;  %v280_v40 = vld [vmem:[%s3632_s15 + $0x350] sm:$0xff] }
  0x7e   : > { %473 = vadd.xlane.f32.xlu2 %v472_v42  ;;  %v269_v42 = vld [vmem:[%s3632_s15 + $0x2f8] sm:$0xff] }
  0x7f   : > { %469 = vadd.xlane.f32.xlu1 %v468_v56  ;;  %v267_v56 = vld [vmem:[%s3632_s15 + $0x2e8] sm:$0xff]  ;;  %v495_v11 = vsel %vm306_vm0, %v269_v42, 0.0 }
  0x80   : > { %465 = vadd.xlane.f32.xlu0 %v464_v52  ;;  %v265_v52 = vld [vmem:[%s3632_s15 + $0x2d8] sm:$0xff]  ;;  %v491_v57 = vsel %vm306_vm0, %v267_v56, 0.0  ;;  %v271_v42 = vld [vmem:[%s3632_s15 + $0x308] sm:$0xff]  ;;  %v274_v56 = vld [vmem:[%s3632_s15 + $0x320] sm:$0xff] }
  0x81   : > { %v487_v16 = vsel %vm306_vm0, %v265_v52, 0.0  ;;  %v507_v52 = vsel %vm306_vm0, %v275_v34, 0.0  ;;  %v277_v34 = vld [vmem:[%s3632_s15 + $0x338] sm:$0xff] }
  0x82   : > { %v488_v28 = vadd.f32 %v487_v16, %v264_v59  ;;  %v508_v59 = vadd.f32 %v507_v52, %v274_v56  ;;  %v504_v16 = vadd.f32 %v503_v47, %v272_v54 }
  0x86   : > { %485 = vadd.xlane.f32.xlu2 %v484_v8 }
  0x87   : > { %481 = vadd.xlane.f32.xlu1 %v480_v3  ;;  %v496_v3 = vadd.f32 %v495_v11, %v268_v58 }
  0x88   : > { %477 = vadd.xlane.f32.xlu0 %v476_v12  ;;  %v492_v12 = vadd.f32 %v491_v57, %v266_v18  ;;  %v499_v57 = vsel %vm306_vm0, %v271_v42, 0.0 }
  0x89   : > { %v4036_v35 = vpop.xlane.xlu2 %325 }
  0x8a   : > { %v4038_v32 = vpop.xlane.xlu1 %317 }
  0x8b   : > { %v4040_v8 = vpop.xlane.xlu0 %309 }
  0x8c   : > { %v571_v61 = vmul.f32 0.0051020407, %v4040_v8 }
  0x8e   : > { %497 = vadd.xlane.f32.xlu2 %v496_v3  ;;  %v500_v3 = vadd.f32 %v499_v57, %v270_v46  ;;  %v511_v46 = vsel %vm306_vm0, %v277_v34, 0.0  ;;  %v4135_v8 = vsub.f32 %v3652_v6, %v571_v61 }
  0x8f   : > { %493 = vadd.xlane.f32.xlu1 %v492_v12  ;;  %v281_v12 = vld [vmem:[%s3632_s15 + $0x358] sm:$0xff] }
  0x90   : > { %489 = vadd.xlane.f32.xlu0 %v488_v28  ;;  %v279_v28 = vld [vmem:[%s3632_s15 + $0x348] sm:$0xff]  ;;  %v519_v42 = vsel %vm306_vm0, %v281_v12, 0.0  ;;  %7695 = vst [vmem:[#allocation61_spill] sm:$0xff] %v4135_v8 }
  0x91   : > { %v4051_v11 = vpop.xlane.xlu2 %329  ;;  %v515_v44 = vsel %vm306_vm0, %v279_v28, 0.0  ;;  %v520_v52 = vadd.f32 %v519_v42, %v280_v40  ;;  %v283_v12 = vld [vmem:[%s3632_s15 + $0x368] sm:$0xff]  ;;  %v286_v28 = vld [vmem:[%s3632_s15 + $0x380] sm:$0xff] }
  0x92   : > { %v4053_v18 = vpop.xlane.xlu1 %321  ;;  %v516_v57 = vadd.f32 %v515_v44, %v278_v45  ;;  %v576_v6 = vmul.f32 0.0051020407, %v4051_v11 }
  0x93   : > { %v4055_v58 = vpop.xlane.xlu0 %313 }
  0x96   : > { %509 = vadd.xlane.f32.xlu2 %v508_v59  ;;  %v512_v59 = vadd.f32 %v511_v46, %v276_v33  ;;  %v523_v33 = vsel %vm306_vm0, %v283_v12, 0.0 }
  0x97   : > { %505 = vadd.xlane.f32.xlu1 %v504_v16  ;;  %v287_v16 = vld [vmem:[%s3632_s15 + $0x388] sm:$0xff] }
  0x98   : > { %501 = vadd.xlane.f32.xlu0 %v500_v3  ;;  %v285_v3 = vld [vmem:[%s3632_s15 + $0x378] sm:$0xff]  ;;  %v531_v34 = vsel %vm306_vm0, %v287_v16, 0.0 }
  0x99   : > { %v4066_v47 = vpop.xlane.xlu2 %341  ;;  %v527_v23 = vsel %vm306_vm0, %v285_v3, 0.0  ;;  %v532_v42 = vadd.f32 %v531_v34, %v286_v28  ;;  %v289_v16 = vld [vmem:[%s3632_s15 + $0x398] sm:$0xff]  ;;  %v292_v3 = vld [vmem:[%s3632_s15 + $0x3b0] sm:$0xff] }
  0x9a   : > { %v4068_v54 = vpop.xlane.xlu1 %337  ;;  %v528_v46 = vadd.f32 %v527_v23, %v284_v30 }
  0x9b   : > { %v4070_v56 = vpop.xlane.xlu0 %333 }
  0x9e   : > { %521 = vadd.xlane.f32.xlu2 %v520_v52  ;;  %v524_v52 = vadd.f32 %v523_v33, %v282_v22  ;;  %v535_v22 = vsel %vm306_vm0, %v289_v16, 0.0 }
  0x9f   : > { %517 = vadd.xlane.f32.xlu1 %v516_v57  ;;  %v293_v57 = vld [vmem:[%s3632_s15 + $0x3b8] sm:$0xff] }
  0xa0   : > { %513 = vadd.xlane.f32.xlu0 %v512_v59  ;;  %v291_v59 = vld [vmem:[%s3632_s15 + $0x3a8] sm:$0xff]  ;;  %v543_v12 = vsel %vm306_vm0, %v293_v57, 0.0 }
  0xa1   : > { %v4081_v44 = vpop.xlane.xlu2 %353  ;;  %v539_v20 = vsel %vm306_vm0, %v291_v59, 0.0  ;;  %v544_v34 = vadd.f32 %v543_v12, %v292_v3  ;;  %v295_v57 = vld [vmem:[%s3632_s15 + $0x3c8] sm:$0xff]  ;;  %v298_v59 = vld [vmem:[%s3632_s15 + $0x3e0] sm:$0xff] }
  0xa2   : > { %v4083_v45 = vpop.xlane.xlu1 %349  ;;  %v540_v33 = vadd.f32 %v539_v20, %v290_v21  ;;  %v547_v3 = vsel %vm306_vm0, %v295_v57, 0.0  ;;  %v572_v57 = vmul.f32 0.0051020407, %v4055_v58 }
  0xa3   : > { %v4085_v40 = vpop.xlane.xlu0 %345 }
  0xa4   : > { %v4138_v58 = vsub.f32 %v3668_v14, %v572_v57  ;;  %v4153_v14 = vsub.f32 %v3681_v19, %v572_v57 }
  0xa6   : > { %533 = vadd.xlane.f32.xlu2 %v532_v42  ;;  %v536_v42 = vadd.f32 %v535_v22, %v288_v9  ;;  %7696 = vst [vmem:[#allocation62_spill] sm:$0xff] %v4138_v58 }
  0xa7   : > { %529 = vadd.xlane.f32.xlu1 %v528_v46  ;;  %v299_v46 = vld [vmem:[%s3632_s15 + $0x3e8] sm:$0xff]  ;;  %7699 = vst [vmem:[#allocation65_spill] sm:$0xff] %v4153_v14 }
  0xa8   : > { %525 = vadd.xlane.f32.xlu0 %v524_v52  ;;  %v297_v52 = vld [vmem:[%s3632_s15 + $0x3d8] sm:$0xff]  ;;  %v555_v16 = vsel %vm306_vm0, %v299_v46, 0.0  ;;  %v303_v46 = vld [vmem:[%s3632_s15 + $0x408] sm:$0xff] }
  0xa9   : > { %v4096_v23 = vpop.xlane.xlu2 %365  ;;  %v551_v63 = vsel %vm306_vm0, %v297_v52, 0.0  ;;  %v556_v12 = vadd.f32 %v555_v16, %v298_v59  ;;  %v301_v52 = vld [vmem:[%s3632_s15 + $0x3f8] sm:$0xff]  ;;  %v563_v59 = vsel %vm306_vm0, %v303_v46, 0.0  ;;  %v4149_v46 = vsub.f32 %v3649_v5, %v571_v61 }
  0xaa   : > { %v4098_v30 = vpop.xlane.xlu1 %361  ;;  %v552_v22 = vadd.f32 %v551_v63, %v296_v7  ;;  %v300_v63 = vld [vmem:[%s3632_s15 + $0x3f0] sm:$0xff]  ;;  %v4168_v61 = vsub.f32 %v3660_v10, %v576_v6 }
  0xab   : > { %v4100_v28 = vpop.xlane.xlu0 %357  ;;  %7698 = vst [vmem:[#allocation64_spill] sm:$0xff] %v4149_v46 }
  0xac   : > { %7701 = vst [vmem:[#allocation67_spill] sm:$0xff] %v4168_v61 }
  0xae   : > { %545 = vadd.xlane.f32.xlu2 %v544_v34  ;;  %v548_v34 = vadd.f32 %v547_v3, %v294_v62  ;;  %v559_v62 = vsel %vm306_vm0, %v301_v52, 0.0 }
  0xaf   : > { %541 = vadd.xlane.f32.xlu1 %v540_v33  ;;  %v305_v33 = vld [vmem:[%s3632_s15 + $0x418] sm:$0xff] }
  0xb0   : > { %537 = vadd.xlane.f32.xlu0 %v536_v42  ;;  %v573_v42 = vmul.f32 0.0051020407, %v4038_v32 }
  0xb1   : > { %v4111_v9 = vpop.xlane.xlu2 %377 }
  0xb2   : > { %v4113_v20 = vpop.xlane.xlu1 %373  ;;  %v4130_v7 = vsub.f32 %v3646_v4, %v573_v42  ;;  %v4146_v4 = vsub.f32 %v3641_v2, %v573_v42  ;;  %v772_v2 = vmul.f32 %v4138_v58, %v4138_v58  ;;  %v1976_v58 = vld [vmem:[%s5157_s19 + $0x98] sm:$0xff] }
  0xb3   : > { %7692 = vst [vmem:[#allocation58_spill] sm:$0xff] %v4113_v20  ;;  %v4115_v21 = vpop.xlane.xlu0 %369  ;;  %v567_v20 = vsel %vm306_vm0, %v305_v33, 0.0  ;;  %v560_v33 = vadd.f32 %v559_v62, %v300_v63 }
  0xb4   : > { %7693 = vst [vmem:[#allocation59_spill] sm:$0xff] %v4115_v21  ;;  %v302_v21 = vld [vmem:[%s3632_s15 + $0x400] sm:$0xff]  ;;  %v774_v52 = vmul.f32 %v4130_v7, %v4130_v7  ;;  %v773_v19 = vmul.f32 %v4146_v4, %v4146_v4 }
  0xb5   : > { %7694 = vst [vmem:[#allocation60_spill] sm:$0xff] %v4130_v7 }
  0xb6   : > { %557 = vadd.xlane.f32.xlu2 %v556_v12  ;;  %v568_v12 = vadd.f32 %v567_v20, %v304_v60  ;;  %7697 = vst [vmem:[#allocation63_spill] sm:$0xff] %v4146_v4  ;;  %v574_v60 = vmul.f32 0.0051020407, %v4053_v18  ;;  %v909_v18 = vsel %vm306_vm0, %v774_v52, 0.0  ;;  %v769_v20 = vmul.f32 %v4149_v46, %v4149_v46 }
  0xb7   : > { %553 = vadd.xlane.f32.xlu1 %v552_v22  ;;  %v575_v22 = vmul.f32 0.0051020407, %v4036_v35  ;;  %v770_v35 = vmul.f32 %v4135_v8, %v4135_v8 }
  0xb8   : > { %549 = vadd.xlane.f32.xlu0 %v548_v34  ;;  %v564_v34 = vadd.f32 %v563_v59, %v302_v21  ;;  %v771_v21 = vmul.f32 %v4153_v14, %v4153_v14  ;;  %v905_v59 = vsel %vm306_vm0, %v772_v2, 0.0  ;;  %v4197_v52 = vsub.f32 %v3676_v17, %v574_v60 }
  0xb9   : > { %v4132_v32 = vpop.xlane.xlu2 %389  ;;  %v4163_v5 = vsub.f32 %v3638_v1, %v575_v22  ;;  %v4178_v1 = vsub.f32 %v3665_v13, %v574_v60  ;;  %v901_v10 = vsel %vm306_vm0, %v770_v35, 0.0  ;;  %v4187_v63 = vsub.f32 %v3635_v0, %v575_v22 }
  0xba   : > { %v4140_v16 = vpop.xlane.xlu1 %385  ;;  %v579_v13 = vmul.f32 0.0051020407, %v4066_v47  ;;  %7705 = vst [vmem:[#allocation71_spill] sm:$0xff] %v4197_v52  ;;  %v902_v35 = vadd.f32 %v901_v10, %v769_v20  ;;  %v906_v8 = vadd.f32 %v905_v59, %v771_v21  ;;  %v780_v0 = vmul.f32 %v4168_v61, %v4168_v61 }
  0xbb   : > { %v4142_v3 = vpop.xlane.xlu0 %381  ;;  %7700 = vst [vmem:[#allocation66_spill] sm:$0xff] %v4163_v5  ;;  %v778_v62 = vmul.f32 %v4163_v5, %v4163_v5  ;;  %v577_v22 = vmul.f32 0.0051020407, %v4070_v56  ;;  %v777_v47 = vmul.f32 %v4187_v63, %v4187_v63  ;;  %v582_v59 = vmul.f32 0.0051020407, %v4081_v44 }
  0xbc   : > { %7702 = vst [vmem:[#allocation68_spill] sm:$0xff] %v4178_v1  ;;  %v921_v2 = vsel %vm306_vm0, %v780_v0, 0.0  ;;  %v4229_v20 = vsub.f32 %v3698_v27, %v579_v13  ;;  %v581_v0 = vmul.f32 0.0051020407, %v4083_v45  ;;  %v580_v27 = vmul.f32 0.0051020407, %v4085_v40 }
  0xbd   : > { %7703 = vst [vmem:[#allocation69_spill] sm:$0xff] %v4187_v63  ;;  %v917_v56 = vsel %vm306_vm0, %v778_v62, 0.0 }
  0xbe   : > { %569 = vadd.xlane.f32.xlu2 %v568_v12  ;;  %v4192_v12 = vsub.f32 %v3671_v15, %v576_v6  ;;  %v776_v15 = vmul.f32 %v4178_v1, %v4178_v1  ;;  %7709 = vst [vmem:[#allocation75_spill] sm:$0xff] %v4229_v20  ;;  %v918_v10 = vadd.f32 %v917_v56, %v777_v47 }
  0xbf   : > { %565 = vadd.xlane.f32.xlu1 %v564_v34  ;;  %v578_v34 = vmul.f32 0.0051020407, %v4068_v54  ;;  %v4207_v54 = vsub.f32 %v3689_v24, %v579_v13  ;;  %v785_v44 = vmul.f32 %v4229_v20, %v4229_v20 }
  0xc0   : > { %561 = vadd.xlane.f32.xlu0 %v560_v33  ;;  %7704 = vst [vmem:[#allocation70_spill] sm:$0xff] %v4192_v12  ;;  %v910_v33 = vadd.f32 %v909_v18, %v773_v19  ;;  %v779_v6 = vmul.f32 %v4192_v12, %v4192_v12  ;;  %v4221_v19 = vsub.f32 %v3695_v26, %v577_v22 }
  0xc1   : > { %v4170_v11 = vpop.xlane.xlu2 %401  ;;  %7706 = vst [vmem:[#allocation72_spill] sm:$0xff] %v4207_v54  ;;  %v4210_v17 = vsub.f32 %v3692_v25, %v578_v34  ;;  %v913_v25 = vsel %vm306_vm0, %v776_v15, 0.0  ;;  %v4232_v21 = vsub.f32 %v3703_v29, %v578_v34  ;;  %v786_v26 = vmul.f32 %v4207_v54, %v4207_v54  ;;  %v7736_v54 = vld [vmem:[#allocation7_spill] sm:$0xff] }
  0xc2   : > { %v4180_v42 = vpop.xlane.xlu1 %397  ;;  %7708 = vst [vmem:[#allocation74_spill] sm:$0xff] %v4221_v19  ;;  %v922_v62 = vadd.f32 %v921_v2, %v779_v6  ;;  %v782_v29 = vmul.f32 %v4221_v19, %v4221_v19  ;;  %v4259_v15 = vsub.f32 %v3722_v38, %v580_v27  ;;  %v4277_v38 = vsub.f32 %v3735_v43, %v580_v27 }
  0xc3   : > { %v4182_v57 = vpop.xlane.xlu0 %393  ;;  %7707 = vst [vmem:[#allocation73_spill] sm:$0xff] %v4210_v17  ;;  %v783_v34 = vmul.f32 %v4232_v21, %v4232_v21  ;;  %v933_v45 = vsel %vm306_vm0, %v786_v26, 0.0 }
  0xc4   : > { %7710 = vst [vmem:[#allocation76_spill] sm:$0xff] %v4232_v21  ;;  %v787_v27 = vmul.f32 %v4277_v38, %v4277_v38 }
  0xc5   : > { %7714 = vst [vmem:[#allocation80_spill] sm:$0xff] %v4259_v15 }
  0xc6   : > { %911 = vadd.xlane.f32.xlu2 %v910_v33  ;;  %v784_v33 = vmul.f32 %v4210_v17, %v4210_v17  ;;  %7717 = vst [vmem:[#allocation83_spill] sm:$0xff] %v4277_v38 }
  0xc7   : > { %907 = vadd.xlane.f32.xlu1 %v906_v8  ;;  %v775_v8 = vmul.f32 %v4197_v52, %v4197_v52 }
  0xc8   : > { %903 = vadd.xlane.f32.xlu0 %v902_v35  ;;  %v4240_v35 = vsub.f32 %v3708_v31, %v577_v22  ;;  %v4251_v31 = vsub.f32 %v3716_v36, %v582_v59  ;;  %v929_v40 = vsel %vm306_vm0, %v784_v33, 0.0  ;;  %v4256_v22 = vsub.f32 %v3719_v37, %v581_v0 }
  0xc9   : > { %v4215_v60 = vpop.xlane.xlu2 %413  ;;  %v914_v13 = vadd.f32 %v913_v25, %v775_v8  ;;  %v925_v36 = vsel %vm306_vm0, %v782_v29, 0.0  ;;  %v4271_v8 = vsub.f32 %v3725_v39, %v582_v59  ;;  %v934_v25 = vadd.f32 %v933_v45, %v785_v44 }
  0xca   : > { %v4223_v24 = vpop.xlane.xlu1 %409  ;;  %7711 = vst [vmem:[#allocation77_spill] sm:$0xff] %v4240_v35  ;;  %v781_v6 = vmul.f32 %v4240_v35, %v4240_v35  ;;  %v930_v37 = vadd.f32 %v929_v40, %v783_v34  ;;  %v792_v26 = vmul.f32 %v4251_v31, %v4251_v31  ;;  %v584_v33 = vmul.f32 0.0051020407, %v4098_v30 }
  0xcb   : > { %v4225_v18 = vpop.xlane.xlu0 %405  ;;  %7712 = vst [vmem:[#allocation78_spill] sm:$0xff] %v4251_v31  ;;  %v790_v39 = vmul.f32 %v4256_v22, %v4256_v22  ;;  %v788_v59 = vmul.f32 %v4259_v15, %v4259_v15  ;;  %v791_v43 = vmul.f32 %v4271_v8, %v4271_v8 }
  0xcc   : > { %7713 = vst [vmem:[#allocation79_spill] sm:$0xff] %v4256_v22  ;;  %v945_v30 = vsel %vm306_vm0, %v792_v26, 0.0  ;;  %v4299_v29 = vsub.f32 %v3746_v49, %v584_v33  ;;  %v4316_v49 = vsub.f32 %v3757_v53, %v584_v33 }
  0xcd   : > { %7715 = vst [vmem:[#allocation81_spill] sm:$0xff] %v4271_v8  ;;  %v941_v44 = vsel %vm306_vm0, %v790_v39, 0.0  ;;  %v937_v34 = vsel %vm306_vm0, %v788_v59, 0.0  ;;  %v7724_v39 = vld [vmem:[#allocation58_spill] sm:$0xff] }
  0xce   : > { %923 = vadd.xlane.f32.xlu2 %v922_v62  ;;  %v585_v62 = vmul.f32 0.0051020407, %v4096_v23  ;;  %7719 = vst [vmem:[#allocation85_spill] sm:$0xff] %v4299_v29  ;;  %v587_v59 = vmul.f32 0.0051020407, %v7724_v39 }
  0xcf   : > { %919 = vadd.xlane.f32.xlu1 %v918_v10  ;;  %v4274_v10 = vsub.f32 %v3730_v41, %v581_v0  ;;  %v583_v41 = vmul.f32 0.0051020407, %v4100_v28  ;;  %7722 = vst [vmem:[#allocation88_spill] sm:$0xff] %v4316_v49 }
  0xd0   : > { %915 = vadd.xlane.f32.xlu0 %v914_v13  ;;  %v926_v13 = vadd.f32 %v925_v36, %v781_v6  ;;  %v4291_v23 = vsub.f32 %v3743_v48, %v585_v62  ;;  %v4313_v6 = vsub.f32 %v3752_v51, %v585_v62  ;;  %v946_v36 = vadd.f32 %v945_v30, %v791_v43  ;;  %v7725_v62 = vld [vmem:[#allocation59_spill] sm:$0xff] }
  0xd1   : > { %v4261_v47 = vpop.xlane.xlu2 %425  ;;  %7716 = vst [vmem:[#allocation82_spill] sm:$0xff] %v4274_v10  ;;  %v789_v0 = vmul.f32 %v4274_v10, %v4274_v10  ;;  %v4306_v48 = vsub.f32 %v3749_v50, %v583_v41  ;;  %v588_v50 = vmul.f32 0.0051020407, %v4111_v9  ;;  %v796_v51 = vmul.f32 %v4299_v29, %v4299_v29 }
  0xd2   : > { %v4265_v56 = vpop.xlane.xlu1 %421  ;;  %7718 = vst [vmem:[#allocation84_spill] sm:$0xff] %v4291_v23  ;;  %v798_v26 = vmul.f32 %v4291_v23, %v4291_v23  ;;  %v586_v43 = vmul.f32 0.0051020407, %v7725_v62  ;;  %v797_v33 = vmul.f32 %v4313_v6, %v4313_v6  ;;  %v795_v9 = vmul.f32 %v4316_v49, %v4316_v49  ;;  %v7732_v23 = vld [vmem:[#allocation5_spill] sm:$0xff] }
  0xd3   : > { %v4267_v2 = vpop.xlane.xlu0 %417  ;;  %7720 = vst [vmem:[#allocation86_spill] sm:$0xff] %v4306_v48  ;;  %v794_v53 = vmul.f32 %v4306_v48, %v4306_v48 }
  0xd4   : > { %7721 = vst [vmem:[#allocation87_spill] sm:$0xff] %v4313_v6  ;;  %v7734_v6 = vld [vmem:[#allocation6_spill] sm:$0xff]  ;;  %v4362_v20 = vsub.f32 %v7736_v54, %v586_v43 }
  0xd5   : > { %v949_v62 = vsel %vm306_vm0, %v794_v53, 0.0  ;;  %v4358_v31 = vsub.f32 %v7734_v6, %v587_v59 }
  0xd6   : > { %935 = vadd.xlane.f32.xlu2 %v934_v25  ;;  %v942_v25 = vadd.f32 %v941_v44, %v789_v0  ;;  %v7728_v0 = vld [vmem:[#allocation3_spill] sm:$0xff]  ;;  %7737 = vst [vmem:[#allocation5_spill] sm:$0xff] %v4362_v20 }
  0xd7   : > { %931 = vadd.xlane.f32.xlu1 %v930_v37  ;;  %v938_v37 = vadd.f32 %v937_v34, %v787_v27  ;;  %v4339_v27 = vsub.f32 %v7728_v0, %v587_v59  ;;  %v953_v34 = vsel %vm306_vm0, %v796_v51, 0.0  ;;  %v4355_v0 = vsub.f32 %v7732_v23, %v588_v50 }
  0xd8   : > { %927 = vadd.xlane.f32.xlu0 %v926_v13  ;;  %v4321_v13 = vsub.f32 %v3762_v55, %v583_v41  ;;  %v957_v55 = vsel %vm306_vm0, %v798_v26, 0.0  ;;  %v7726_v41 = vld [vmem:[#allocation2_spill] sm:$0xff]  ;;  %v591_v51 = vmul.f32 0.0051020407, %v4132_v32  ;;  %v954_v8 = vadd.f32 %v953_v34, %v795_v9  ;;  %v7738_v32 = vld [vmem:[#allocation8_spill] sm:$0xff] }
  0xd9   : > { %v4301_v28 = vpop.xlane.xlu2 %437  ;;  %v4336_v30 = vsub.f32 %v7726_v41, %v588_v50  ;;  %7729 = vst [vmem:[#allocation59_spill] sm:$0xff] %v4339_v27  ;;  %v958_v41 = vadd.f32 %v957_v55, %v797_v33  ;;  %v802_v53 = vmul.f32 %v4339_v27, %v4339_v27  ;;  %v590_v33 = vmul.f32 0.0051020407, %v4140_v16  ;;  %v7742_v34 = vld [vmem:[#allocation10_spill] sm:$0xff]  ;;  %v7746_v27 = vld [vmem:[#allocation12_spill] sm:$0xff] }
  0xda   : > { %v4308_v45 = vpop.xlane.xlu1 %433  ;;  %7723 = vst [vmem:[#allocation89_spill] sm:$0xff] %v4321_v13  ;;  %v589_v23 = vmul.f32 0.0051020407, %v4142_v3  ;;  %v4373_v54 = vsub.f32 %v7738_v32, %v591_v51  ;;  %v803_v50 = vmul.f32 %v4355_v0, %v4355_v0  ;;  %v801_v59 = vmul.f32 %v4358_v31, %v4358_v31  ;;  %v7744_v32 = vld [vmem:[#allocation11_spill] sm:$0xff] }
  0xdb   : > { %v4310_v40 = vpop.xlane.xlu0 %429  ;;  %7727 = vst [vmem:[#allocation58_spill] sm:$0xff] %v4336_v30  ;;  %v804_v61 = vmul.f32 %v4336_v30, %v4336_v30  ;;  %v965_v3 = vsel %vm306_vm0, %v802_v53, 0.0  ;;  %v799_v55 = vmul.f32 %v4362_v20, %v4362_v20  ;;  %v4397_v30 = vsub.f32 %v7744_v32, %v591_v51 }
  0xdc   : > { %7733 = vst [vmem:[#allocation3_spill] sm:$0xff] %v4355_v0  ;;  %v966_v0 = vadd.f32 %v965_v3, %v801_v59  ;;  %v593_v20 = vmul.f32 0.0051020407, %v4180_v42 }
  0xdd   : > { %7739 = vst [vmem:[#allocation6_spill] sm:$0xff] %v4373_v54  ;;  %v969_v16 = vsel %vm306_vm0, %v804_v61, 0.0  ;;  %v594_v61 = vmul.f32 0.0051020407, %v4170_v11 }
  0xde   : > { %947 = vadd.xlane.f32.xlu2 %v946_v36  ;;  %v793_v36 = vmul.f32 %v4321_v13, %v4321_v13  ;;  %v970_v53 = vadd.f32 %v969_v16, %v803_v50  ;;  %v7752_v50 = vld [vmem:[#allocation15_spill] sm:$0xff] }
  0xdf   : > { %943 = vadd.xlane.f32.xlu1 %v942_v25  ;;  %v7730_v25 = vld [vmem:[#allocation4_spill] sm:$0xff]  ;;  %v4421_v59 = vsub.f32 %v7752_v50, %v593_v20  ;;  %v7758_v50 = vld [vmem:[#allocation18_spill] sm:$0xff] }
  0xe0   : > { %939 = vadd.xlane.f32.xlu0 %v938_v37  ;;  %v4347_v37 = vsub.f32 %v7730_v25, %v586_v43  ;;  %7735 = vst [vmem:[#allocation4_spill] sm:$0xff] %v4358_v31  ;;  %v950_v25 = vadd.f32 %v949_v62, %v793_v36  ;;  %v4389_v36 = vsub.f32 %v7742_v34, %v589_v23  ;;  %v7748_v34 = vld [vmem:[#allocation13_spill] sm:$0xff] }
  0xe1   : > { %v4341_v44 = vpop.xlane.xlu2 %449  ;;  %v4403_v31 = vsub.f32 %v7746_v27, %v590_v33  ;;  %v809_v27 = vmul.f32 %v4397_v30, %v4397_v30  ;;  %7753 = vst [vmem:[#allocation13_spill] sm:$0xff] %v4421_v59 }
  0xe2   : > { %7731 = vst [vmem:[#allocation2_spill] sm:$0xff] %v4347_v37  ;;  %v4349_v26 = vpop.xlane.xlu1 %445  ;;  %v800_v6 = vmul.f32 %v4347_v37, %v4347_v37  ;;  %v4406_v37 = vsub.f32 %v7748_v34, %v589_v23  ;;  %v806_v51 = vmul.f32 %v4389_v36, %v4389_v36 }
  0xe3   : > { %v4351_v39 = vpop.xlane.xlu0 %441  ;;  %7743 = vst [vmem:[#allocation8_spill] sm:$0xff] %v4389_v36  ;;  %v807_v16 = vmul.f32 %v4403_v31, %v4403_v31 }
  0xe4   : > { %7747 = vst [vmem:[#allocation10_spill] sm:$0xff] %v4403_v31  ;;  %v7760_v31 = vld [vmem:[#allocation19_spill] sm:$0xff] }
  0xe5   : > { %7749 = vst [vmem:[#allocation11_spill] sm:$0xff] %v4406_v37 }
  0xe6   : > { %959 = vadd.xlane.f32.xlu2 %v958_v41 }
  0xe7   : > { %955 = vadd.xlane.f32.xlu1 %v954_v8  ;;  %v7740_v8 = vld [vmem:[#allocation9_spill] sm:$0xff] }
  0xe8   : > { %951 = vadd.xlane.f32.xlu0 %v950_v25  ;;  %v4386_v9 = vsub.f32 %v7740_v8, %v590_v33  ;;  %v961_v25 = vsel %vm306_vm0, %v800_v6, 0.0  ;;  %7745 = vst [vmem:[#allocation9_spill] sm:$0xff] %v4397_v30  ;;  %v810_v8 = vmul.f32 %v4373_v54, %v4373_v54  ;;  %v592_v6 = vmul.f32 0.0051020407, %v4182_v57  ;;  %v7750_v33 = vld [vmem:[#allocation14_spill] sm:$0xff] }
  0xe9   : > { %v4379_v43 = vpop.xlane.xlu2 %461  ;;  %v962_v12 = vadd.f32 %v961_v25, %v799_v55  ;;  %v4417_v23 = vsub.f32 %v7750_v33, %v594_v61  ;;  %v4442_v54 = vsub.f32 %v7758_v50, %v593_v20  ;;  %v597_v30 = vmul.f32 0.0051020407, %v4215_v60 }
  0xea   : > { %7741 = vst [vmem:[#allocation7_spill] sm:$0xff] %v4386_v9  ;;  %v4391_v62 = vpop.xlane.xlu1 %457  ;;  %v808_v11 = vmul.f32 %v4386_v9, %v4386_v9  ;;  %v981_v42 = vsel %vm306_vm0, %v810_v8, 0.0  ;;  %v7756_v8 = vld [vmem:[#allocation17_spill] sm:$0xff]  ;;  %v4449_v36 = vsub.f32 %v7760_v31, %v592_v6 }
  0xeb   : > { %v4393_v41 = vpop.xlane.xlu0 %453  ;;  %7751 = vst [vmem:[#allocation12_spill] sm:$0xff] %v4417_v23  ;;  %v4439_v34 = vsub.f32 %v7756_v8, %v594_v61  ;;  %v982_v33 = vadd.f32 %v981_v42, %v809_v27  ;;  %v816_v9 = vmul.f32 %v4417_v23, %v4417_v23  ;;  %v814_v61 = vmul.f32 %v4421_v59, %v4421_v59  ;;  %v7764_v31 = vld [vmem:[#allocation21_spill] sm:$0xff] }
  0xec   : > { %v977_v32 = vsel %vm306_vm0, %v808_v11, 0.0  ;;  %7761 = vst [vmem:[#allocation17_spill] sm:$0xff] %v4449_v36 }
  0xed   : > { %7757 = vst [vmem:[#allocation15_spill] sm:$0xff] %v4439_v34  ;;  %v978_v11 = vadd.f32 %v977_v32, %v807_v16  ;;  %v815_v60 = vmul.f32 %v4439_v34, %v4439_v34  ;;  %v993_v42 = vsel %vm306_vm0, %v816_v9, 0.0  ;;  %v7766_v32 = vld [vmem:[#allocation22_spill] sm:$0xff]  ;;  %v7768_v9 = vld [vmem:[#allocation23_spill] sm:$0xff] }
  0xee   : > { %971 = vadd.xlane.f32.xlu2 %v970_v53  ;;  %v973_v53 = vsel %vm306_vm0, %v806_v51, 0.0  ;;  %v595_v51 = vmul.f32 0.0051020407, %v4225_v18  ;;  %v813_v18 = vmul.f32 %v4442_v54, %v4442_v54 }
  0xef   : > { %967 = vadd.xlane.f32.xlu1 %v966_v0  ;;  %v805_v0 = vmul.f32 %v4406_v37, %v4406_v37  ;;  %v994_v23 = vadd.f32 %v993_v42, %v815_v60  ;;  %v7774_v42 = vld [vmem:[#allocation26_spill] sm:$0xff] }
  0xf0   : > { %963 = vadd.xlane.f32.xlu0 %v962_v12  ;;  %v7754_v12 = vld [vmem:[#allocation16_spill] sm:$0xff] }
  0xf1   : > { %v4423_v57 = vpop.xlane.xlu2 %473  ;;  %v4430_v3 = vsub.f32 %v7754_v12, %v592_v6  ;;  %7759 = vst [vmem:[#allocation16_spill] sm:$0xff] %v4442_v54  ;;  %v596_v12 = vmul.f32 0.0051020407, %v4223_v24  ;;  %v974_v37 = vadd.f32 %v973_v53, %v805_v0  ;;  %v7762_v24 = vld [vmem:[#allocation20_spill] sm:$0xff]  ;;  %v989_v0 = vsel %vm306_vm0, %v814_v61, 0.0  ;;  %v7772_v54 = vld [vmem:[#allocation25_spill] sm:$0xff] }
  0xf2   : > { %v4432_v55 = vpop.xlane.xlu1 %469  ;;  %v4459_v27 = vsub.f32 %v7762_v24, %v597_v30  ;;  %v4473_v53 = vsub.f32 %v7766_v32, %v595_v51  ;;  %v7770_v24 = vld [vmem:[#allocation24_spill] sm:$0xff]  ;;  %v600_v61 = vmul.f32 0.0051020407, %v4261_v47  ;;  %v990_v34 = vadd.f32 %v989_v0, %v813_v18 }
  0xf3   : > { %7755 = vst [vmem:[#allocation14_spill] sm:$0xff] %v4430_v3  ;;  %v4434_v25 = vpop.xlane.xlu0 %465  ;;  %v812_v20 = vmul.f32 %v4430_v3, %v4430_v3  ;;  %v4462_v6 = vsub.f32 %v7764_v31, %v596_v12  ;;  %v4484_v31 = vsub.f32 %v7770_v24, %v596_v12  ;;  %v4492_v3 = vsub.f32 %v7772_v54, %v595_v51  ;;  %v7776_v51 = vld [vmem:[#allocation27_spill] sm:$0xff]  ;;  %v7778_v18 = vld [vmem:[#allocation28_spill] sm:$0xff] }
  0xf4   : > { %7763 = vst [vmem:[#allocation18_spill] sm:$0xff] %v4459_v27  ;;  %v822_v32 = vmul.f32 %v4459_v27, %v4459_v27  ;;  %v818_v12 = vmul.f32 %v4473_v53, %v4473_v53  ;;  %v4503_v54 = vsub.f32 %v7774_v42, %v600_v61  ;;  %v7782_v27 = vld [vmem:[#allocation30_spill] sm:$0xff] }
  0xf5   : > { %7765 = vst [vmem:[#allocation19_spill] sm:$0xff] %v4462_v6  ;;  %v985_v50 = vsel %vm306_vm0, %v812_v20, 0.0  ;;  %v820_v59 = vmul.f32 %v4462_v6, %v4462_v6  ;;  %v599_v20 = vmul.f32 0.0051020407, %v4265_v56  ;;  %v819_v60 = vmul.f32 %v4484_v31, %v4484_v31 }
  0xf6   : > { %983 = vadd.xlane.f32.xlu2 %v982_v33  ;;  %7767 = vst [vmem:[#allocation20_spill] sm:$0xff] %v4473_v53  ;;  %v1005_v56 = vsel %vm306_vm0, %v822_v32, 0.0  ;;  %v7780_v32 = vld [vmem:[#allocation29_spill] sm:$0xff]  ;;  %v828_v53 = vmul.f32 %v4503_v54, %v4503_v54 }
  0xf7   : > { %979 = vadd.xlane.f32.xlu1 %v978_v11  ;;  %v4481_v11 = vsub.f32 %v7768_v9, %v597_v30  ;;  %7771 = vst [vmem:[#allocation22_spill] sm:$0xff] %v4484_v31  ;;  %v598_v30 = vmul.f32 0.0051020407, %v4267_v2  ;;  %v1001_v2 = vsel %vm306_vm0, %v820_v59, 0.0  ;;  %v4523_v42 = vsub.f32 %v7780_v32, %v600_v61 }
  0xf8   : > { %975 = vadd.xlane.f32.xlu0 %v974_v37  ;;  %v811_v37 = vmul.f32 %v4449_v36, %v4449_v36  ;;  %7773 = vst [vmem:[#allocation23_spill] sm:$0xff] %v4492_v3  ;;  %v603_v31 = vmul.f32 0.0051020407, %v4301_v28 }
  0xf9   : > { %v4467_v16 = vpop.xlane.xlu2 %485  ;;  %7769 = vst [vmem:[#allocation21_spill] sm:$0xff] %v4481_v11  ;;  %v821_v47 = vmul.f32 %v4481_v11, %v4481_v11  ;;  %v4511_v0 = vsub.f32 %v7778_v18, %v598_v30  ;;  %v4526_v11 = vsub.f32 %v7782_v27, %v599_v20  ;;  %v7784_v18 = vld [vmem:[#allocation31_spill] sm:$0xff]  ;;  %v601_v27 = vmul.f32 0.0051020407, %v4310_v40 }
  0xfa   : > { %v4475_v8 = vpop.xlane.xlu1 %481  ;;  %v986_v9 = vadd.f32 %v985_v50, %v811_v37  ;;  %7775 = vst [vmem:[#allocation24_spill] sm:$0xff] %v4503_v54  ;;  %v817_v37 = vmul.f32 %v4492_v3, %v4492_v3  ;;  %v4529_v6 = vsub.f32 %v7784_v18, %v598_v30  ;;  %v602_v3 = vmul.f32 0.0051020407, %v4308_v45  ;;  %v7794_v54 = vld [vmem:[#allocation36_spill] sm:$0xff] }
  0xfb   : > { %v4477_v33 = vpop.xlane.xlu0 %477  ;;  %7779 = vst [vmem:[#allocation26_spill] sm:$0xff] %v4511_v0  ;;  %v1006_v59 = vadd.f32 %v1005_v56, %v821_v47  ;;  %v827_v28 = vmul.f32 %v4523_v42, %v4523_v42  ;;  %v1017_v45 = vsel %vm306_vm0, %v828_v53, 0.0  ;;  %v825_v47 = vmul.f32 %v4526_v11, %v4526_v11  ;;  %v7788_v56 = vld [vmem:[#allocation33_spill] sm:$0xff] }
  0xfc   : > { %7781 = vst [vmem:[#allocation27_spill] sm:$0xff] %v4523_v42 }
  0xfd   : > { %7783 = vst [vmem:[#allocation28_spill] sm:$0xff] %v4526_v11 }
  0xfe   : > { %995 = vadd.xlane.f32.xlu2 %v994_v23  ;;  %v4508_v23 = vsub.f32 %v7776_v51, %v599_v20  ;;  %v1002_v51 = vadd.f32 %v1001_v2, %v819_v60  ;;  %7785 = vst [vmem:[#allocation29_spill] sm:$0xff] %v4529_v6  ;;  %v7786_v20 = vld [vmem:[#allocation32_spill] sm:$0xff]  ;;  %v823_v60 = vmul.f32 %v4529_v6, %v4529_v6 }
  0xff   : > { %991 = vadd.xlane.f32.xlu1 %v990_v34  ;;  %v4543_v30 = vsub.f32 %v7786_v20, %v603_v31  ;;  %v4551_v2 = vsub.f32 %v7788_v56, %v602_v3  ;;  %v1018_v20 = vadd.f32 %v1017_v45, %v827_v28  ;;  %v4568_v56 = vsub.f32 %v7794_v54, %v602_v3 }
 0x100   : > { %987 = vadd.xlane.f32.xlu0 %v986_v9  ;;  %7777 = vst [vmem:[#allocation25_spill] sm:$0xff] %v4508_v23  ;;  %v997_v9 = vsel %vm306_vm0, %v818_v12, 0.0  ;;  %v826_v61 = vmul.f32 %v4508_v23, %v4508_v23  ;;  %v824_v12 = vmul.f32 %v4511_v0, %v4511_v0  ;;  %v605_v0 = vmul.f32 0.0051020407, %v4349_v26  ;;  %v7798_v26 = vld [vmem:[#allocation38_spill] sm:$0xff] }
 0x101   : > { %v4513_v34 = vpop.xlane.xlu2 %497  ;;  %v998_v36 = vadd.f32 %v997_v9, %v817_v37  ;;  %7787 = vst [vmem:[#allocation30_spill] sm:$0xff] %v4543_v30  ;;  %v7790_v9 = vld [vmem:[#allocation34_spill] sm:$0xff]  ;;  %v604_v28 = vmul.f32 0.0051020407, %v4351_v39 }
 0x102   : > { %v4517_v50 = vpop.xlane.xlu1 %493  ;;  %7789 = vst [vmem:[#allocation31_spill] sm:$0xff] %v4551_v2  ;;  %v1009_v37 = vsel %vm306_vm0, %v824_v12, 0.0  ;;  %v4558_v32 = vsub.f32 %v7790_v9, %v601_v27  ;;  %v7796_v12 = vld [vmem:[#allocation37_spill] sm:$0xff]  ;;  %v606_v9 = vmul.f32 0.0051020407, %v4341_v44  ;;  %v831_v44 = vmul.f32 %v4568_v56, %v4568_v56 }
 0x103   : > { %v4519_v24 = vpop.xlane.xlu0 %489  ;;  %7795 = vst [vmem:[#allocation34_spill] sm:$0xff] %v4568_v56  ;;  %v1010_v23 = vadd.f32 %v1009_v37, %v823_v60  ;;  %v4573_v11 = vsub.f32 %v7796_v12, %v601_v27  ;;  %v7808_v56 = vld [vmem:[#allocation43_spill] sm:$0xff] }
 0x104   : > { %7791 = vst [vmem:[#allocation32_spill] sm:$0xff] %v4558_v32  ;;  %v830_v3 = vmul.f32 %v4558_v32, %v4558_v32  ;;  %v4588_v45 = vsub.f32 %v7798_v26, %v606_v9  ;;  %v7804_v26 = vld [vmem:[#allocation41_spill] sm:$0xff]  ;;  %v4614_v32 = vsub.f32 %v7808_v56, %v604_v28 }
 0x106   : > { %1007 = vadd.xlane.f32.xlu2 %v1006_v59  ;;  %7799 = vst [vmem:[#allocation36_spill] sm:$0xff] %v4588_v45 }
 0x107   : > { %1003 = vadd.xlane.f32.xlu1 %v1002_v51  ;;  %v7792_v51 = vld [vmem:[#allocation35_spill] sm:$0xff]  ;;  %7809 = vst [vmem:[#allocation41_spill] sm:$0xff] %v4614_v32 }
 0x108   : > { %999 = vadd.xlane.f32.xlu0 %v998_v36  ;;  %v1013_v36 = vsel %vm306_vm0, %v826_v61, 0.0  ;;  %v4565_v18 = vsub.f32 %v7792_v51, %v603_v31  ;;  %v834_v61 = vmul.f32 %v4543_v30, %v4543_v30  ;;  %7797 = vst [vmem:[#allocation35_spill] sm:$0xff] %v4573_v11  ;;  %v832_v31 = vmul.f32 %v4551_v2, %v4551_v2  ;;  %v7806_v30 = vld [vmem:[#allocation42_spill] sm:$0xff] }
 0x109   : > { %v4553_v40 = vpop.xlane.xlu2 %509  ;;  %v1014_v42 = vadd.f32 %v1013_v36, %v825_v47  ;;  %v7800_v47 = vld [vmem:[#allocation39_spill] sm:$0xff] }
 0x10a   : > { %v4560_v59 = vpop.xlane.xlu1 %505  ;;  %7793 = vst [vmem:[#allocation33_spill] sm:$0xff] %v4565_v18  ;;  %v833_v54 = vmul.f32 %v4565_v18, %v4565_v18  ;;  %v1029_v27 = vsel %vm306_vm0, %v834_v61, 0.0  ;;  %v4591_v60 = vsub.f32 %v7800_v47, %v605_v0  ;;  %v1025_v36 = vsel %vm306_vm0, %v832_v31, 0.0 }
 0x10b   : > { %v4562_v53 = vpop.xlane.xlu0 %501  ;;  %v1021_v61 = vsel %vm306_vm0, %v830_v3, 0.0  ;;  %v4607_v47 = vsub.f32 %v7804_v26, %v606_v9  ;;  %v4610_v18 = vsub.f32 %v7806_v30, %v605_v0  ;;  %v609_v31 = vmul.f32 0.0051020407, %v4379_v43  ;;  %v7810_v43 = vld [vmem:[#allocation44_spill] sm:$0xff] }
 0x10c   : > { %7801 = vst [vmem:[#allocation37_spill] sm:$0xff] %v4591_v60  ;;  %v1030_v12 = vadd.f32 %v1029_v27, %v833_v54  ;;  %v1026_v2 = vadd.f32 %v1025_v36, %v831_v44  ;;  %v838_v3 = vmul.f32 %v4591_v60, %v4591_v60  ;;  %v608_v54 = vmul.f32 0.0051020407, %v4391_v62  ;;  %v7818_v60 = vld [vmem:[#allocation48_spill] sm:$0xff] }
 0x10d   : > { %7805 = vst [vmem:[#allocation39_spill] sm:$0xff] %v4607_v47  ;;  %v607_v9 = vmul.f32 0.0051020407, %v4393_v41  ;;  %v4625_v30 = vsub.f32 %v7810_v43, %v609_v31  ;;  %v839_v56 = vmul.f32 %v4607_v47, %v4607_v47  ;;  %v835_v44 = vmul.f32 %v4614_v32, %v4614_v32  ;;  %v7816_v43 = vld [vmem:[#allocation47_spill] sm:$0xff] }
 0x10e   : > { %1019 = vadd.xlane.f32.xlu2 %v1018_v20  ;;  %v1037_v41 = vsel %vm306_vm0, %v838_v3, 0.0  ;;  %v611_v32 = vmul.f32 0.0051020407, %v4432_v55 }
 0x10f   : > { %1015 = vadd.xlane.f32.xlu1 %v1014_v42  ;;  %v7802_v42 = vld [vmem:[#allocation40_spill] sm:$0xff]  ;;  %7811 = vst [vmem:[#allocation42_spill] sm:$0xff] %v4625_v30 }
 0x110   : > { %1011 = vadd.xlane.f32.xlu0 %v1010_v23  ;;  %v829_v23 = vmul.f32 %v4573_v11, %v4573_v11  ;;  %v4599_v37 = vsub.f32 %v7802_v42, %v604_v28  ;;  %7807 = vst [vmem:[#allocation40_spill] sm:$0xff] %v4610_v18  ;;  %v840_v11 = vmul.f32 %v4588_v45, %v4588_v45 }
 0x111   : > { %v4593_v39 = vpop.xlane.xlu2 %521  ;;  %v837_v28 = vmul.f32 %v4610_v18, %v4610_v18  ;;  %v4649_v45 = vsub.f32 %v7816_v43, %v609_v31  ;;  %v4655_v18 = vsub.f32 %v7818_v60, %v608_v54 }
 0x112   : > { %7803 = vst [vmem:[#allocation38_spill] sm:$0xff] %v4599_v37  ;;  %v4601_v51 = vpop.xlane.xlu1 %517  ;;  %v1022_v42 = vadd.f32 %v1021_v61, %v829_v23  ;;  %v836_v0 = vmul.f32 %v4599_v37, %v4599_v37  ;;  %v1041_v62 = vsel %vm306_vm0, %v840_v11, 0.0  ;;  %v7814_v23 = vld [vmem:[#allocation46_spill] sm:$0xff]  ;;  %v612_v11 = vmul.f32 0.0051020407, %v4423_v57 }
 0x113   : > { %v4603_v20 = vpop.xlane.xlu0 %513  ;;  %v4641_v61 = vsub.f32 %v7814_v23, %v607_v9  ;;  %v1042_v3 = vadd.f32 %v1041_v62, %v839_v56  ;;  %v1038_v47 = vadd.f32 %v1037_v41, %v837_v28  ;;  %7819 = vst [vmem:[#allocation46_spill] sm:$0xff] %v4655_v18  ;;  %v7820_v23 = vld [vmem:[#allocation49_spill] sm:$0xff]  ;;  %v845_v60 = vmul.f32 %v4649_v45, %v4649_v45  ;;  %v7824_v56 = vld [vmem:[#allocation51_spill] sm:$0xff] }
 0x114   : > { %v4658_v37 = vsub.f32 %v7820_v23, %v607_v9  ;;  %v4673_v28 = vsub.f32 %v7824_v56, %v611_v32  ;;  %v843_v62 = vmul.f32 %v4655_v18, %v4655_v18  ;;  %v7830_v56 = vld [vmem:[#allocation54_spill] sm:$0xff]  ;;  %v7832_v18 = vld [vmem:[#allocation55_spill] sm:$0xff] }
 0x115   : > { %7815 = vst [vmem:[#allocation44_spill] sm:$0xff] %v4641_v61  ;;  %v842_v31 = vmul.f32 %v4641_v61, %v4641_v61 }
 0x116   : > { %1031 = vadd.xlane.f32.xlu2 %v1030_v12  ;;  %7821 = vst [vmem:[#allocation47_spill] sm:$0xff] %v4658_v37 }
 0x117   : > { %1027 = vadd.xlane.f32.xlu1 %v1026_v2  ;;  %v7812_v2 = vld [vmem:[#allocation45_spill] sm:$0xff]  ;;  %7825 = vst [vmem:[#allocation49_spill] sm:$0xff] %v4673_v28 }
 0x118   : > { %1023 = vadd.xlane.f32.xlu0 %v1022_v42  ;;  %v4638_v36 = vsub.f32 %v7812_v2, %v608_v54  ;;  %v1033_v42 = vsel %vm306_vm0, %v836_v0, 0.0  ;;  %7817 = vst [vmem:[#allocation45_spill] sm:$0xff] %v4649_v45  ;;  %v846_v2 = vmul.f32 %v4625_v30, %v4625_v30  ;;  %v610_v0 = vmul.f32 0.0051020407, %v4434_v25  ;;  %v7822_v54 = vld [vmem:[#allocation50_spill] sm:$0xff] }
 0x119   : > { %v4631_v27 = vpop.xlane.xlu2 %533  ;;  %v1034_v6 = vadd.f32 %v1033_v42, %v835_v44  ;;  %v4669_v9 = vsub.f32 %v7822_v54, %v612_v11  ;;  %v4694_v30 = vsub.f32 %v7830_v56, %v611_v32  ;;  %v615_v45 = vmul.f32 0.0051020407, %v4467_v16  ;;  %v7834_v32 = vld [vmem:[#allocation56_spill] sm:$0xff] }
 0x11a   : > { %7813 = vst [vmem:[#allocation43_spill] sm:$0xff] %v4638_v36  ;;  %v4643_v12 = vpop.xlane.xlu1 %529  ;;  %v844_v57 = vmul.f32 %v4638_v36, %v4638_v36  ;;  %v1053_v55 = vsel %vm306_vm0, %v846_v2, 0.0  ;;  %v7828_v2 = vld [vmem:[#allocation53_spill] sm:$0xff]  ;;  %v4701_v61 = vsub.f32 %v7832_v18, %v610_v0 }
 0x11b   : > { %v4645_v26 = vpop.xlane.xlu0 %525  ;;  %7823 = vst [vmem:[#allocation48_spill] sm:$0xff] %v4669_v9  ;;  %v4691_v23 = vsub.f32 %v7828_v2, %v612_v11  ;;  %v1054_v54 = vadd.f32 %v1053_v55, %v845_v60  ;;  %v852_v36 = vmul.f32 %v4669_v9, %v4669_v9  ;;  %v850_v11 = vmul.f32 %v4673_v28, %v4673_v28  ;;  %v3509_v2 = vld [vmem:[%s3632_s15 + $0x2a8] sm:$0xff] }
 0x11c   : > { %v1049_v43 = vsel %vm306_vm0, %v844_v57, 0.0  ;;  %7833 = vst [vmem:[#allocation53_spill] sm:$0xff] %v4701_v61  ;;  %v613_v60 = vmul.f32 0.0051020407, %v4477_v33  ;;  %v4711_v18 = vsub.f32 %v7834_v32, %v615_v45  ;;  %v849_v33 = vmul.f32 %v4694_v30, %v4694_v30 }
 0x11d   : > { %7829 = vst [vmem:[#allocation51_spill] sm:$0xff] %v4691_v23  ;;  %v1050_v57 = vadd.f32 %v1049_v43, %v843_v62  ;;  %v1065_v62 = vsel %vm306_vm0, %v852_v36, 0.0  ;;  %v1061_v43 = vsel %vm306_vm0, %v850_v11, 0.0 }
 0x11e   : > { %1043 = vadd.xlane.f32.xlu2 %v1042_v3  ;;  %v1045_v3 = vsel %vm306_vm0, %v842_v31, 0.0  ;;  %7835 = vst [vmem:[#allocation54_spill] sm:$0xff] %v4711_v18  ;;  %v1062_v28 = vadd.f32 %v1061_v43, %v849_v33  ;;  %v3514_v43 = vld [vmem:[%s3632_s15 + $0x2e8] sm:$0xff] }
 0x11f   : > { %1039 = vadd.xlane.f32.xlu1 %v1038_v47  ;;  %v841_v47 = vmul.f32 %v4658_v37, %v4658_v37 }
 0x120   : > { %1035 = vadd.xlane.f32.xlu0 %v1034_v6  ;;  %v7826_v6 = vld [vmem:[#allocation52_spill] sm:$0xff] }
 0x121   : > { %v4675_v25 = vpop.xlane.xlu2 %545  ;;  %v4682_v41 = vsub.f32 %v7826_v6, %v610_v0  ;;  %7831 = vst [vmem:[#allocation52_spill] sm:$0xff] %v4694_v30  ;;  %v614_v6 = vmul.f32 0.0051020407, %v4475_v8  ;;  %v1046_v31 = vadd.f32 %v1045_v3, %v841_v47  ;;  %v851_v8 = vmul.f32 %v4691_v23, %v4691_v23  ;;  %v7836_v0 = vld [vmem:[#allocation57_spill] sm:$0xff] }
 0x122   : > { %v4684_v44 = vpop.xlane.xlu1 %541  ;;  %v847_v3 = vmul.f32 %v4701_v61, %v4701_v61  ;;  %v618_v23 = vmul.f32 0.0051020407, %v4513_v34 }
 0x123   : > { %7827 = vst [vmem:[#allocation50_spill] sm:$0xff] %v4682_v41  ;;  %v4686_v42 = vpop.xlane.xlu0 %537  ;;  %v848_v16 = vmul.f32 %v4682_v41, %v4682_v41  ;;  %v4714_v55 = vsub.f32 %v7836_v0, %v614_v6  ;;  %v3511_v0 = vld [vmem:[%s3632_s15 + $0x2b0] sm:$0xff]  ;;  %v1066_v11 = vadd.f32 %v1065_v62, %v851_v8  ;;  %v3512_v41 = vld [vmem:[%s3632_s15 + $0x2a0] sm:$0xff] }
 0x124   : > { %v4736_v9 = vsub.f32 %v3511_v0, %v614_v6  ;;  %v616_v6 = vmul.f32 0.0051020407, %v4519_v24 }
 0x125   : > { %7837 = vst [vmem:[#allocation55_spill] sm:$0xff] %v4714_v55  ;;  %v1057_v36 = vsel %vm306_vm0, %v848_v16, 0.0  ;;  %v856_v30 = vmul.f32 %v4714_v55, %v4714_v55  ;;  %v4744_v16 = vsub.f32 %v3512_v41, %v613_v60  ;;  %v3518_v55 = vld [vmem:[%s3632_s15 + $0x2d0] sm:$0xff] }
 0x126   : > { %1055 = vadd.xlane.f32.xlu2 %v1054_v54  ;;  %v4725_v54 = vsub.f32 %v3509_v2, %v613_v60  ;;  %7840 = vst [vmem:[#allocation90_spill] sm:$0xff] %v4736_v9  ;;  %v858_v2 = vmul.f32 %v4711_v18, %v4711_v18  ;;  %v1058_v8 = vadd.f32 %v1057_v36, %v847_v3  ;;  %v3513_v60 = vld [vmem:[%s3632_s15 + $0x2f8] sm:$0xff] }
 0x127   : > { %1051 = vadd.xlane.f32.xlu1 %v1050_v57  ;;  %7841 = vst [vmem:[#allocation91_spill] sm:$0xff] %v4744_v16  ;;  %v855_v41 = vmul.f32 %v4736_v9, %v4736_v9  ;;  %v4755_v33 = vsub.f32 %v3513_v60, %v618_v23  ;;  %v1073_v24 = vsel %vm306_vm0, %v856_v30, 0.0  ;;  %v853_v0 = vmul.f32 %v4744_v16, %v4744_v16  ;;  %v3516_v60 = vld [vmem:[%s3632_s15 + $0x2f0] sm:$0xff] }
 0x128   : > { %1047 = vadd.xlane.f32.xlu0 %v1046_v31  ;;  %7838 = vst [vmem:[#allocation56_spill] sm:$0xff] %v4725_v54  ;;  %v3510_v31 = vld [vmem:[%s3632_s15 + $0x2c0] sm:$0xff]  ;;  %v854_v34 = vmul.f32 %v4725_v54, %v4725_v54  ;;  %v4775_v30 = vsub.f32 %v3516_v60, %v618_v23  ;;  %v4781_v9 = vsub.f32 %v3518_v55, %v616_v6  ;;  %v621_v54 = vmul.f32 0.0051020407, %v4553_v40  ;;  %v3519_v55 = vld [vmem:[%s3632_s15 + $0x328] sm:$0xff] }
 0x129   : > { %v4719_v47 = vpop.xlane.xlu2 %557  ;;  %v4733_v32 = vsub.f32 %v3510_v31, %v615_v45  ;;  %v617_v45 = vmul.f32 0.0051020407, %v4517_v50  ;;  %7842 = vst [vmem:[#allocation92_spill] sm:$0xff] %v4755_v33  ;;  %v1077_v50 = vsel %vm306_vm0, %v858_v2, 0.0  ;;  %v864_v16 = vmul.f32 %v4755_v33, %v4755_v33 }
 0x12a   : > { %v4727_v56 = vpop.xlane.xlu1 %553  ;;  %v1069_v2 = vsel %vm306_vm0, %v854_v34, 0.0  ;;  %7845 = vst [vmem:[#allocation95_spill] sm:$0xff] %v4775_v30  ;;  %v620_v34 = vmul.f32 0.0051020407, %v4560_v59  ;;  %v863_v40 = vmul.f32 %v4775_v30, %v4775_v30 }
 0x12b   : > { %v4729_v57 = vpop.xlane.xlu0 %549  ;;  %7839 = vst [vmem:[#allocation57_spill] sm:$0xff] %v4733_v32  ;;  %v857_v62 = vmul.f32 %v4733_v32, %v4733_v32  ;;  %v4760_v3 = vsub.f32 %v3514_v43, %v617_v45  ;;  %v1074_v43 = vadd.f32 %v1073_v24, %v855_v41  ;;  %v3517_v32 = vld [vmem:[%s3632_s15 + $0x2e0] sm:$0xff]  ;;  %v1070_v61 = vadd.f32 %v1069_v2, %v853_v0  ;;  %v3521_v0 = vld [vmem:[%s3632_s15 + $0x308] sm:$0xff] }
 0x12c   : > { %7847 = vst [vmem:[#allocation97_spill] sm:$0xff] %v4781_v9  ;;  %v1089_v59 = vsel %vm306_vm0, %v864_v16, 0.0  ;;  %v859_v41 = vmul.f32 %v4781_v9, %v4781_v9  ;;  %v623_v9 = vmul.f32 0.0051020407, %v4601_v51 }
 0x12d   : > { %7843 = vst [vmem:[#allocation93_spill] sm:$0xff] %v4760_v3  ;;  %v1078_v18 = vadd.f32 %v1077_v50, %v857_v62  ;;  %v862_v23 = vmul.f32 %v4760_v3, %v4760_v3  ;;  %v1090_v33 = vadd.f32 %v1089_v59, %v863_v40  ;;  %v3525_v59 = vld [vmem:[%s3632_s15 + $0x358] sm:$0xff] }
 0x12e   : > { %1067 = vadd.xlane.f32.xlu2 %v1066_v11 }
 0x12f   : > { %1063 = vadd.xlane.f32.xlu1 %v1062_v28  ;;  %v3515_v28 = vld [vmem:[%s3632_s15 + $0x2d8] sm:$0xff]  ;;  %v1085_v50 = vsel %vm306_vm0, %v862_v23, 0.0 }
 0x130   : > { %1059 = vadd.xlane.f32.xlu0 %v1058_v8  ;;  %v4763_v36 = vsub.f32 %v3515_v28, %v616_v6  ;;  %v4778_v28 = vsub.f32 %v3517_v32, %v617_v45  ;;  %v619_v32 = vmul.f32 0.0051020407, %v4562_v53  ;;  %v4795_v45 = vsub.f32 %v3519_v55, %v621_v54  ;;  %v3520_v53 = vld [vmem:[%s3632_s15 + $0x318] sm:$0xff] }
 0x131   : > { %v4765_v31 = vpop.xlane.xlu2 %569 }
 0x132   : > { %7844 = vst [vmem:[#allocation94_spill] sm:$0xff] %v4763_v36  ;;  %v4769_v11 = vpop.xlane.xlu1 %565  ;;  %v860_v62 = vmul.f32 %v4763_v36, %v4763_v36  ;;  %v861_v6 = vmul.f32 %v4778_v28, %v4778_v28  ;;  %v4810_v2 = vsub.f32 %v3521_v0, %v619_v32  ;;  %v870_v23 = vmul.f32 %v4795_v45, %v4795_v45 }
 0x133   : > { %v4771_v8 = vpop.xlane.xlu0 %561  ;;  %7846 = vst [vmem:[#allocation96_spill] sm:$0xff] %v4778_v28  ;;  %v624_v36 = vmul.f32 0.0051020407, %v4593_v39 }
 0x134   : > { %7848 = vst [vmem:[#allocation98_spill] sm:$0xff] %v4795_v45  ;;  %v1081_v24 = vsel %vm306_vm0, %v860_v62, 0.0  ;;  %v1086_v3 = vadd.f32 %v1085_v50, %v861_v6  ;;  %v3524_v62 = vld [vmem:[%s3632_s15 + $0x300] sm:$0xff]  ;;  %v866_v40 = vmul.f32 %v4810_v2, %v4810_v2  ;;  %v1101_v39 = vsel %vm306_vm0, %v870_v23, 0.0  ;;  %v3527_v50 = vld [vmem:[%s3632_s15 + $0x338] sm:$0xff] }
 0x135   : > { %7850 = vst [vmem:[#allocation100_spill] sm:$0xff] %v4810_v2  ;;  %v1082_v28 = vadd.f32 %v1081_v24, %v859_v41  ;;  %v4825_v0 = vsub.f32 %v3524_v62, %v619_v32  ;;  %v4840_v6 = vsub.f32 %v3525_v59, %v624_v36  ;;  %v3528_v59 = vld [vmem:[%s3632_s15 + $0x350] sm:$0xff]  ;;  %v3529_v45 = vld [vmem:[%s3632_s15 + $0x340] sm:$0xff] }
 0x136   : > { %1079 = vadd.xlane.f32.xlu2 %v1078_v18  ;;  %v4803_v18 = vsub.f32 %v3520_v53, %v620_v34  ;;  %v3523_v53 = vld [vmem:[%s3632_s15 + $0x310] sm:$0xff]  ;;  %v1093_v23 = vsel %vm306_vm0, %v866_v40, 0.0 }
 0x137   : > { %1075 = vadd.xlane.f32.xlu1 %v1074_v43  ;;  %v3522_v43 = vld [vmem:[%s3632_s15 + $0x320] sm:$0xff]  ;;  %v4820_v30 = vsub.f32 %v3523_v53, %v620_v34  ;;  %7853 = vst [vmem:[#allocation103_spill] sm:$0xff] %v4825_v0  ;;  %v622_v34 = vmul.f32 0.0051020407, %v4603_v20  ;;  %v3526_v20 = vld [vmem:[%s3632_s15 + $0x348] sm:$0xff] }
 0x138   : > { %1071 = vadd.xlane.f32.xlu0 %v1070_v61  ;;  %7849 = vst [vmem:[#allocation99_spill] sm:$0xff] %v4803_v18  ;;  %v4817_v55 = vsub.f32 %v3522_v43, %v621_v54  ;;  %v868_v54 = vmul.f32 %v4803_v18, %v4803_v18 }
 0x139   : > { %v4805_v61 = vpop.xlane.xlu2 %911  ;;  %7852 = vst [vmem:[#allocation102_spill] sm:$0xff] %v4820_v30  ;;  %v867_v51 = vmul.f32 %v4820_v30, %v4820_v30  ;;  %v4851_v24 = vsub.f32 %v3527_v50, %v622_v34  ;;  %v3530_v30 = vld [vmem:[%s3632_s15 + $0x330] sm:$0xff] }
 0x13a   : > { %v4812_v16 = vpop.xlane.xlu1 %907  ;;  %7851 = vst [vmem:[#allocation101_spill] sm:$0xff] %v4817_v55  ;;  %v869_v32 = vmul.f32 %v4817_v55, %v4817_v55  ;;  %v4862_v55 = vsub.f32 %v3529_v45, %v623_v9  ;;  %v4866_v50 = vsub.f32 %v3530_v30, %v622_v34  ;;  %v3531_v30 = vld [vmem:[%s3632_s15 + $0x388] sm:$0xff] }
 0x13b   : > { %v4814_v60 = vpop.xlane.xlu0 %903  ;;  %7854 = vst [vmem:[#allocation104_spill] sm:$0xff] %v4840_v6 }
 0x13c   : > { %7856 = vst [vmem:[#allocation106_spill] sm:$0xff] %v4851_v24  ;;  %v1102_v62 = vadd.f32 %v1101_v39, %v869_v32  ;;  %v873_v32 = vmul.f32 %v4862_v55, %v4862_v55 }
 0x13d   : > { %7858 = vst [vmem:[#allocation108_spill] sm:$0xff] %v4862_v55  ;;  %v3536_v55 = vld [vmem:[%s3632_s15 + $0x360] sm:$0xff] }
 0x13e   : > { %1091 = vadd.xlane.f32.xlu2 %v1090_v33  ;;  %v4843_v33 = vsub.f32 %v3526_v20, %v623_v9  ;;  %v4859_v20 = vsub.f32 %v3528_v59, %v624_v36  ;;  %7859 = vst [vmem:[#allocation109_spill] sm:$0xff] %v4866_v50  ;;  %v626_v36 = vmul.f32 0.0051020407, %v4643_v12  ;;  %v625_v9 = vmul.f32 0.0051020407, %v4645_v26 }
 0x13f   : > { %1087 = vadd.xlane.f32.xlu1 %v1086_v3  ;;  %v1097_v3 = vsel %vm306_vm0, %v868_v54, 0.0  ;;  %v627_v54 = vmul.f32 0.0051020407, %v4631_v27  ;;  %v872_v27 = vmul.f32 %v4851_v24, %v4851_v24 }
 0x140   : > { %1083 = vadd.xlane.f32.xlu0 %v1082_v28  ;;  %7855 = vst [vmem:[#allocation105_spill] sm:$0xff] %v4843_v33  ;;  %v865_v28 = vmul.f32 %v4825_v0, %v4825_v0  ;;  %v1098_v18 = vadd.f32 %v1097_v3, %v867_v51  ;;  %v876_v0 = vmul.f32 %v4840_v6, %v4840_v6  ;;  %v3533_v3 = vld [vmem:[%s3632_s15 + $0x368] sm:$0xff] }
 0x141   : > { %v4845_v41 = vpop.xlane.xlu2 %923  ;;  %7857 = vst [vmem:[#allocation107_spill] sm:$0xff] %v4859_v20  ;;  %v874_v40 = vmul.f32 %v4843_v33, %v4843_v33  ;;  %v4877_v45 = vsub.f32 %v3531_v30, %v627_v54  ;;  %v875_v34 = vmul.f32 %v4859_v20, %v4859_v20  ;;  %v1105_v59 = vsel %vm306_vm0, %v872_v27, 0.0  ;;  %v3535_v33 = vld [vmem:[%s3632_s15 + $0x370] sm:$0xff] }
 0x142   : > { %v4853_v43 = vpop.xlane.xlu1 %919  ;;  %v1094_v2 = vadd.f32 %v1093_v23, %v865_v28  ;;  %v1113_v26 = vsel %vm306_vm0, %v876_v0, 0.0  ;;  %v4893_v28 = vsub.f32 %v3533_v3, %v625_v9  ;;  %v3534_v0 = vld [vmem:[%s3632_s15 + $0x380] sm:$0xff]  ;;  %v4907_v3 = vsub.f32 %v3535_v33, %v626_v36  ;;  %v3537_v33 = vld [vmem:[%s3632_s15 + $0x3b8] sm:$0xff] }
 0x143   : > { %v4855_v53 = vpop.xlane.xlu0 %915  ;;  %7860 = vst [vmem:[#allocation110_spill] sm:$0xff] %v4877_v45  ;;  %v1109_v39 = vsel %vm306_vm0, %v874_v40, 0.0  ;;  %v4901_v30 = vsub.f32 %v3534_v0, %v627_v54  ;;  %v630_v40 = vmul.f32 0.0051020407, %v4675_v25  ;;  %v1114_v6 = vadd.f32 %v1113_v26, %v875_v34 }
 0x144   : > { %7862 = vst [vmem:[#allocation112_spill] sm:$0xff] %v4893_v28  ;;  %v1110_v20 = vadd.f32 %v1109_v39, %v873_v32  ;;  %v4910_v24 = vsub.f32 %v3536_v55, %v625_v9  ;;  %v629_v27 = vmul.f32 0.0051020407, %v4684_v44  ;;  %v628_v54 = vmul.f32 0.0051020407, %v4686_v42  ;;  %v3538_v42 = vld [vmem:[%s3632_s15 + $0x3a8] sm:$0xff] }
 0x145   : > { %7863 = vst [vmem:[#allocation113_spill] sm:$0xff] %v4901_v30  ;;  %v878_v34 = vmul.f32 %v4893_v28, %v4893_v28  ;;  %v881_v55 = vmul.f32 %v4901_v30, %v4901_v30  ;;  %v879_v32 = vmul.f32 %v4907_v3, %v4907_v3  ;;  %v3542_v28 = vld [vmem:[%s3632_s15 + $0x390] sm:$0xff] }
 0x146   : > { %1103 = vadd.xlane.f32.xlu2 %v1102_v62  ;;  %7864 = vst [vmem:[#allocation114_spill] sm:$0xff] %v4907_v3 }
 0x147   : > { %1099 = vadd.xlane.f32.xlu1 %v1098_v18  ;;  %v871_v18 = vmul.f32 %v4866_v50, %v4866_v50  ;;  %7865 = vst [vmem:[#allocation115_spill] sm:$0xff] %v4910_v24  ;;  %v1117_v0 = vsel %vm306_vm0, %v878_v34, 0.0 }
 0x148   : > { %1095 = vadd.xlane.f32.xlu0 %v1094_v2  ;;  %v3532_v2 = vld [vmem:[%s3632_s15 + $0x378] sm:$0xff] }
 0x149   : > { %v4883_v12 = vpop.xlane.xlu2 %935  ;;  %v4890_v51 = vsub.f32 %v3532_v2, %v626_v36  ;;  %v882_v2 = vmul.f32 %v4877_v45, %v4877_v45  ;;  %v1106_v50 = vadd.f32 %v1105_v59, %v871_v18  ;;  %v4921_v36 = vsub.f32 %v3537_v33, %v630_v40  ;;  %v3541_v45 = vld [vmem:[%s3632_s15 + $0x3a0] sm:$0xff] }
 0x14a   : > { %v4895_v23 = vpop.xlane.xlu1 %931  ;;  %v4946_v30 = vsub.f32 %v3541_v45, %v629_v27  ;;  %v3543_v45 = vld [vmem:[%s3632_s15 + $0x3e8] sm:$0xff] }
 0x14b   : > { %7861 = vst [vmem:[#allocation111_spill] sm:$0xff] %v4890_v51  ;;  %v4897_v62 = vpop.xlane.xlu0 %927  ;;  %v880_v25 = vmul.f32 %v4890_v51, %v4890_v51  ;;  %v1125_v44 = vsel %vm306_vm0, %v882_v2, 0.0  ;;  %v3540_v2 = vld [vmem:[%s3632_s15 + $0x3b0] sm:$0xff]  ;;  %v633_v51 = vmul.f32 0.0051020407, %v4719_v47  ;;  %v888_v3 = vmul.f32 %v4921_v36, %v4921_v36 }
 0x14c   : > { %7866 = vst [vmem:[#allocation116_spill] sm:$0xff] %v4921_v36  ;;  %v4943_v33 = vsub.f32 %v3540_v2, %v630_v40 }
 0x14d   : > { %v1121_v59 = vsel %vm306_vm0, %v880_v25, 0.0  ;;  %7870 = vst [vmem:[#allocation120_spill] sm:$0xff] %v4946_v30  ;;  %v4953_v25 = vsub.f32 %v3542_v28, %v628_v54  ;;  %v4963_v28 = vsub.f32 %v3543_v45, %v633_v51  ;;  %v3546_v45 = vld [vmem:[%s3632_s15 + $0x3e0] sm:$0xff] }
 0x14e   : > { %1115 = vadd.xlane.f32.xlu2 %v1114_v6  ;;  %v4925_v6 = vsub.f32 %v3538_v42, %v629_v27  ;;  %7869 = vst [vmem:[#allocation119_spill] sm:$0xff] %v4943_v33  ;;  %v1126_v42 = vadd.f32 %v1125_v44, %v881_v55  ;;  %v1122_v34 = vadd.f32 %v1121_v59, %v879_v32  ;;  %v631_v55 = vmul.f32 0.0051020407, %v4729_v57  ;;  %v3544_v27 = vld [vmem:[%s3632_s15 + $0x3d8] sm:$0xff] }
 0x14f   : > { %1111 = vadd.xlane.f32.xlu1 %v1110_v20  ;;  %v877_v20 = vmul.f32 %v4910_v24, %v4910_v24  ;;  %7871 = vst [vmem:[#allocation121_spill] sm:$0xff] %v4953_v25  ;;  %v1137_v57 = vsel %vm306_vm0, %v888_v3, 0.0  ;;  %v885_v44 = vmul.f32 %v4946_v30, %v4946_v30  ;;  %v1165_v32 = vmul.f32 0.0051020407, %v4814_v60  ;;  %v3547_v60 = vld [vmem:[%s3632_s15 + $0x3d0] sm:$0xff] }
 0x150   : > { %1107 = vadd.xlane.f32.xlu0 %v1106_v50  ;;  %7867 = vst [vmem:[#allocation117_spill] sm:$0xff] %v4925_v6  ;;  %v3539_v50 = vld [vmem:[%s3632_s15 + $0x398] sm:$0xff]  ;;  %v886_v40 = vmul.f32 %v4925_v6, %v4925_v6  ;;  %v883_v59 = vmul.f32 %v4953_v25, %v4953_v25 }
 0x151   : > { %v4927_v9 = vpop.xlane.xlu2 %947  ;;  %v4934_v26 = vsub.f32 %v3539_v50, %v628_v54  ;;  %v632_v50 = vmul.f32 0.0051020407, %v4727_v56  ;;  %v1118_v24 = vadd.f32 %v1117_v0, %v877_v20  ;;  %v887_v56 = vmul.f32 %v4943_v33, %v4943_v33  ;;  %7872 = vst [vmem:[#allocation122_spill] sm:$0xff] %v4963_v28  ;;  %v3545_v0 = vld [vmem:[%s3632_s15 + $0x3c8] sm:$0xff] }
 0x152   : > { %v4936_v39 = vpop.xlane.xlu1 %943  ;;  %v4978_v2 = vsub.f32 %v3545_v0, %v631_v55  ;;  %v1167_v33 = vmul.f32 0.0051020407, %v4805_v61  ;;  %v894_v0 = vmul.f32 %v4963_v28, %v4963_v28  ;;  %v634_v61 = vmul.f32 0.0051020407, %v4771_v8  ;;  %v3552_v28 = vld [vmem:[%s3632_s15 + $0x410] sm:$0xff] }
 0x153   : > { %7868 = vst [vmem:[#allocation118_spill] sm:$0xff] %v4934_v26  ;;  %v4938_v18 = vpop.xlane.xlu0 %939  ;;  %v884_v47 = vmul.f32 %v4934_v26, %v4934_v26  ;;  %v4966_v54 = vsub.f32 %v3544_v27, %v632_v50  ;;  %v4986_v27 = vsub.f32 %v3546_v45, %v633_v51  ;;  %v4989_v36 = vsub.f32 %v3547_v60, %v632_v50  ;;  %v3548_v26 = vld [vmem:[%s3632_s15 + $0x3c0] sm:$0xff]  ;;  %v3551_v45 = vld [vmem:[%s3632_s15 + $0x3f8] sm:$0xff] }
 0x154   : > { %7874 = vst [vmem:[#allocation124_spill] sm:$0xff] %v4978_v2  ;;  %v4997_v25 = vsub.f32 %v3548_v26, %v631_v55  ;;  %v636_v51 = vmul.f32 0.0051020407, %v4765_v31  ;;  %v5011_v55 = vadd.f32 1e-05, %v1167_v33  ;;  %v3550_v33 = vld [vmem:[%s3632_s15 + $0x408] sm:$0xff] }
 0x155   : > { %7873 = vst [vmem:[#allocation123_spill] sm:$0xff] %v4966_v54  ;;  %v1129_v3 = vsel %vm306_vm0, %v884_v47, 0.0  ;;  %v892_v30 = vmul.f32 %v4966_v54, %v4966_v54  ;;  %v5000_v47 = vadd.f32 1e-05, %v1165_v32  ;;  %v893_v31 = vmul.f32 %v4986_v27, %v4986_v27  ;;  %v3553_v54 = vld [vmem:[%s3632_s15 + $0x400] sm:$0xff] }
 0x156   : > { %1127 = vadd.xlane.f32.xlu2 %v1126_v42  ;;  %7875 = vst [vmem:[#allocation125_spill] sm:$0xff] %v4986_v27  ;;  %v1130_v50 = vadd.f32 %v1129_v3, %v883_v59  ;;  %v891_v26 = vmul.f32 %v4989_v36, %v4989_v36  ;;  %v889_v59 = vmul.f32 %v4997_v25, %v4997_v25  ;;  %vm1323_vm3 = vweird.f32 %v5011_v55 }
 0x157   : > { %1123 = vadd.xlane.f32.xlu1 %v1122_v34  ;;  %7876 = vst [vmem:[#allocation126_spill] sm:$0xff] %v4989_v36  ;;  %v1145_v8 = vsel %vm306_vm0, %v892_v30, 0.0  ;;  %3377 = vrsqrt.f32 %v5000_v47  ;;  %v5028_v30 = vsub.f32 %v3551_v45, %v634_v61  ;;  %v5038_v27 = vsub.f32 %v3552_v28, %v636_v51 }
 0x158   : > { %1119 = vadd.xlane.f32.xlu0 %v1118_v24  ;;  %v1133_v24 = vsel %vm306_vm0, %v886_v40, 0.0  ;;  %v1138_v40 = vadd.f32 %v1137_v57, %v887_v56  ;;  %7877 = vst [vmem:[#allocation127_spill] sm:$0xff] %v4997_v25  ;;  %v635_v56 = vmul.f32 0.0051020407, %v4769_v11  ;;  %v1166_v57 = vmul.f32 0.0051020407, %v4812_v16 }
 0x159   : > { %v4972_v20 = vpop.xlane.xlu2 %959  ;;  %v1134_v6 = vadd.f32 %v1133_v24, %v885_v44  ;;  %v890_v44 = vmul.f32 %v4978_v2, %v4978_v2  ;;  %v1149_v11 = vsel %vm306_vm0, %v894_v0, 0.0  ;;  %v3549_v16 = vld [vmem:[%s3632_s15 + $0x418] sm:$0xff]  ;;  %7880 = vst [vmem:[#allocation130_spill] sm:$0xff] %v5028_v30  ;;  %3379 = vrsqrt.f32 %v5011_v55 }
 0x15a   : > { %v4980_v42 = vpop.xlane.xlu1 %955  ;;  %v5016_v32 = vsub.f32 %v3549_v16, %v636_v51  ;;  %v5025_v3 = vsub.f32 %v3550_v33, %v635_v56  ;;  %v5030_v60 = vadd.f32 1e-05, %v1166_v57  ;;  %v1146_v16 = vadd.f32 %v1145_v8, %v891_v26  ;;  %7881 = vst [vmem:[#allocation131_spill] sm:$0xff] %v5038_v27  ;;  %v3554_v57 = vld [vmem:[%s3632_s15 + $0x3f0] sm:$0xff] }
 0x15b   : > { %v4982_v34 = vpop.xlane.xlu0 %951  ;;  %v5041_v36 = vsub.f32 %v3553_v54, %v635_v56  ;;  %v1168_v33 = vmul.f32 0.0051020407, %v4855_v53  ;;  %v5046_v45 = vsub.f32 %v3554_v57, %v634_v61  ;;  %v1169_v28 = vmul.f32 0.0051020407, %v4853_v43 }
 0x15c   : > { %7878 = vst [vmem:[#allocation128_spill] sm:$0xff] %v5016_v32  ;;  %3381 = vrsqrt.f32 %v5030_v60  ;;  %v898_v54 = vmul.f32 %v5025_v3, %v5025_v3  ;;  %v896_v53 = vmul.f32 %v5028_v30, %v5028_v30  ;;  %v899_v61 = vmul.f32 %v5038_v27, %v5038_v27 }
 0x15d   : > { %7879 = vst [vmem:[#allocation129_spill] sm:$0xff] %v5025_v3  ;;  %v5058_v51 = vpop.eup %3377  ;;  %v5060_v56 = vadd.f32 1e-05, %v1168_v33  ;;  %v1175_v43 = vmul.f32 0.0051020407, %v4936_v39  ;;  %v895_v8 = vmul.f32 %v5046_v45, %v5046_v45  ;;  %vm1303_vm2 = vweird.f32 %v5000_v47 }
 0x15e   : > { %1139 = vadd.xlane.f32.xlu2 %v1138_v40  ;;  %7882 = vst [vmem:[#allocation132_spill] sm:$0xff] %v5041_v36  ;;  %v1153_v33 = vsel %vm306_vm0, %v896_v53, 0.0  ;;  %v1170_v57 = vmul.f32 0.0051020407, %v4845_v41  ;;  %vm1304_vm1 = vweird.f32 %v5058_v51  ;;  %vm1313_vm7 = vweird.f32 %v5030_v60 }
 0x15f   : > { %1135 = vadd.xlane.f32.xlu1 %v1134_v6  ;;  %v1172_v6 = vmul.f32 0.0051020407, %v4895_v23  ;;  %v1141_v23 = vsel %vm306_vm0, %v890_v44, 0.0  ;;  %7883 = vst [vmem:[#allocation133_spill] sm:$0xff] %v5046_v45  ;;  %v900_v44 = vmul.f32 %v5016_v32, %v5016_v32  ;;  %v5091_v27 = vadd.f32 1e-05, %v1175_v43  ;;  %vm5168_vm4 = vmor %vm1303_vm2, %vm1304_vm1 }
 0x160   : > { %1131 = vadd.xlane.f32.xlu0 %v1130_v50  ;;  %v1150_v50 = vadd.f32 %v1149_v11, %v893_v31  ;;  %v1142_v25 = vadd.f32 %v1141_v23, %v889_v59  ;;  %v897_v31 = vmul.f32 %v5041_v36, %v5041_v36  ;;  %v1298_v59 = vmul.f32 %v5058_v51, %v5000_v47 }
 0x161   : > { %v5020_v24 = vpop.xlane.xlu2 %971  ;;  %v5048_v2 = vadd.f32 1e-05, %v1172_v6  ;;  %v1161_v11 = vsel %vm306_vm0, %v900_v44, 0.0  ;;  %v5073_v6 = vpop.eup %3379  ;;  %v5077_v23 = vadd.f32 1e-05, %v1169_v28  ;;  %v1154_v36 = vadd.f32 %v1153_v33, %v895_v8 }
 0x162   : > { %v5032_v40 = vpop.xlane.xlu1 %967  ;;  %v5086_v44 = vpop.eup %3381  ;;  %v1162_v32 = vadd.f32 %v1161_v11, %v899_v61  ;;  %v1318_v28 = vmul.f32 %v5073_v6, %v5011_v55  ;;  %v1299_v30 = vmul.f32 %v5058_v51, %v1298_v59  ;;  %v5100_v61 = vadd.f32 1e-05, %v1170_v57 }
 0x163   : > { %v5034_v0 = vpop.xlane.xlu0 %963  ;;  %3383 = vrsqrt.f32 %v5048_v2  ;;  %v1308_v53 = vmul.f32 %v5086_v44, %v5030_v60  ;;  %v1174_v45 = vmul.f32 0.0051020407, %v4938_v18  ;;  %vm1324_vm5 = vweird.f32 %v5073_v6 }
 0x164   : > { %3385 = vrsqrt.f32 %v5060_v56  ;;  %v1319_v43 = vmul.f32 %v5073_v6, %v1318_v28  ;;  %vm1314_vm6 = vweird.f32 %v5086_v44  ;;  %vm5192_vm8 = vmor %vm1323_vm3, %vm1324_vm5  ;;  %vm1333_vm9 = vweird.f32 %v5060_v56 }
 0x165   : > { %3387 = vrsqrt.f32 %v5077_v23  ;;  %v5145_v49 = vadd.f32 1e-05, %v1174_v45  ;;  %vm5215_vm10 = vmor %vm1313_vm7, %vm1314_vm6  ;;  %vm1373_vm12 = vweird.f32 %v5048_v2  ;;  %vm1343_vm1 = vweird.f32 %v5077_v23 }
 0x166   : > { %1151 = vadd.xlane.f32.xlu2 %v1150_v50  ;;  %3389 = vrsqrt.f32 %v5091_v27  ;;  %v1320_v33 = vmul.f32 0.5, %v1319_v43  ;;  %vm1353_vm3 = vweird.f32 %v5100_v61  ;;  %vm1403_vm6 = vweird.f32 %v5091_v27 }
 0x167   : > { %1147 = vadd.xlane.f32.xlu1 %v1146_v16  ;;  %v1157_v16 = vsel %vm306_vm0, %v898_v54, 0.0  ;;  %v1171_v54 = vmul.f32 0.0051020407, %v4897_v62  ;;  %v1300_v62 = vmul.f32 0.5, %v1299_v30  ;;  %3391 = vrsqrt.f32 %v5100_v61 }
 0x168   : > { %1143 = vadd.xlane.f32.xlu0 %v1142_v25  ;;  %v3599_v25 = vmov 0   ;;  %v1158_v3 = vadd.f32 %v1157_v16, %v897_v31  ;;  %v1178_v31 = vmul.f32 0.0051020407, %v4980_v42  ;;  %v1173_v42 = vmul.f32 0.0051020407, %v4883_v12 }
 0x169   : > { %v5068_v26 = vpop.xlane.xlu2 %983  ;;  %3371 = vset.pattern.permute.xlu0 %v3599_v25  ;;  %3373 = vset.pattern.permute.xlu2 %v3599_v25  ;;  %v5096_v41 = vpop.eup %3383  ;;  %v1301_v28 = vsub.f32 1.5, %v1300_v62 }
 0x16a   : > { %v5079_v50 = vpop.xlane.xlu1 %979  ;;  %3372 = vset.pattern.permute.xlu1 %v3599_v25  ;;  %v5107_v8 = vpop.eup %3385  ;;  %v5111_v25 = vadd.f32 1e-05, %v1171_v54  ;;  %v5124_v57 = vadd.f32 1e-05, %v1178_v31  ;;  %v5133_v29 = vadd.f32 1e-05, %v1173_v42  ;;  %vm1374_vm11 = vweird.f32 %v5096_v41 }
 0x16b   : > { %v5081_v39 = vpop.xlane.xlu0 %975  ;;  %v5120_v16 = vpop.eup %3387  ;;  %v1328_v30 = vmul.f32 %v5107_v8, %v5060_v56  ;;  %v1321_v31 = vsub.f32 1.5, %v1320_v33  ;;  %v1302_v33 = vmul.f32 %v5058_v51, %v1301_v28  ;;  %v1181_v28 = vmul.f32 0.0051020407, %v5032_v40  ;;  %vm5234_vm13 = vmor %vm1373_vm12, %vm1374_vm11 }
 0x16c   : > { %3393 = vrsqrt.f32 %v5111_v25  ;;  %v1338_v12 = vmul.f32 %v5120_v16, %v5077_v23  ;;  %vm1334_vm14 = vweird.f32 %v5107_v8  ;;  %vm1344_vm15 = vweird.f32 %v5120_v16  ;;  %v1961_v23 = vld [vmem:[%s5157_s19 + $0x20] sm:$0xff] }
 0x16d   : > { %v1329_v62 = vmul.f32 %v5107_v8, %v1328_v30  ;;  %3395 = vrsqrt.f32 %v5124_v57  ;;  %v1322_v1 = vmul.f32 %v5073_v6, %v1321_v31  ;;  %v1306_v40 = vsel %vm5168_vm4, %v5058_v51, %v1302_v33  ;;  %vm5256_vm2 = vmor %vm1333_vm9, %vm1334_vm14 }
 0x16e   : > { %1163 = vadd.xlane.f32.xlu2 %v1162_v32  ;;  %v1368_v32 = vmul.f32 %v5096_v41, %v5048_v2  ;;  %v1339_v30 = vmul.f32 %v5120_v16, %v1338_v12  ;;  %3397 = vrsqrt.f32 %v5133_v29  ;;  %v1176_v2 = vmul.f32 0.0051020407, %v4927_v9  ;;  %v1964_v9 = vld [vmem:[%s5157_s19 + $0x38] sm:$0xff]  ;;  %vm5279_vm4 = vmor %vm1343_vm1, %vm1344_vm15 }
 0x16f   : > { %1159 = vadd.xlane.f32.xlu1 %v1158_v3  ;;  %3399 = vrsqrt.f32 %v5145_v49  ;;  %vm1433_vm14 = vweird.f32 %v5124_v57 }
 0x170   : > { %1155 = vadd.xlane.f32.xlu0 %v1154_v36  ;;  %v1309_v36 = vmul.f32 %v5086_v44, %v1308_v53  ;;  %v1369_v54 = vmul.f32 %v5096_v41, %v1368_v32  ;;  %v5129_v53 = vpop.eup %3389  ;;  %v1340_v10 = vmul.f32 0.5, %v1339_v30 }
 0x171   : > { %v5105_v11 = vpop.xlane.xlu2 %995  ;;  %v5136_v43 = vpop.eup %3391  ;;  %vm1404_vm5 = vweird.f32 %v5129_v53 }
 0x172   : > { %v5113_v59 = vpop.xlane.xlu1 %991  ;;  %v1310_v37 = vmul.f32 0.5, %v1309_v36  ;;  %v1370_v18 = vmul.f32 0.5, %v1369_v54  ;;  %v1398_v36 = vmul.f32 %v5129_v53, %v5091_v27  ;;  %v5159_v54 = vpop.eup %3393  ;;  %v1348_v45 = vmul.f32 %v5136_v43, %v5100_v61  ;;  %vm5298_vm7 = vmor %vm1403_vm6, %vm1404_vm5 }
 0x173   : > { %v5115_v3 = vpop.xlane.xlu0 %987  ;;  %v5180_v22 = vpop.eup %3395  ;;  %v1358_v15 = vmul.f32 %v5159_v54, %v5111_v25  ;;  %vm1364_vm9 = vweird.f32 %v5159_v54 }
 0x174   : > { %v1311_v13 = vsub.f32 1.5, %v1310_v37  ;;  %v1330_v37 = vmul.f32 0.5, %v1329_v62  ;;  %v1371_v52 = vsub.f32 1.5, %v1370_v18  ;;  %v1399_v47 = vmul.f32 %v5129_v53, %v1398_v36  ;;  %v1957_v62 = vld [vmem:[%s5157_s19] sm:$0xff]  ;;  %v5196_v33 = vpop.eup %3397 }
 0x175   : > { %v1349_v18 = vmul.f32 %v5136_v43, %v1348_v45  ;;  %v5188_v36 = vadd.f32 1e-05, %v1181_v28  ;;  %v2023_v12 = vmul.f32 %v1957_v62, %v1306_v40  ;;  %v1326_v45 = vsel %vm5192_vm8, %v5073_v6, %v1322_v1  ;;  %v1959_v28 = vld [vmem:[%s5157_s19 + $0x10] sm:$0xff]  ;;  %v1958_v62 = vld [vmem:[%s5157_s19 + $0x8] sm:$0xff]  ;;  %v5227_v60 = vpop.eup %3399 }
 0x176   : > { %v1312_v31 = vmul.f32 %v5086_v44, %v1311_v13  ;;  %v1331_v30 = vsub.f32 1.5, %v1330_v37  ;;  %v1400_v38 = vmul.f32 0.5, %v1399_v47  ;;  %v1428_v55 = vmul.f32 %v5180_v22, %v5124_v57 }
 0x177   : > { %v1372_v40 = vmul.f32 %v5096_v41, %v1371_v52  ;;  %v1341_v1 = vsub.f32 1.5, %v1340_v10  ;;  %v1359_v6 = vmul.f32 %v5159_v54, %v1358_v15  ;;  %v1350_v51 = vmul.f32 0.5, %v1349_v18 }
 0x178   : > { %v1316_v47 = vsel %vm5215_vm10, %v5086_v44, %v1312_v31  ;;  %v1378_v52 = vmul.f32 %v5196_v33, %v5133_v29  ;;  %3401 = vrsqrt.f32 %v5188_v36  ;;  %v2025_v10 = vmul.f32 %v1959_v28, %v1326_v45 }
 0x179   : > { %v5140_v32 = vpop.xlane.xlu2 %1007  ;;  %v1179_v15 = vmul.f32 0.0051020407, %v4972_v20  ;;  %v1332_v44 = vmul.f32 %v5107_v8, %v1331_v30  ;;  %v1401_v31 = vsub.f32 1.5, %v1400_v38  ;;  %v1429_v18 = vmul.f32 %v5180_v22, %v1428_v55 }
 0x17a   : > { %v5147_v42 = vpop.xlane.xlu1 %1003  ;;  %v2024_v37 = vmul.f32 %v1958_v62, %v1316_v47  ;;  %v1376_v45 = vsel %vm5234_vm13, %v5096_v41, %v1372_v40  ;;  %v1360_v20 = vmul.f32 0.5, %v1359_v6  ;;  %v1388_v28 = vmul.f32 %v5227_v60, %v5145_v49  ;;  %v1960_v47 = vld [vmem:[%s5157_s19 + $0x18] sm:$0xff] }
 0x17b   : > { %v5149_v48 = vpop.xlane.xlu0 %999  ;;  %v1342_v21 = vmul.f32 %v5120_v16, %v1341_v1  ;;  %v1379_v38 = vmul.f32 %v5196_v33, %v1378_v52  ;;  %v1177_v30 = vmul.f32 0.0051020407, %v4982_v34  ;;  %v1351_v55 = vsub.f32 1.5, %v1350_v51 }
 0x17c   : > { %v5260_v40 = vadd.f32 1e-05, %v1179_v15  ;;  %v2030_v6 = vmul.f32 %v1964_v9, %v1376_v45  ;;  %v1336_v34 = vsel %vm5256_vm2, %v5107_v8, %v1332_v44  ;;  %v1430_v56 = vmul.f32 0.5, %v1429_v18 }
 0x17d   : > { %v1402_v8 = vmul.f32 %v5129_v53, %v1401_v31  ;;  %v1361_v15 = vsub.f32 1.5, %v1360_v20  ;;  %v1389_v44 = vmul.f32 %v5227_v60, %v1388_v28  ;;  %v1346_v18 = vsel %vm5279_vm4, %v5120_v16, %v1342_v21 }
 0x17e   : > { %v5268_v62 = vpop.eup %3401  ;;  %v5293_v45 = vadd.f32 1e-05, %v1177_v30  ;;  %v2026_v31 = vmul.f32 %v1960_v47, %v1336_v34  ;;  %3403 = vrsqrt.f32 %v5260_v40  ;;  %v1352_v20 = vmul.f32 %v5136_v43, %v1351_v55 }
 0x17f   : > { %vm1354_vm8 = vweird.f32 %v5136_v43  ;;  %v1431_v21 = vsub.f32 1.5, %v1430_v56  ;;  %v1184_v16 = vmul.f32 0.0051020407, %v5079_v50  ;;  %v2027_v27 = vmul.f32 %v1961_v23, %v1346_v18  ;;  %v1962_v56 = vld [vmem:[%s5157_s19 + $0x28] sm:$0xff] }
 0x180   : > { %v1406_v28 = vsel %vm5298_vm7, %v5129_v53, %v1402_v8  ;;  %v1390_v30 = vmul.f32 0.5, %v1389_v44  ;;  %v1182_v41 = vmul.f32 0.0051020407, %v5020_v24  ;;  %vm1363_vm10 = vweird.f32 %v5111_v25  ;;  %vm5319_vm11 = vmor %vm1353_vm3, %vm1354_vm8  ;;  %v1963_v25 = vld [vmem:[%s5157_s19 + $0x30] sm:$0xff] }
 0x181   : > { %v5199_v13 = vpop.xlane.xlu2 %1019  ;;  %v1180_v50 = vmul.f32 0.0051020407, %v5034_v0  ;;  %v1356_v0 = vsel %vm5319_vm11, %v5136_v43, %v1352_v20  ;;  %v5331_v51 = vadd.f32 1e-05, %v1184_v16  ;;  %vm5341_vm12 = vmor %vm1363_vm10, %vm1364_vm9  ;;  %v1432_v44 = vmul.f32 %v5180_v22, %v1431_v21 }
 0x182   : > { %v5207_v46 = vpop.xlane.xlu1 %1015  ;;  %vm1434_vm13 = vweird.f32 %v5180_v22  ;;  %v1391_v18 = vsub.f32 1.5, %v1390_v30  ;;  %v5349_v23 = vadd.f32 1e-05, %v1182_v41  ;;  %v2028_v9 = vmul.f32 %v1962_v56, %v1356_v0 }
 0x183   : > { %v5209_v17 = vpop.xlane.xlu0 %1011  ;;  %vm5359_vm15 = vmor %vm1433_vm14, %vm1434_vm13  ;;  %vm1384_vm1 = vweird.f32 %v5196_v33  ;;  %vm1383_vm2 = vweird.f32 %v5133_v29  ;;  %vm1394_vm3 = vweird.f32 %v5227_v60  ;;  %vm1393_vm4 = vweird.f32 %v5145_v49 }
 0x184   : > { %2091 = vperm.xlu0 %3371, %v2023_v12   ;;  %v5285_v12 = vadd.f32 1e-05, %v1176_v2  ;;  %v1458_v2 = vmul.f32 %v5268_v62, %v5188_v36  ;;  %v5347_v43 = vpop.eup %3403  ;;  %vm5389_vm5 = vmor %vm1383_vm2, %vm1384_vm1  ;;  %vm1464_vm7 = vweird.f32 %v5268_v62  ;;  %vm1463_vm8 = vweird.f32 %v5188_v36 }
 0x185   : > { %v1438_v41 = vmul.f32 %v5347_v43, %v5260_v40  ;;  %vm5410_vm6 = vmor %vm1393_vm4, %vm1394_vm3  ;;  %v1186_v36 = vmul.f32 0.0051020407, %v5115_v3  ;;  %vm1423_vm11 = vweird.f32 %v5293_v45  ;;  %vm1443_vm14 = vweird.f32 %v5260_v40 }
 0x186   : > { %2101 = vperm.xlu2 %3373, %v2025_v10   ;;  %3405 = vrsqrt.f32 %v5285_v12  ;;  %v1459_v55 = vmul.f32 %v5268_v62, %v1458_v2  ;;  %v1187_v2 = vmul.f32 0.0051020407, %v5113_v59  ;;  %v1436_v59 = vsel %vm5359_vm15, %v5180_v22, %v1432_v44  ;;  %vm5443_vm9 = vmor %vm1463_vm8, %vm1464_vm7 }
 0x187   : > { %3407 = vrsqrt.f32 %v5293_v45  ;;  %vm1413_vm10 = vweird.f32 %v5285_v12  ;;  %vm1493_vm4 = vweird.f32 %v5331_v51  ;;  %v1194_v5 = vmul.f32 0.0051020407, %v5199_v13 }
 0x188   : > { %2096 = vperm.xlu1 %3372, %v2024_v37   ;;  %v1380_v37 = vmul.f32 0.5, %v1379_v38  ;;  %v1967_v38 = vld [vmem:[%s5157_s19 + $0x50] sm:$0xff]  ;;  %v1460_v20 = vmul.f32 0.5, %v1459_v55  ;;  %3409 = vrsqrt.f32 %v5331_v51  ;;  %v5383_v22 = vadd.f32 1e-05, %v1187_v2 }
 0x189   : > { %v5262_v1 = vpop.xlane.xlu2 %1031  ;;  %v2033_v47 = vmul.f32 %v1967_v38, %v1406_v28  ;;  %3411 = vrsqrt.f32 %v5349_v23  ;;  %v1183_v28 = vmul.f32 0.0051020407, %v5081_v39  ;;  %v1392_v38 = vmul.f32 %v5227_v60, %v1391_v18  ;;  %v1966_v18 = vld [vmem:[%s5157_s19 + $0x48] sm:$0xff] }
 0x18a   : > { %v5271_v52 = vpop.xlane.xlu1 %1027  ;;  %v1381_v24 = vsub.f32 1.5, %v1380_v37 }
 0x18b   : > { %v5273_v10 = vpop.xlane.xlu0 %1023  ;;  %v1396_v44 = vsel %vm5410_vm6, %v5227_v60, %v1392_v38 }
 0x18c   : > { %2126 = vperm.xlu0 %3371, %v2030_v6   ;;  %v1362_v6 = vmul.f32 %v5159_v54, %v1361_v15  ;;  %v1382_v16 = vmul.f32 %v5196_v33, %v1381_v24 }
 0x18e   : > { %2106 = vperm.xlu2 %3373, %v2026_v31   ;;  %v1366_v37 = vsel %vm5341_vm12, %v5159_v54, %v1362_v6  ;;  %v5356_v31 = vadd.f32 1e-05, %v1180_v50  ;;  %v1970_v54 = vld [vmem:[%s5157_s19 + $0x68] sm:$0xff]  ;;  %v1461_v6 = vsub.f32 1.5, %v1460_v20  ;;  %v1185_v50 = vmul.f32 0.0051020407, %v5068_v26 }
 0x18f   : > { %v2029_v57 = vmul.f32 %v1963_v25, %v1366_v37  ;;  %v2036_v24 = vmul.f32 %v1970_v54, %v1436_v59  ;;  %v1386_v55 = vsel %vm5389_vm5, %v5196_v33, %v1382_v16  ;;  %v5416_v33 = vadd.f32 1e-05, %v1183_v28 }
 0x190   : > { %2111 = vperm.xlu1 %3372, %v2027_v27   ;;  %v5365_v27 = vpop.eup %3405  ;;  %3413 = vrsqrt.f32 %v5356_v31  ;;  %v1439_v25 = vmul.f32 %v5347_v43, %v1438_v41  ;;  %v1462_v20 = vmul.f32 %v5268_v62, %v1461_v6  ;;  %v1190_v16 = vmul.f32 0.0051020407, %v5147_v42 }
 0x191   : > { %v5324_v34 = vpop.xlane.xlu2 %1043  ;;  %v5377_v30 = vpop.eup %3407  ;;  %v1408_v0 = vmul.f32 %v5365_v27, %v5285_v12  ;;  %3415 = vrsqrt.f32 %v5383_v22  ;;  %vm1444_vm12 = vweird.f32 %v5347_v43  ;;  %vm1414_vm13 = vweird.f32 %v5365_v27 }
 0x192   : > { %v5333_v61 = vpop.xlane.xlu1 %1039  ;;  %v1418_v15 = vmul.f32 %v5377_v30, %v5293_v45  ;;  %v5422_v37 = vpop.eup %3409  ;;  %3417 = vrsqrt.f32 %v5416_v33  ;;  %v1440_v28 = vmul.f32 0.5, %v1439_v25  ;;  %v1466_v6 = vsel %vm5443_vm9, %v5268_v62, %v1462_v20  ;;  %vm5513_vm2 = vmor %vm1413_vm10, %vm1414_vm13 }
 0x193   : > { %v5335_v8 = vpop.xlane.xlu0 %1035  ;;  %v5426_v2 = vpop.eup %3411  ;;  %v1409_v60 = vmul.f32 %v5365_v27, %v1408_v0  ;;  %v1488_v54 = vmul.f32 %v5422_v37, %v5331_v51  ;;  %v5460_v0 = vadd.f32 1e-05, %v1190_v16  ;;  %vm1453_vm1 = vweird.f32 %v5356_v31  ;;  %vm5579_vm9 = vmor %vm1443_vm14, %vm1444_vm12 }
 0x194   : > { %2141 = vperm.xlu0 %3371, %v2033_v47   ;;  %v1965_v47 = vld [vmem:[%s5157_s19 + $0x40] sm:$0xff]  ;;  %v1419_v59 = vmul.f32 %v5377_v30, %v1418_v15  ;;  %v1468_v38 = vmul.f32 %v5426_v2, %v5349_v23  ;;  %v1441_v3 = vsub.f32 1.5, %v1440_v28  ;;  %vm1424_vm3 = vweird.f32 %v5377_v30 }
 0x195   : > { %v2031_v49 = vmul.f32 %v1965_v47, %v1386_v55  ;;  %v1410_v55 = vmul.f32 0.5, %v1409_v60  ;;  %v1188_v47 = vmul.f32 0.0051020407, %v5105_v11  ;;  %v5473_v60 = vadd.f32 1e-05, %v1186_v36  ;;  %vm5524_vm5 = vmor %vm1423_vm11, %vm1424_vm3 }
 0x196   : > { %2116 = vperm.xlu2 %3373, %v2028_v9   ;;  %v5428_v9 = vadd.f32 1e-05, %v1185_v50  ;;  %v5432_v21 = vpop.eup %3413  ;;  %v1973_v50 = vld [vmem:[%s5157_s19 + $0x80] sm:$0xff]  ;;  %v1420_v15 = vmul.f32 0.5, %v1419_v59  ;;  %v5483_v41 = vmul.f32 %v5347_v43, %v1441_v3  ;;  %vm1494_vm6 = vweird.f32 %v5422_v37 }
 0x197   : > { %v1448_v42 = vmul.f32 %v5432_v21, %v5356_v31  ;;  %v1411_v16 = vsub.f32 1.5, %v1410_v55  ;;  %v1189_v55 = vmul.f32 0.0051020407, %v5149_v48  ;;  %vm1454_vm15 = vweird.f32 %v5432_v21  ;;  %vm1495_vm8 = vmor %vm1493_vm4, %vm1494_vm6 }
 0x198   : > { %2121 = vperm.xlu1 %3372, %v2029_v57   ;;  %v2032_v57 = vmul.f32 %v1966_v18, %v1396_v44  ;;  %3419 = vrsqrt.f32 %v5428_v9  ;;  %v1489_v44 = vmul.f32 %v5422_v37, %v1488_v54  ;;  %v1469_v18 = vmul.f32 %v5426_v2, %v1468_v38  ;;  %vm5592_vm11 = vmor %vm1453_vm1, %vm1454_vm15 }
 0x199   : > { %v5394_v53 = vpop.xlane.xlu2 %1055  ;;  %v1449_v20 = vmul.f32 %v5432_v21, %v1448_v42  ;;  %3421 = vrsqrt.f32 %v5460_v0  ;;  %v1421_v54 = vsub.f32 1.5, %v1420_v15  ;;  %v1193_v38 = vmul.f32 0.0051020407, %v5207_v46 }
 0x19a   : > { %v5402_v29 = vpop.xlane.xlu1 %1051  ;;  %v1490_v28 = vmul.f32 0.5, %v1489_v44  ;;  %v1470_v42 = vmul.f32 0.5, %v1469_v18  ;;  %3423 = vrsqrt.f32 %v5473_v60  ;;  %v1412_v15 = vmul.f32 %v5365_v27, %v1411_v16 }
 0x19b   : > { %v5404_v56 = vpop.xlane.xlu0 %1047  ;;  %v5503_v48 = vadd.f32 1e-05, %v1193_v38  ;;  %v1422_v18 = vmul.f32 %v5377_v30, %v1421_v54  ;;  %v1191_v16 = vmul.f32 0.0051020407, %v5140_v32  ;;  %v5519_v38 = vadd.f32 1e-05, %v1189_v55 }
 0x19c   : > { %2156 = vperm.xlu0 %3371, %v2036_v24   ;;  %v5457_v24 = vpop.eup %3415  ;;  %v1491_v3 = vsub.f32 1.5, %v1490_v28  ;;  %v1969_v32 = vld [vmem:[%s5157_s19 + $0x60] sm:$0xff]  ;;  %vm1474_vm7 = vweird.f32 %v5426_v2  ;;  %vm1523_vm13 = vweird.f32 %v5383_v22  ;;  %v1446_v31 = vsel %vm5579_vm9, %v5347_v43, %v5483_v41 }
 0x19d   : > { %v5468_v62 = vpop.eup %3417  ;;  %v1518_v11 = vmul.f32 %v5457_v24, %v5383_v22  ;;  %v5550_v63 = vadd.f32 1e-05, %v1191_v16  ;;  %vm1524_vm12 = vweird.f32 %v5457_v24  ;;  %vm1473_vm15 = vweird.f32 %v5349_v23 }
 0x19e   : > { %2131 = vperm.xlu2 %3373, %v2031_v49   ;;  %v2039_v49 = vmul.f32 %v1973_v50, %v1466_v6  ;;  %v5478_v59 = vpop.eup %3419  ;;  %v1478_v36 = vmul.f32 %v5468_v62, %v5416_v33  ;;  %v1450_v6 = vmul.f32 0.5, %v1449_v20  ;;  %v1471_v20 = vsub.f32 1.5, %v1470_v42  ;;  %v1968_v42 = vld [vmem:[%s5157_s19 + $0x58] sm:$0xff]  ;;  %vm5618_vm14 = vmor %vm1523_vm13, %vm1524_vm12 }
 0x19f   : > { %v1519_v50 = vmul.f32 %v5457_v24, %v1518_v11  ;;  %v1498_v46 = vmul.f32 %v5478_v59, %v5428_v9  ;;  %v1492_v35 = vmul.f32 %v5422_v37, %v1491_v3  ;;  %v1192_v3 = vmul.f32 0.0051020407, %v5209_v17 }
 0x1a0   : > { %2136 = vperm.xlu1 %3372, %v2032_v57   ;;  %v5475_v57 = vadd.f32 1e-05, %v1188_v47  ;;  %v1479_v11 = vmul.f32 %v5468_v62, %v1478_v36  ;;  %v1451_v28 = vsub.f32 1.5, %v1450_v6  ;;  %v1416_v6 = vsel %vm5513_vm2, %v5365_v27, %v1412_v15  ;;  %vm5644_vm2 = vmor %vm1473_vm15, %vm1474_vm7 }
 0x1a1   : > { %v5451_v39 = vpop.xlane.xlu2 %1067  ;;  %v1520_v54 = vmul.f32 0.5, %v1519_v50  ;;  %v1499_v12 = vmul.f32 %v5478_v59, %v1498_v46  ;;  %v1426_v50 = vsel %vm5524_vm5, %v5377_v30, %v1422_v18  ;;  %v1196_v30 = vmul.f32 0.0051020407, %v5271_v52 }
 0x1a2   : > { %v5466_v25 = vpop.xlane.xlu1 %1063  ;;  %3425 = vrsqrt.f32 %v5475_v57  ;;  %v1480_v27 = vmul.f32 0.5, %v1479_v11  ;;  %v2034_v15 = vmul.f32 %v1968_v42, %v1416_v6  ;;  %v2035_v18 = vmul.f32 %v1969_v32, %v1426_v50 }
 0x1a3   : > { %v5462_v26 = vpop.xlane.xlu0 %1059  ;;  %3427 = vrsqrt.f32 %v5503_v48  ;;  %v1521_v36 = vsub.f32 1.5, %v1520_v54  ;;  %v5558_v14 = vmul.f32 %v5426_v2, %v1471_v20  ;;  %v1452_v7 = vmul.f32 %v5432_v21, %v1451_v28 }
 0x1a4   : > { %2171 = vperm.xlu0 %3371, %v2039_v49   ;;  %v5506_v49 = vpop.eup %3421  ;;  %3429 = vrsqrt.f32 %v5519_v38  ;;  %v1500_v11 = vmul.f32 0.5, %v1499_v12  ;;  %v5572_v28 = vadd.f32 1e-05, %v1194_v5  ;;  %v1496_v54 = vsel %vm1495_vm8, %v5422_v37, %v1492_v35  ;;  %v1971_v37 = vld [vmem:[%s5157_s19 + $0x70] sm:$0xff] }
 0x1a5   : > { %v5539_v45 = vpop.eup %3423  ;;  %v1548_v46 = vmul.f32 %v5506_v49, %v5460_v0  ;;  %v1481_v42 = vsub.f32 1.5, %v1480_v27  ;;  %vm1484_vm10 = vweird.f32 %v5468_v62  ;;  %v5584_v32 = vadd.f32 1e-05, %v1196_v30 }
 0x1a6   : > { %v1508_v52 = vmul.f32 %v5539_v45, %v5473_v60  ;;  %2146 = vperm.xlu2 %3373, %v2034_v15   ;;  %v2042_v12 = vmul.f32 %v1976_v58, %v1496_v54  ;;  %v1522_v35 = vmul.f32 %v5457_v24, %v1521_v36  ;;  %3431 = vrsqrt.f32 %v5550_v63  ;;  %v1972_v58 = vld [vmem:[%s5157_s19 + $0x78] sm:$0xff] }
 0x1a7   : > { %v1549_v16 = vmul.f32 %v5506_v49, %v1548_v46  ;;  %v5599_v40 = vadd.f32 1e-05, %v1192_v3  ;;  %v1456_v46 = vsel %vm5592_vm11, %v5432_v21, %v1452_v7  ;;  %v1501_v30 = vsub.f32 1.5, %v1500_v11 }
 0x1a8   : > { %v5546_v19 = vpop.eup %3425  ;;  %2151 = vperm.xlu1 %3372, %v2035_v18   ;;  %v1509_v50 = vmul.f32 %v5539_v45, %v1508_v52  ;;  %3433 = vrsqrt.f32 %v5572_v28  ;;  %v2037_v7 = vmul.f32 %v1971_v37, %v1446_v31  ;;  %v2038_v21 = vmul.f32 %v1972_v58, %v1456_v46  ;;  %v1979_v52 = vld [vmem:[%s5157_s19 + $0xb0] sm:$0xff]  ;;  %v1974_v31 = vld [vmem:[%s5157_s19 + $0x88] sm:$0xff] }
 0x1a9   : > { %v5492_v47 = vpop.xlane.xlu2 %1079  ;;  %v1528_v20 = vmul.f32 %v5546_v19, %v5475_v57  ;;  %v5586_v6 = vpop.eup %3427  ;;  %v1550_v18 = vmul.f32 0.5, %v1549_v16  ;;  %3435 = vrsqrt.f32 %v5584_v32  ;;  %v1482_v36 = vmul.f32 %v5468_v62, %v1481_v42 }
 0x1aa   : > { %v5537_v55 = vpop.xlane.xlu1 %1075  ;;  %v5612_v27 = vpop.eup %3429  ;;  %v1578_v43 = vmul.f32 %v5586_v6, %v5503_v48  ;;  %3437 = vrsqrt.f32 %v5599_v40  ;;  %v1199_v3 = vmul.f32 0.0051020407, %v5333_v61  ;;  %v1526_v11 = vsel %vm5618_vm14, %v5457_v24, %v1522_v35 }
 0x1ab   : > { %v5499_v44 = vpop.xlane.xlu0 %1071  ;;  %v1529_v15 = vmul.f32 %v5546_v19, %v1528_v20  ;;  %vm1483_vm1 = vweird.f32 %v5416_v33  ;;  %v1510_v16 = vmul.f32 0.5, %v1509_v50  ;;  %v1538_v54 = vmul.f32 %v5612_v27, %v5519_v38 }
 0x1ac   : > { %2186 = vperm.xlu0 %3371, %v2042_v12   ;;  %v5640_v51 = vpop.eup %3431  ;;  %vm1503_vm3 = vweird.f32 %v5428_v9  ;;  %vm1504_vm4 = vweird.f32 %v5478_v59  ;;  %v1551_v23 = vsub.f32 1.5, %v1550_v18  ;;  %v1197_v33 = vmul.f32 0.0051020407, %v5262_v1  ;;  %vm5657_vm5 = vmor %vm1483_vm1, %vm1484_vm10 }
 0x1ad   : > { %v1195_v24 = vmul.f32 0.0051020407, %v5273_v10  ;;  %v5653_v42 = vmul.f32 %v5478_v59, %v1501_v30  ;;  %v5661_v5 = vmul.f32 0.5, %v1529_v15  ;;  %vm1513_vm6 = vweird.f32 %v5473_v60  ;;  %v1975_v30 = vld [vmem:[%s5157_s19 + $0x90] sm:$0xff]  ;;  %vm5731_vm12 = vmor %vm1503_vm3, %vm1504_vm4 }
 0x1ae   : > { %2161 = vperm.xlu2 %3373, %v2037_v7   ;;  %v1579_v35 = vmul.f32 %v5586_v6, %v1578_v43  ;;  %v2045_v37 = vmul.f32 %v1979_v52, %v1526_v11  ;;  %v5667_v1 = vpop.eup %3433  ;;  %vm1553_vm7 = vweird.f32 %v5460_v0  ;;  %v5670_v10 = vadd.f32 1e-05, %v1199_v3 }
 0x1af   : > { %v1476_v50 = vsel %vm5644_vm2, %v5426_v2, %v5558_v14  ;;  %v1486_v46 = vsel %vm5657_vm5, %v5468_v62, %v1482_v36  ;;  %v5681_v15 = vpop.eup %3435  ;;  %v1511_v18 = vsub.f32 1.5, %v1510_v16  ;;  %v1558_v22 = vmul.f32 %v5640_v51, %v5550_v63 }
 0x1b0   : > { %2166 = vperm.xlu1 %3372, %v2038_v21   ;;  %vm1554_vm8 = vweird.f32 %v5506_v49  ;;  %v1539_v43 = vmul.f32 %v5612_v27, %v1538_v54  ;;  %v5687_v7 = vpop.eup %3437  ;;  %v1552_v14 = vmul.f32 %v5506_v49, %v1551_v23  ;;  %v5690_v2 = vadd.f32 1e-05, %v1197_v33 }
 0x1b1   : > { %v5555_v13 = vpop.xlane.xlu2 %1091  ;;  %v5692_v21 = vadd.f32 1e-05, %v1195_v24  ;;  %v1200_v62 = vmul.f32 0.0051020407, %v5324_v34  ;;  %v1580_v36 = vmul.f32 0.5, %v1579_v35  ;;  %v2040_v11 = vmul.f32 %v1974_v31, %v1476_v50  ;;  %vm5711_vm10 = vmor %vm1553_vm7, %vm1554_vm8 }
 0x1b2   : > { %v5625_v41 = vpop.xlane.xlu1 %1087  ;;  %v1198_v3 = vmul.f32 0.0051020407, %v5335_v8  ;;  %v2041_v52 = vmul.f32 %v1975_v30, %v1486_v46  ;;  %v1588_v16 = vmul.f32 %v5667_v1, %v5572_v28  ;;  %v1608_v54 = vmul.f32 %v5681_v15, %v5584_v32 }
 0x1b3   : > { %v5567_v17 = vpop.xlane.xlu0 %1083  ;;  %3439 = vrsqrt.f32 %v5670_v10  ;;  %v1202_v61 = vmul.f32 0.0051020407, %v5402_v29  ;;  %v1512_v34 = vmul.f32 %v5539_v45, %v1511_v18  ;;  %vm1514_vm9 = vweird.f32 %v5539_v45 }
 0x1b4   : > { %2201 = vperm.xlu0 %3371, %v2045_v37   ;;  %v1559_v8 = vmul.f32 %v5640_v51, %v1558_v22  ;;  %v1568_v24 = vmul.f32 %v5687_v7, %v5599_v40  ;;  %vm1534_vm11 = vweird.f32 %v5546_v19  ;;  %v1540_v12 = vmul.f32 0.5, %v1539_v43  ;;  %v1982_v37 = vld [vmem:[%s5157_s19 + $0xc8] sm:$0xff]  ;;  %vm5744_vm14 = vmor %vm1513_vm6, %vm1514_vm9  ;;  %v1977_v43 = vld [vmem:[%s5157_s19 + $0xa0] sm:$0xff] }
 0x1b5   : > { %3441 = vrsqrt.f32 %v5692_v21  ;;  %v5721_v35 = vadd.f32 1e-05, %v1200_v62  ;;  %v1556_v0 = vsel %vm5711_vm10, %v5506_v49, %v1552_v14  ;;  %v1531_v31 = vsub.f32 1.5, %v5661_v5  ;;  %v1978_v14 = vld [vmem:[%s5157_s19 + $0xa8] sm:$0xff] }
 0x1b6   : > { %2176 = vperm.xlu2 %3373, %v2040_v11   ;;  %v1581_v46 = vsub.f32 1.5, %v1580_v36  ;;  %3443 = vrsqrt.f32 %v5690_v2  ;;  %v5737_v30 = vadd.f32 1e-05, %v1198_v3  ;;  %vm1533_vm13 = vweird.f32 %v5475_v57 }
 0x1b7   : > { %v1589_v9 = vmul.f32 %v5667_v1, %v1588_v16  ;;  %v1609_v18 = vmul.f32 %v5681_v15, %v1608_v54  ;;  %v5750_v5 = vadd.f32 1e-05, %v1202_v61  ;;  %v1506_v22 = vsel %vm5731_vm12, %v5478_v59, %v5653_v42  ;;  %vm1535_vm8 = vmor %vm1533_vm13, %vm1534_vm11 }
 0x1b8   : > { %2181 = vperm.xlu1 %3372, %v2041_v52   ;;  %vm1543_vm15 = vweird.f32 %v5519_v38  ;;  %v1569_v60 = vmul.f32 %v5687_v7, %v1568_v24  ;;  %v1203_v62 = vmul.f32 0.0051020407, %v5394_v53  ;;  %v2048_v36 = vmul.f32 %v1982_v37, %v1556_v0 }
 0x1b9   : > { %v5634_v20 = vpop.xlane.xlu2 %1103  ;;  %v1516_v3 = vsel %vm5744_vm14, %v5539_v45, %v1512_v34  ;;  %v5766_v52 = vpop.eup %3439  ;;  %v5768_v16 = vmul.f32 0.5, %v1559_v8  ;;  %v1541_v59 = vsub.f32 1.5, %v1540_v12  ;;  %vm1584_vm1 = vweird.f32 %v5586_v6 }
 0x1ba   : > { %v5717_v29 = vpop.xlane.xlu1 %1099  ;;  %3445 = vrsqrt.f32 %v5721_v35  ;;  %v1582_v42 = vmul.f32 %v5586_v6, %v1581_v46  ;;  %v2043_v53 = vmul.f32 %v1977_v43, %v1506_v22  ;;  %v2044_v54 = vmul.f32 %v1978_v14, %v1516_v3  ;;  %v1985_v22 = vld [vmem:[%s5157_s19 + $0xe0] sm:$0xff] }
 0x1bb   : > { %v5665_v58 = vpop.xlane.xlu0 %1095  ;;  %3447 = vrsqrt.f32 %v5737_v30  ;;  %v5774_v61 = vpop.eup %3441  ;;  %v5776_v45 = vmul.f32 0.5, %v1589_v9  ;;  %vm1583_vm2 = vweird.f32 %v5503_v48  ;;  %v1610_v34 = vmul.f32 0.5, %v1609_v18 }
 0x1bc   : > { %2216 = vperm.xlu0 %3371, %v2048_v36   ;;  %3449 = vrsqrt.f32 %v5750_v5  ;;  %v5782_v33 = vpop.eup %3443  ;;  %v1570_v24 = vmul.f32 0.5, %v1569_v60  ;;  %v1638_v12 = vmul.f32 %v5766_v52, %v5670_v10  ;;  %v5786_v0 = vadd.f32 1e-05, %v1203_v62  ;;  %vm5794_vm5 = vmor %vm1583_vm2, %vm1584_vm1  ;;  %v1980_v62 = vld [vmem:[%s5157_s19 + $0xb8] sm:$0xff] }
 0x1bd   : > { %v1201_v37 = vmul.f32 0.0051020407, %v5404_v56  ;;  %v1532_v48 = vmul.f32 %v5546_v19, %v1531_v31  ;;  %vm1564_vm3 = vweird.f32 %v5640_v51  ;;  %vm1544_vm4 = vweird.f32 %v5612_v27 }
 0x1be   : > { %2191 = vperm.xlu2 %3373, %v2043_v53   ;;  %v1205_v46 = vmul.f32 0.0051020407, %v5466_v25  ;;  %v1561_v49 = vsub.f32 1.5, %v5768_v16  ;;  %v1542_v56 = vmul.f32 %v5612_v27, %v1541_v59  ;;  %v1598_v31 = vmul.f32 %v5774_v61, %v5692_v21  ;;  %v1981_v59 = vld [vmem:[%s5157_s19 + $0xc0] sm:$0xff]  ;;  %vm1545_vm10 = vmor %vm1543_vm15, %vm1544_vm4 }
 0x1bf   : > { %v1586_v18 = vsel %vm5794_vm5, %v5586_v6, %v1582_v42  ;;  %vm1563_vm6 = vweird.f32 %v5550_v63  ;;  %v1591_v25 = vsub.f32 1.5, %v5776_v45  ;;  %v1618_v14 = vmul.f32 %v5782_v33, %v5690_v2 }
 0x1c0   : > { %2196 = vperm.xlu1 %3372, %v2044_v54   ;;  %v5809_v43 = vpop.eup %3445  ;;  %v1611_v60 = vsub.f32 1.5, %v1610_v34  ;;  %vm1614_vm7 = vweird.f32 %v5681_v15  ;;  %v1571_v6 = vsub.f32 1.5, %v1570_v24  ;;  %vm1573_vm9 = vweird.f32 %v5599_v40  ;;  %vm5884_vm15 = vmor %vm1563_vm6, %vm1564_vm3 }
 0x1c1   : > { %v5702_v23 = vpop.xlane.xlu2 %1115  ;;  %v5817_v36 = vpop.eup %3447  ;;  %v1639_v3 = vmul.f32 %v5766_v52, %v1638_v12  ;;  %3451 = vrsqrt.f32 %v5786_v0  ;;  %v5826_v16 = vadd.f32 1e-05, %v1201_v37  ;;  %v1206_v57 = vmul.f32 0.0051020407, %v5451_v39 }
 0x1c2   : > { %v5803_v9 = vpop.xlane.xlu1 %1111  ;;  %v5829_v42 = vpop.eup %3449  ;;  %v5836_v53 = vadd.f32 1e-05, %v1205_v46  ;;  %v2051_v54 = vmul.f32 %v1985_v22, %v1586_v18  ;;  %v1536_v45 = vsel %vm1535_vm8, %v5546_v19, %v1532_v48  ;;  %v1599_v34 = vmul.f32 %v5774_v61, %v1598_v31 }
 0x1c3   : > { %v5764_v11 = vpop.xlane.xlu0 %1107  ;;  %v1648_v24 = vmul.f32 %v5809_v43, %v5721_v35  ;;  %v2046_v12 = vmul.f32 %v1980_v62, %v1536_v45  ;;  %v1546_v37 = vsel %vm1545_vm10, %v5612_v27, %v1542_v56  ;;  %v1612_v38 = vmul.f32 %v5681_v15, %v1611_v60 }
 0x1c4   : > { %v1628_v39 = vmul.f32 %v5817_v36, %v5737_v30  ;;  %v1208_v46 = vmul.f32 0.0051020407, %v5537_v55  ;;  %2231 = vperm.xlu0 %3371, %v2051_v54   ;;  %v2047_v18 = vmul.f32 %v1981_v59, %v1546_v37  ;;  %v1619_v48 = vmul.f32 %v5782_v33, %v1618_v14 }
 0x1c5   : > { %v1668_v31 = vmul.f32 %v5829_v42, %v5750_v5  ;;  %3453 = vrsqrt.f32 %v5826_v16  ;;  %v1204_v27 = vmul.f32 0.0051020407, %v5462_v26  ;;  %vm1613_vm11 = vweird.f32 %v5584_v32 }
 0x1c6   : > { %2206 = vperm.xlu2 %3373, %v2046_v12   ;;  %v1640_v56 = vmul.f32 0.5, %v1639_v3  ;;  %v5857_v22 = vadd.f32 1e-05, %v1206_v57  ;;  %3455 = vrsqrt.f32 %v5836_v53  ;;  %v1562_v14 = vmul.f32 %v5640_v51, %v1561_v49  ;;  %vm5867_vm13 = vmor %vm1613_vm11, %vm1614_vm7 }
 0x1c7   : > { %v5860_v55 = vpop.eup %3451  ;;  %v1572_v60 = vmul.f32 %v5687_v7, %v1571_v6  ;;  %vm1574_vm12 = vweird.f32 %v5687_v7  ;;  %v1600_v32 = vmul.f32 0.5, %v1599_v34  ;;  %vm1594_vm14 = vweird.f32 %v5667_v1  ;;  %v1988_v6 = vld [vmem:[%s5157_s19 + $0xf8] sm:$0xff] }
 0x1c8   : > { %2211 = vperm.xlu1 %3372, %v2047_v18   ;;  %v1649_v62 = vmul.f32 %v5809_v43, %v1648_v24  ;;  %v1629_v3 = vmul.f32 %v5817_v36, %v1628_v39  ;;  %v5874_v59 = vadd.f32 1e-05, %v1208_v46  ;;  %v1616_v49 = vsel %vm5867_vm13, %v5681_v15, %v1612_v38  ;;  %vm5903_vm2 = vmor %vm1573_vm9, %vm1574_vm12  ;;  %v1983_v38 = vld [vmem:[%s5157_s19 + $0xd0] sm:$0xff]  ;;  %v1984_v39 = vld [vmem:[%s5157_s19 + $0xd8] sm:$0xff] }
 0x1c9   : > { %v5780_v8 = vpop.xlane.xlu2 %1127  ;;  %v5889_v54 = vmul.f32 %v5667_v1, %v1591_v25  ;;  %v5891_v45 = vmul.f32 0.5, %v1619_v48  ;;  %v1669_v34 = vmul.f32 %v5829_v42, %v1668_v31  ;;  %v5894_v24 = vadd.f32 1e-05, %v1204_v27 }
 0x1ca   : > { %v5896_v12 = vpop.xlane.xlu1 %1123  ;;  %vm1593_vm1 = vweird.f32 %v5572_v28  ;;  %v1641_v15 = vsub.f32 1.5, %v1640_v56  ;;  %v1678_v25 = vmul.f32 %v5860_v55, %v5786_v0  ;;  %3457 = vrsqrt.f32 %v5857_v22 }
 0x1cb   : > { %v5843_v50 = vpop.xlane.xlu0 %1119  ;;  %v1209_v37 = vmul.f32 0.0051020407, %v5492_v47  ;;  %v5913_v46 = vpop.eup %3453  ;;  %vm1603_vm3 = vweird.f32 %v5692_v21  ;;  %v1207_v40 = vmul.f32 0.0051020407, %v5499_v44  ;;  %v2054_v18 = vmul.f32 %v1988_v6, %v1616_v49  ;;  %vm1595_vm11 = vmor %vm1593_vm1, %vm1594_vm14 }
 0x1cc   : > { %v1566_v48 = vsel %vm5884_vm15, %v5640_v51, %v1562_v14  ;;  %v1576_v31 = vsel %vm5903_vm2, %v5687_v7, %v1572_v60  ;;  %v5923_v27 = vpop.eup %3455  ;;  %v1601_v47 = vsub.f32 1.5, %v1600_v32  ;;  %v5925_v56 = vmul.f32 0.5, %v1649_v62 }
 0x1cd   : > { %v5927_v26 = vmul.f32 0.5, %v1629_v3  ;;  %3459 = vrsqrt.f32 %v5874_v59  ;;  %v1670_v44 = vmul.f32 0.5, %v1669_v34  ;;  %2246 = vperm.xlu0 %3371, %v2054_v18   ;;  %v2049_v51 = vmul.f32 %v1983_v38, %v1566_v48  ;;  %v1991_v38 = vld [vmem:[%s5157_s19 + $0x110] sm:$0xff]  ;;  %v1986_v18 = vld [vmem:[%s5157_s19 + $0xe8] sm:$0xff] }
 0x1ce   : > { %3461 = vrsqrt.f32 %v5894_v24  ;;  %v2050_v14 = vmul.f32 %v1984_v39, %v1576_v31  ;;  %v1642_v7 = vmul.f32 %v5766_v52, %v1641_v15  ;;  %vm1644_vm4 = vweird.f32 %v5766_v52 }
 0x1cf   : > { %v5937_v60 = vadd.f32 1e-05, %v1209_v37  ;;  %v1211_v32 = vmul.f32 0.0051020407, %v5625_v41  ;;  %v1679_v62 = vmul.f32 %v5860_v55, %v1678_v25  ;;  %v1658_v3 = vmul.f32 %v5913_v46, %v5826_v16  ;;  %2221 = vperm.xlu2 %3373, %v2049_v51  }
 0x1d0   : > { %v1698_v6 = vmul.f32 %v5923_v27, %v5836_v53  ;;  %v5945_v57 = vadd.f32 1e-05, %v1207_v40  ;;  %2226 = vperm.xlu1 %3372, %v2050_v14   ;;  %v5947_v34 = vpop.eup %3457  ;;  %v1621_v63 = vsub.f32 1.5, %v5891_v45  ;;  %vm1624_vm5 = vweird.f32 %v5782_v33 }
 0x1d1   : > { %v5849_v19 = vpop.xlane.xlu2 %1139  ;;  %vm1604_vm6 = vweird.f32 %v5774_v61  ;;  %vm1643_vm7 = vweird.f32 %v5670_v10  ;;  %v1602_v41 = vmul.f32 %v5774_v61, %v1601_v47  ;;  %v1651_v15 = vsub.f32 1.5, %v5925_v56 }
 0x1d2   : > { %vm5957_vm8 = vmor %vm1643_vm7, %vm1644_vm4  ;;  %v1631_v37 = vsub.f32 1.5, %v5927_v26  ;;  %v1671_v45 = vsub.f32 1.5, %v1670_v44  ;;  %vm1623_vm9 = vweird.f32 %v5690_v2  ;;  %vm1674_vm10 = vweird.f32 %v5829_v42  ;;  %v5985_v26 = vpop.xlane.xlu1 %1135  ;;  %v1987_v44 = vld [vmem:[%s5157_s19 + $0xf0] sm:$0xff] }
 0x1d3   : > { %v5933_v49 = vpop.xlane.xlu0 %1131  ;;  %v5963_v39 = vpop.eup %3459  ;;  %3463 = vrsqrt.f32 %v5937_v60  ;;  %v5968_v10 = vadd.f32 1e-05, %v1211_v32  ;;  %v1646_v40 = vsel %vm5957_vm8, %v5766_v52, %v1642_v7  ;;  %v5980_v31 = vmul.f32 0.5, %v1679_v62  ;;  %vm1605_vm12 = vmor %vm1603_vm3, %vm1604_vm6 }
 0x1d4   : > { %v5974_v48 = vpop.eup %3461  ;;  %v1659_v47 = vmul.f32 %v5913_v46, %v1658_v3  ;;  %v1699_v56 = vmul.f32 %v5923_v27, %v1698_v6  ;;  %3465 = vrsqrt.f32 %v5945_v57  ;;  %v1708_v28 = vmul.f32 %v5947_v34, %v5857_v22  ;;  %vm6047_vm3 = vmor %vm1623_vm9, %vm1624_vm5 }
 0x1d5   : > { %v1214_v52 = vmul.f32 0.0051020407, %v5717_v29  ;;  %v2057_v51 = vmul.f32 %v1991_v38, %v1646_v40  ;;  %v1596_v14 = vsel %vm1595_vm11, %v5667_v1, %v5889_v54  ;;  %v1672_v32 = vmul.f32 %v5829_v42, %v1671_v45 }
 0x1d6   : > { %v1728_v62 = vmul.f32 %v5963_v39, %v5874_v59  ;;  %v2052_v3 = vmul.f32 %v1986_v18, %v1596_v14  ;;  %v1606_v21 = vsel %vm1605_vm12, %v5774_v61, %v1602_v41  ;;  %v1688_v6 = vmul.f32 %v5974_v48, %v5894_v24 }
 0x1d7   : > { %v1212_v25 = vmul.f32 0.0051020407, %v5555_v13  ;;  %3467 = vrsqrt.f32 %v5968_v10  ;;  %2261 = vperm.xlu0 %3371, %v2057_v51   ;;  %v2053_v29 = vmul.f32 %v1987_v44, %v1606_v21  ;;  %vm1633_vm13 = vweird.f32 %v5737_v30  ;;  %v1989_v21 = vld [vmem:[%s5157_s19 + $0x100] sm:$0xff] }
 0x1d8   : > { %v6008_v1 = vmul.f32 0.5, %v1659_v47  ;;  %v1700_v54 = vmul.f32 0.5, %v1699_v56  ;;  %v1210_v45 = vmul.f32 0.0051020407, %v5567_v17  ;;  %2236 = vperm.xlu2 %3373, %v2052_v3   ;;  %v1622_v41 = vmul.f32 %v5782_v33, %v1621_v63 }
 0x1d9   : > { %v5930_v4 = vpop.xlane.xlu2 %1151  ;;  %v6013_v61 = vpop.eup %3463  ;;  %vm1634_vm14 = vweird.f32 %v5817_v36  ;;  %vm1673_vm15 = vweird.f32 %v5750_v5  ;;  %v6018_v13 = vadd.f32 1e-05, %v1214_v52  ;;  %2241 = vperm.xlu1 %3372, %v2053_v29   ;;  %v6023_v18 = vmul.f32 %v5809_v43, %v1651_v15 }
 0x1da   : > { %v6020_v40 = vpop.eup %3465  ;;  %v1632_v17 = vmul.f32 %v5817_v36, %v1631_v37  ;;  %v1681_v47 = vsub.f32 1.5, %v5980_v31  ;;  %vm6029_vm1 = vmor %vm1673_vm15, %vm1674_vm10  ;;  %v1729_v5 = vmul.f32 %v5963_v39, %v1728_v62  ;;  %vm1654_vm2 = vweird.f32 %v5809_v43  ;;  %v1994_v31 = vld [vmem:[%s5157_s19 + $0x128] sm:$0xff]  ;;  %v6079_v29 = vpop.xlane.xlu1 %1147 }
 0x1db   : > { %v6011_v38 = vpop.xlane.xlu0 %1143  ;;  %v1709_v56 = vmul.f32 %v5947_v34, %v1708_v28  ;;  %v1689_v44 = vmul.f32 %v5974_v48, %v1688_v6  ;;  %v6037_v15 = vadd.f32 1e-05, %v1212_v25  ;;  %v1676_v37 = vsel %vm6029_vm1, %v5829_v42, %v1672_v32  ;;  %vm6062_vm7 = vmor %vm1633_vm13, %vm1634_vm14  ;;  %v6074_v6 = vld [vmem:[%s5157_s19 + $0x108] sm:$0xff] }
 0x1dc   : > { %v1661_v28 = vsub.f32 1.5, %v6008_v1  ;;  %v1701_v51 = vsub.f32 1.5, %v1700_v54  ;;  %vm1704_vm4 = vweird.f32 %v5923_v27  ;;  %v6053_v14 = vadd.f32 1e-05, %v1210_v45 }
 0x1dd   : > { %v6055_v62 = vpop.eup %3467  ;;  %vm1653_vm6 = vweird.f32 %v5721_v35  ;;  %v1738_v42 = vmul.f32 %v6013_v61, %v5937_v60  ;;  %v1718_v32 = vmul.f32 %v6020_v40, %v5945_v57  ;;  %v1215_v3 = vmul.f32 0.0051020407, %v5634_v20 }
 0x1de   : > { %3469 = vrsqrt.f32 %v6018_v13  ;;  %vm1663_vm5 = vweird.f32 %v5826_v16  ;;  %v1730_v30 = vmul.f32 0.5, %v1729_v5  ;;  %v2060_v1 = vmul.f32 %v1994_v31, %v1676_v37  ;;  %vm1655_vm15 = vmor %vm1653_vm6, %vm1654_vm2 }
 0x1df   : > { %v1626_v54 = vsel %vm6047_vm3, %v5782_v33, %v1622_v41  ;;  %v1636_v20 = vsel %vm6062_vm7, %v5817_v36, %v1632_v17  ;;  %v6087_v45 = vmul.f32 0.5, %v1709_v56  ;;  %v6089_v63 = vmul.f32 0.5, %v1689_v44 }
 0x1e0   : > { %3471 = vrsqrt.f32 %v6037_v15  ;;  %v1758_v5 = vmul.f32 %v6055_v62, %v5968_v10  ;;  %2276 = vperm.xlu0 %3371, %v2060_v1   ;;  %v2055_v37 = vmul.f32 %v1989_v21, %v1626_v54  ;;  %v2056_v33 = vmul.f32 %v6074_v6, %v1636_v20  ;;  %v6140_v1 = vld [vmem:[%s5157_s19 + $0x118] sm:$0xff] }
 0x1e1   : > { %v5997_v7 = vpop.xlane.xlu2 %1163  ;;  %3473 = vrsqrt.f32 %v6053_v14  ;;  %v1702_v41 = vmul.f32 %v5923_v27, %v1701_v51  ;;  %v1739_v36 = vmul.f32 %v6013_v61, %v1738_v42  ;;  %v6099_v17 = vadd.f32 1e-05, %v1215_v3 }
 0x1e2   : > { %v1213_v56 = vmul.f32 0.0051020407, %v5665_v58  ;;  %vm1684_vm8 = vweird.f32 %v5860_v55  ;;  %vm1703_vm9 = vweird.f32 %v5836_v53  ;;  %v1719_v44 = vmul.f32 %v6020_v40, %v1718_v32  ;;  %2251 = vperm.xlu2 %3373, %v2055_v37   ;;  %2256 = vperm.xlu1 %3372, %v2056_v33   ;;  %v1997_v32 = vld [vmem:[%s5157_s19 + $0x140] sm:$0xff] }
 0x1e3   : > { %v6105_v31 = vpop.xlane.xlu0 %1155  ;;  %v6110_v51 = vmul.f32 %v5860_v55, %v1681_v47  ;;  %vm1683_vm10 = vweird.f32 %v5786_v0  ;;  %v1662_v58 = vmul.f32 %v5913_v46, %v1661_v28  ;;  %vm1664_vm11 = vweird.f32 %v5913_v46  ;;  %vm6120_vm12 = vmor %vm1703_vm9, %vm1704_vm4 }
 0x1e4   : > { %v6107_v52 = vpop.eup %3469  ;;  %v1711_v2 = vsub.f32 1.5, %v6087_v45  ;;  %v1691_v47 = vsub.f32 1.5, %v6089_v63  ;;  %vm1693_vm13 = vweird.f32 %v5894_v24  ;;  %vm1694_vm14 = vweird.f32 %v5974_v48  ;;  %vm1665_vm3 = vmor %vm1663_vm5, %vm1664_vm11 }
 0x1e5   : > { %v1759_v28 = vmul.f32 %v6055_v62, %v1758_v5  ;;  %v6131_v21 = vmul.f32 0.5, %v1739_v36  ;;  %3475 = vrsqrt.f32 %v6099_v17  ;;  %vm1734_vm1 = vweird.f32 %v5963_v39  ;;  %v6157_v5 = vld [vmem:[%s5157_s19 + $0x120] sm:$0xff]  ;;  %vm6205_vm11 = vmor %vm1683_vm10, %vm1684_vm8 }
 0x1e6   : > { %v6129_v3 = vpop.eup %3471  ;;  %v6152_v63 = vmul.f32 0.5, %v1719_v44  ;;  %v1220_v35 = vmul.f32 0.0051020407, %v5896_v12  ;;  %v1656_v33 = vsel %vm1655_vm15, %v5809_v43, %v6023_v18  ;;  %v1216_v36 = vmul.f32 0.0051020407, %v5764_v11  ;;  %vm6224_vm8 = vmor %vm1693_vm13, %vm1694_vm14 }
 0x1e7   : > { %v6144_v20 = vpop.eup %3473  ;;  %v1666_v44 = vsel %vm1665_vm3, %v5913_v46, %v1662_v58  ;;  %vm1714_vm2 = vweird.f32 %v5947_v34  ;;  %v1768_v16 = vmul.f32 %v6129_v3, %v6037_v15  ;;  %v6180_v11 = vmul.f32 %v5947_v34, %v1711_v2 }
 0x1e8   : > { %v1748_v12 = vmul.f32 %v6144_v20, %v6053_v14  ;;  %v2059_v43 = vmul.f32 %v6157_v5, %v1666_v44  ;;  %v1692_v18 = vmul.f32 %v5974_v48, %v1691_v47  ;;  %vm1733_vm4 = vweird.f32 %v5874_v59  ;;  %v6249_v44 = vld [vmem:[%s5157_s19 + $0x138] sm:$0xff] }
 0x1e9   : > { %v6076_v25 = vpop.permute.xlu2 %2101  ;;  %v1218_v46 = vmul.f32 0.0051020407, %v5702_v23  ;;  %vm1713_vm6 = vweird.f32 %v5857_v22  ;;  %vm6192_vm7 = vmor %vm1733_vm4, %vm1734_vm1  ;;  %vm1724_vm5 = vweird.f32 %v6020_v40  ;;  %vm1763_vm9 = vweird.f32 %v5968_v10 }
 0x1ea   : > { %7946 = vst [vmem:[#allocation134_spill] sm:$0xff] %v6076_v25  ;;  %v1217_v25 = vmul.f32 0.0051020407, %v5803_v9  ;;  %v1731_v9 = vsub.f32 1.5, %v1730_v30  ;;  %v1706_v30 = vsel %vm6120_vm12, %v5923_v27, %v1702_v41  ;;  %v1788_v27 = vmul.f32 %v6107_v52, %v6018_v13  ;;  %2271 = vperm.xlu1 %3372, %v2059_v43   ;;  %vm6287_vm1 = vmor %vm1713_vm6, %vm1714_vm2 }
 0x1eb   : > { %v2063_v37 = vmul.f32 %v1997_v32, %v1706_v30  ;;  %v1760_v41 = vmul.f32 0.5, %v1759_v28  ;;  %v6187_v42 = vpop.eup %3475  ;;  %v6199_v59 = vadd.f32 1e-05, %v1220_v35  ;;  %v1741_v47 = vsub.f32 1.5, %v6131_v21  ;;  %v6216_v35 = vld [vmem:[%s5157_s19 + $0x158] sm:$0xff] }
 0x1ec   : > { %v6115_v53 = vadd.f32 1e-05, %v1217_v25  ;;  %v6134_v25 = vadd.f32 1e-05, %v1213_v56  ;;  %v1732_v45 = vmul.f32 %v5963_v39, %v1731_v9  ;;  %v6168_v56 = vpop.xlane.xlu1 %1159  ;;  %v2058_v9 = vmul.f32 %v6140_v1, %v1656_v33 }
 0x1ed   : > { %2291 = vperm.xlu0 %3371, %v2063_v37   ;;  %v1789_v23 = vmul.f32 %v6107_v52, %v1788_v27  ;;  %v1761_v32 = vsub.f32 1.5, %v1760_v41  ;;  %v6210_v30 = vadd.f32 1e-05, %v1216_v36  ;;  %v1721_v21 = vsub.f32 1.5, %v6152_v63 }
 0x1ee   : > { %3477 = vrsqrt.f32 %v6115_v53  ;;  %2266 = vperm.xlu2 %3373, %v2058_v9   ;;  %v1736_v27 = vsel %vm6192_vm7, %v5963_v39, %v1732_v45  ;;  %v1769_v33 = vmul.f32 %v6129_v3, %v1768_v16  ;;  %v1749_v41 = vmul.f32 %v6144_v20, %v1748_v12  ;;  %v6236_v45 = vld [vmem:[%s5157_s19 + $0x130] sm:$0xff] }
 0x1ef   : > { %3479 = vrsqrt.f32 %v6134_v25  ;;  %v1686_v39 = vsel %vm6205_vm11, %v5860_v55, %v6110_v51  ;;  %vm1764_vm10 = vweird.f32 %v6055_v62  ;;  %v1798_v24 = vmul.f32 %v6187_v42, %v6099_v17 }
 0x1f0   : > { %v6243_v9 = vadd.f32 1e-05, %v1218_v46  ;;  %v1696_v63 = vsel %vm6224_vm8, %v5974_v48, %v1692_v18  ;;  %v1790_v55 = vmul.f32 0.5, %v1789_v23  ;;  %3481 = vrsqrt.f32 %v6199_v59  ;;  %vm6277_vm15 = vmor %vm1763_vm9, %vm1764_vm10 }
 0x1f1   : > { %v6142_v54 = vpop.permute.xlu2 %2106  ;;  %v1223_v51 = vmul.f32 0.0051020407, %v5985_v26  ;;  %v2066_v12 = vmul.f32 %v6216_v35, %v1736_v27  ;;  %v1762_v43 = vmul.f32 %v6055_v62, %v1761_v32  ;;  %3483 = vrsqrt.f32 %v6210_v30 }
 0x1f2   : > { %v2061_v48 = vmul.f32 %v6236_v45, %v1686_v39  ;;  %v1770_v28 = vmul.f32 0.5, %v1769_v33  ;;  %v1750_v2 = vmul.f32 0.5, %v1749_v41  ;;  %v1219_v23 = vmul.f32 0.0051020407, %v5843_v50 }
 0x1f3   : > { %v2062_v26 = vmul.f32 %v6249_v44, %v1696_v63  ;;  %v1722_v27 = vmul.f32 %v6020_v40, %v1721_v21  ;;  %v1799_v32 = vmul.f32 %v6187_v42, %v1798_v24  ;;  %3485 = vrsqrt.f32 %v6243_v9  ;;  %v6301_v63 = vld [vmem:[%s5157_s19 + $0x170] sm:$0xff] }
 0x1f4   : > { %v6218_v37 = vpop.eup %3477  ;;  %vm1743_vm12 = vweird.f32 %v5937_v60  ;;  %vm1744_vm13 = vweird.f32 %v6013_v61  ;;  %vm1723_vm14 = vweird.f32 %v5945_v57  ;;  %v1791_v21 = vsub.f32 1.5, %v1790_v55 }
 0x1f5   : > { %v6251_v16 = vpop.eup %3479  ;;  %v1818_v46 = vmul.f32 %v6218_v37, %v6115_v53  ;;  %2306 = vperm.xlu0 %3371, %v2066_v12   ;;  %v6281_v33 = vadd.f32 1e-05, %v1223_v51  ;;  %2286 = vperm.xlu1 %3372, %v2062_v26   ;;  %v6292_v57 = vmul.f32 %v6013_v61, %v1741_v47  ;;  %vm1753_vm3 = vweird.f32 %v6053_v14  ;;  %vm6309_vm2 = vmor %vm1723_vm14, %vm1724_vm5 }
 0x1f6   : > { %v6185_v58 = vpop.permute.xlu0 %2091  ;;  %v1778_v0 = vmul.f32 %v6251_v16, %v6134_v25  ;;  %2281 = vperm.xlu2 %3373, %v2061_v48   ;;  %v1221_v39 = vmul.f32 0.0051020407, %v5780_v8  ;;  %v1766_v24 = vsel %vm6277_vm15, %v6055_v62, %v1762_v43  ;;  %v6305_v55 = vpop.eup %3481  ;;  %v1771_v51 = vsub.f32 1.5, %v1770_v28  ;;  %v6320_v43 = vld [vmem:[%s5157_s19 + $0x148] sm:$0xff]  ;;  %vm6377_vm10 = vmor %vm1743_vm12, %vm1744_vm13 }
 0x1f7   : > { %v1819_v10 = vmul.f32 %v6218_v37, %v1818_v46  ;;  %v1751_v12 = vsub.f32 1.5, %v1750_v2  ;;  %v6313_v8 = vadd.f32 1e-05, %v1219_v23  ;;  %v1716_v62 = vsel %vm6287_vm1, %v5947_v34, %v6180_v11  ;;  %v6322_v46 = vpop.eup %3483  ;;  %v6332_v2 = vld [vmem:[%s5157_s19 + $0x150] sm:$0xff] }
 0x1f8   : > { %v6324_v48 = vmul.f32 0.5, %v1799_v32  ;;  %vm1794_vm4 = vweird.f32 %v6107_v52  ;;  %v1779_v26 = vmul.f32 %v6251_v16, %v1778_v0  ;;  %v1726_v28 = vsel %vm6309_vm2, %v6020_v40, %v1722_v27 }
 0x1f9   : > { %v6238_v36 = vpop.permute.xlu2 %2116  ;;  %v1792_v34 = vmul.f32 %v6107_v52, %v1791_v21  ;;  %3487 = vrsqrt.f32 %v6281_v33  ;;  %v1226_v11 = vmul.f32 0.0051020407, %v6079_v29  ;;  %v2069_v32 = vmul.f32 %v6301_v63, %v1766_v24  ;;  %v6340_v50 = vpop.eup %3485 }
 0x1fa   : > { %7955 = vst [vmem:[#allocation135_spill] sm:$0xff] %v6238_v36  ;;  %v6261_v18 = vpop.permute.xlu1 %2096  ;;  %v1820_v41 = vmul.f32 0.5, %v1819_v10  ;;  %v6342_v0 = vadd.f32 1e-05, %v1221_v39  ;;  %v1848_v40 = vmul.f32 %v6305_v55, %v6199_v59  ;;  %v2064_v27 = vmul.f32 %v6320_v43, %v1716_v62 }
 0x1fb   : > { %vm1774_vm6 = vweird.f32 %v6129_v3  ;;  %v1808_v21 = vmul.f32 %v6322_v46, %v6210_v30  ;;  %3489 = vrsqrt.f32 %v6313_v8  ;;  %v1222_v29 = vmul.f32 0.0051020407, %v5933_v49  ;;  %v6417_v49 = vld [vmem:[%s5157_s19 + $0x168] sm:$0xff] }
 0x1fc   : > { %v2065_v24 = vmul.f32 %v6332_v2, %v1726_v28  ;;  %v1752_v10 = vmul.f32 %v6144_v20, %v1751_v12  ;;  %vm1754_vm7 = vweird.f32 %v6144_v20  ;;  %vm1793_vm5 = vweird.f32 %v6018_v13 }
 0x1fd   : > { %2321 = vperm.xlu0 %3371, %v2069_v32   ;;  %v1780_v39 = vmul.f32 0.5, %v1779_v26  ;;  %v6359_v62 = vmul.f32 %v6129_v3, %v1771_v51  ;;  %vm1773_vm9 = vweird.f32 %v6037_v15  ;;  %vm6364_vm11 = vmor %vm1793_vm5, %vm1794_vm4  ;;  %v1828_v12 = vmul.f32 %v6340_v50, %v6243_v9 }
 0x1fe   : > { %v6303_v22 = vpop.permute.xlu0 %2126  ;;  %2296 = vperm.xlu2 %3373, %v2064_v27   ;;  %vm1823_vm8 = vweird.f32 %v6115_v53  ;;  %v6371_v13 = vadd.f32 1e-05, %v1226_v11  ;;  %2301 = vperm.xlu1 %3372, %v2065_v24   ;;  %v1801_v26 = vsub.f32 1.5, %v6324_v48  ;;  %vm1783_vm14 = vweird.f32 %v6134_v25  ;;  %v6388_v27 = vld [vmem:[%s5157_s19 + $0x188] sm:$0xff]  ;;  %vm6396_vm12 = vmor %vm1753_vm3, %vm1754_vm7 }
 0x1ff   : > { %v1821_v28 = vsub.f32 1.5, %v1820_v41  ;;  %v1849_v32 = vmul.f32 %v6305_v55, %v1848_v40  ;;  %v1796_v11 = vsel %vm6364_vm11, %v6107_v52, %v1792_v34  ;;  %7967 = vst [vmem:[#allocation137_spill] sm:$0xff] %v6388_v27  ;;  %v6390_v24 = vpop.eup %3487  ;;  %v1809_v48 = vmul.f32 %v6322_v46, %v1808_v21  ;;  %v6409_v34 = vld [vmem:[%s5157_s19 + $0x160] sm:$0xff]  ;;  %vm6463_vm4 = vmor %vm1773_vm9, %vm1774_vm6 }
 0x200   : > { %3491 = vrsqrt.f32 %v6342_v0  ;;  %v6402_v41 = vadd.f32 1e-05, %v1222_v29  ;;  %v1746_v52 = vsel %vm6377_vm10, %v6013_v61, %v6292_v57  ;;  %v1781_v40 = vsub.f32 1.5, %v1780_v39 }
 0x201   : > { %v6334_v23 = vpop.permute.xlu2 %2131  ;;  %vm1824_vm13 = vweird.f32 %v6218_v37  ;;  %v1224_v14 = vmul.f32 0.0051020407, %v5849_v19  ;;  %v1756_v21 = vsel %vm6396_vm12, %v6144_v20, %v1752_v10  ;;  %v1829_v51 = vmul.f32 %v6340_v50, %v1828_v12 }
 0x202   : > { %7962 = vst [vmem:[#allocation136_spill] sm:$0xff] %v6334_v23  ;;  %v6356_v47 = vpop.permute.xlu1 %2111  ;;  %v6421_v23 = vpop.eup %3489  ;;  %3493 = vrsqrt.f32 %v6371_v13  ;;  %v1229_v61 = vmul.f32 0.0051020407, %v6168_v56  ;;  %v2072_v57 = vmul.f32 %v6388_v27, %v1796_v11  ;;  %v1822_v19 = vmul.f32 %v6218_v37, %v1821_v28  ;;  %vm6452_vm3 = vmor %vm1823_vm8, %vm1824_vm13 }
 0x203   : > { %v1850_v39 = vmul.f32 0.5, %v1849_v32  ;;  %v1878_v20 = vmul.f32 %v6390_v24, %v6281_v33  ;;  %v2067_v10 = vmul.f32 %v6409_v34, %v1746_v52  ;;  %v1810_v36 = vmul.f32 0.5, %v1809_v48 }
 0x204   : > { %3495 = vrsqrt.f32 %v6402_v41  ;;  %v1225_v12 = vmul.f32 0.0051020407, %v6011_v38  ;;  %v2068_v56 = vmul.f32 %v6417_v49, %v1756_v21  ;;  %v1782_v11 = vmul.f32 %v6251_v16, %v1781_v40 }
 0x205   : > { %2336 = vperm.xlu0 %3371, %v2072_v57   ;;  %vm1784_vm15 = vweird.f32 %v6251_v16  ;;  %v1838_v28 = vmul.f32 %v6421_v23, %v6313_v8  ;;  %v6440_v32 = vadd.f32 1e-05, %v1224_v14  ;;  %v6445_v48 = vmul.f32 %v6187_v42, %v1801_v26 }
 0x206   : > { %v6419_v29 = vpop.permute.xlu0 %2141  ;;  %2311 = vperm.xlu2 %3373, %v2067_v10   ;;  %v6442_v52 = vpop.eup %3491  ;;  %vm1804_vm1 = vweird.f32 %v6187_v42  ;;  %vm1814_vm2 = vweird.f32 %v6322_v46  ;;  %v6457_v40 = vadd.f32 1e-05, %v1229_v61  ;;  %2316 = vperm.xlu1 %3372, %v2068_v56   ;;  %v1830_v14 = vmul.f32 0.5, %v1829_v51  ;;  %v6472_v61 = vld [vmem:[%s5157_s19 + $0x1a0] sm:$0xff]  ;;  %vm6482_vm6 = vmor %vm1783_vm14, %vm1784_vm15 }
 0x207   : > { %v1851_v53 = vsub.f32 1.5, %v1850_v39  ;;  %v1879_v21 = vmul.f32 %v6390_v24, %v1878_v20  ;;  %v1826_v57 = vsel %vm6452_vm3, %v6218_v37, %v1822_v19  ;;  %7975 = vst [vmem:[#allocation139_spill] sm:$0xff] %v6472_v61  ;;  %v1811_v51 = vsub.f32 1.5, %v1810_v36  ;;  %v6494_v19 = vld [vmem:[%s5157_s19 + $0x178] sm:$0xff] }
 0x208   : > { %v6476_v56 = vpop.eup %3493  ;;  %vm1853_vm7 = vweird.f32 %v6199_v59  ;;  %v6487_v39 = vadd.f32 1e-05, %v1225_v12  ;;  %v1776_v37 = vsel %vm6463_vm4, %v6129_v3, %v6359_v62  ;;  %v1858_v20 = vmul.f32 %v6442_v52, %v6342_v0  ;;  %v6504_v12 = vld [vmem:[%s5157_s19 + $0x180] sm:$0xff] }
 0x209   : > { %v6431_v60 = vpop.permute.xlu2 %2146  ;;  %v1839_v25 = vmul.f32 %v6421_v23, %v1838_v28  ;;  %3497 = vrsqrt.f32 %v6440_v32  ;;  %v1786_v36 = vsel %vm6482_vm6, %v6251_v16, %v1782_v11  ;;  %vm1854_vm5 = vweird.f32 %v6305_v55 }
 0x20a   : > { %7970 = vst [vmem:[#allocation138_spill] sm:$0xff] %v6431_v60  ;;  %v6474_v10 = vpop.permute.xlu1 %2121  ;;  %v6506_v38 = vpop.eup %3495  ;;  %v1227_v3 = vmul.f32 0.0051020407, %v5930_v4  ;;  %3499 = vrsqrt.f32 %v6457_v40  ;;  %v2075_v62 = vmul.f32 %v6472_v61, %v1826_v57  ;;  %v1852_v28 = vmul.f32 %v6305_v55, %v1851_v53  ;;  %vm6532_vm11 = vmor %vm1853_vm7, %vm1854_vm5 }
 0x20b   : > { %v1880_v26 = vmul.f32 0.5, %v1879_v21  ;;  %v1908_v60 = vmul.f32 %v6476_v56, %v6371_v13  ;;  %v2070_v16 = vmul.f32 %v6494_v19, %v1776_v37  ;;  %v1831_v27 = vsub.f32 1.5, %v1830_v14 }
 0x20c   : > { %3501 = vrsqrt.f32 %v6487_v39  ;;  %v1228_v4 = vmul.f32 0.0051020407, %v6105_v31  ;;  %v2071_v57 = vmul.f32 %v6504_v12, %v1786_v36  ;;  %v1812_v53 = vmul.f32 %v6322_v46, %v1811_v51  ;;  %v6552_v36 = vld [vmem:[%s5157_s19 + $0x1b8] sm:$0xff] }
 0x20d   : > { %2351 = vperm.xlu0 %3371, %v2075_v62   ;;  %v1859_v21 = vmul.f32 %v6442_v52, %v1858_v20  ;;  %v1840_v61 = vmul.f32 0.5, %v1839_v25  ;;  %v1868_v37 = vmul.f32 %v6506_v38, %v6402_v41  ;;  %vm1803_vm9 = vweird.f32 %v6099_v17  ;;  %7983 = vst [vmem:[#allocation141_spill] sm:$0xff] %v6552_v36  ;;  %v6578_v31 = vld [vmem:[%s5157_s19 + $0x198] sm:$0xff] }
 0x20e   : > { %v6516_v11 = vpop.permute.xlu0 %2156  ;;  %2326 = vperm.xlu2 %3373, %v2070_v16   ;;  %v6536_v14 = vadd.f32 1e-05, %v1227_v3  ;;  %2331 = vperm.xlu1 %3372, %v2071_v57   ;;  %vm6542_vm8 = vmor %vm1803_vm9, %vm1804_vm1  ;;  %vm1813_vm10 = vweird.f32 %v6210_v30  ;;  %v1881_v17 = vsub.f32 1.5, %v1880_v26  ;;  %v1909_v59 = vmul.f32 %v6476_v56, %v1908_v60  ;;  %v6571_v60 = vld [vmem:[%s5157_s19 + $0x190] sm:$0xff] }
 0x20f   : > { %v6538_v51 = vpop.eup %3497  ;;  %v1856_v25 = vsel %vm6532_vm11, %v6305_v55, %v1852_v28  ;;  %v1832_v62 = vmul.f32 %v6340_v50, %v1831_v27  ;;  %vm1834_vm14 = vweird.f32 %v6340_v50  ;;  %vm6560_vm12 = vmor %vm1813_vm10, %vm1814_vm2  ;;  %v6564_v26 = vadd.f32 1e-05, %v1228_v4 }
 0x210   : > { %v6554_v3 = vpop.eup %3499  ;;  %v1806_v55 = vsel %vm6542_vm8, %v6187_v42, %v6445_v48  ;;  %v1860_v28 = vmul.f32 0.5, %v1859_v21  ;;  %v1841_v16 = vsub.f32 1.5, %v1840_v61  ;;  %v1869_v27 = vmul.f32 %v6506_v38, %v1868_v37 }
 0x211   : > { %v6518_v15 = vpop.permute.xlu2 %2161  ;;  %v1816_v57 = vsel %vm6560_vm12, %v6322_v46, %v1812_v53  ;;  %vm1884_vm13 = vweird.f32 %v6390_v24  ;;  %3503 = vrsqrt.f32 %v6536_v14  ;;  %v1230_v42 = vmul.f32 0.0051020407, %v5997_v7 }
 0x212   : > { %7978 = vst [vmem:[#allocation140_spill] sm:$0xff] %v6518_v15  ;;  %v6580_v15 = vpop.permute.xlu1 %2136  ;;  %v6582_v4 = vpop.eup %3501  ;;  %v2078_v48 = vmul.f32 %v6552_v36, %v1856_v25  ;;  %v1882_v61 = vmul.f32 %v6390_v24, %v1881_v17  ;;  %v1910_v21 = vmul.f32 0.5, %v1909_v59  ;;  %v1938_v46 = vmul.f32 %v6554_v3, %v6457_v40 }
 0x213   : > { %v2073_v53 = vmul.f32 %v6571_v60, %v1806_v55  ;;  %v1888_v20 = vmul.f32 %v6538_v51, %v6440_v32  ;;  %vm1883_vm15 = vweird.f32 %v6281_v33  ;;  %3505 = vrsqrt.f32 %v6564_v26  ;;  %v6648_v55 = vld [vmem:[%s5157_s19 + $0x1b0] sm:$0xff] }
 0x214   : > { %v2074_v7 = vmul.f32 %v6578_v31, %v1816_v57  ;;  %v1842_v17 = vmul.f32 %v6421_v23, %v1841_v16  ;;  %vm1844_vm1 = vweird.f32 %v6421_v23  ;;  %v1870_v59 = vmul.f32 0.5, %v1869_v27  ;;  %vm6609_vm4 = vmor %vm1883_vm15, %vm1884_vm13 }
 0x215   : > { %2366 = vperm.xlu0 %3371, %v2078_v48   ;;  %v1898_v25 = vmul.f32 %v6582_v4, %v6487_v39  ;;  %vm1833_vm3 = vweird.f32 %v6243_v9  ;;  %v1861_v33 = vsub.f32 1.5, %v1860_v28  ;;  %vm1843_vm2 = vweird.f32 %v6313_v8  ;;  %v6626_v28 = vld [vmem:[%s5157_s19 + $0x1d0] sm:$0xff] }
 0x216   : > { %2341 = vperm.xlu2 %3373, %v2073_v53   ;;  %v6603_v30 = vpop.permute.xlu0 %2171  ;;  %2346 = vperm.xlu1 %3372, %v2074_v7   ;;  %vm6615_vm6 = vmor %vm1833_vm3, %vm1834_vm14  ;;  %v1911_v27 = vsub.f32 1.5, %v1910_v21  ;;  %v6619_v57 = vadd.f32 1e-05, %v1230_v42  ;;  %v1939_v9 = vmul.f32 %v6554_v3, %v1938_v46  ;;  %v1886_v8 = vsel %vm6609_vm4, %v6390_v24, %v1882_v61  ;;  %v6641_v46 = vld [vmem:[%s5157_s19 + $0x1a8] sm:$0xff] }
 0x217   : > { %v6628_v48 = vpop.eup %3503  ;;  %vm6632_vm7 = vmor %vm1843_vm2, %vm1844_vm1  ;;  %v1889_v21 = vmul.f32 %v6538_v51, %v1888_v20  ;;  %v1836_v42 = vsel %vm6615_vm6, %v6340_v50, %v1832_v62  ;;  %v1871_v7 = vsub.f32 1.5, %v1870_v59  ;;  %v1899_v24 = vmul.f32 %v6582_v4, %v1898_v25 }
 0x218   : > { %v1846_v61 = vsel %vm6632_vm7, %v6421_v23, %v1842_v17  ;;  %v1862_v36 = vmul.f32 %v6442_v52, %v1861_v33  ;;  %vm1864_vm5 = vweird.f32 %v6442_v52  ;;  %vm1914_vm9 = vweird.f32 %v6476_v56 }
 0x219   : > { %v6592_v37 = vpop.permute.xlu2 %2176  ;;  %v2081_v50 = vmul.f32 %v6626_v28, %v1886_v8  ;;  %v1912_v62 = vmul.f32 %v6476_v56, %v1911_v27  ;;  %3507 = vrsqrt.f32 %v6619_v57  ;;  %v1940_v20 = vmul.f32 0.5, %v1939_v9 }
 0x21a   : > { %7986 = vst [vmem:[#allocation142_spill] sm:$0xff] %v6592_v37  ;;  %v6650_v37 = vpop.eup %3505  ;;  %v2076_v59 = vmul.f32 %v6641_v46, %v1836_v42  ;;  %v6659_v23 = vpop.permute.xlu1 %2151  ;;  %v1890_v25 = vmul.f32 0.5, %v1889_v21  ;;  %vm1874_vm11 = vweird.f32 %v6506_v38  ;;  %v1918_v33 = vmul.f32 %v6628_v48, %v6536_v14  ;;  %v6689_v42 = vld [vmem:[%s5157_s19 + $0x1e8] sm:$0xff] }
 0x21b   : > { %v2077_v16 = vmul.f32 %v6648_v55, %v1846_v61  ;;  %v1872_v27 = vmul.f32 %v6506_v38, %v1871_v7  ;;  %vm1913_vm8 = vweird.f32 %v6371_v13  ;;  %v1900_v9 = vmul.f32 0.5, %v1899_v24  ;;  %v6739_v61 = vld [vmem:[%s5157_s19 + $0x200] sm:$0xff] }
 0x21c   : > { %v1928_v8 = vmul.f32 %v6650_v37, %v6564_v26  ;;  %vm1863_vm10 = vweird.f32 %v6342_v0  ;;  %vm6674_vm14 = vmor %vm1913_vm8, %vm1914_vm9  ;;  %vm1873_vm13 = vweird.f32 %v6402_v41  ;;  %v1941_v21 = vsub.f32 1.5, %v1940_v20  ;;  %v6704_v20 = vld [vmem:[%s5157_s19 + $0x1c0] sm:$0xff] }
 0x21d   : > { %2381 = vperm.xlu0 %3371, %v2081_v50   ;;  %vm6680_vm12 = vmor %vm1863_vm10, %vm1864_vm5  ;;  %v1916_v0 = vsel %vm6674_vm14, %v6476_v56, %v1912_v62  ;;  %v1891_v24 = vsub.f32 1.5, %v1890_v25  ;;  %v1919_v50 = vmul.f32 %v6628_v48, %v1918_v33  ;;  %v1901_v62 = vsub.f32 1.5, %v1900_v9 }
 0x21e   : > { %2356 = vperm.xlu2 %3373, %v2076_v59   ;;  %2361 = vperm.xlu1 %3372, %v2077_v16   ;;  %v6691_v7 = vpop.permute.xlu0 %2186  ;;  %vm6695_vm15 = vmor %vm1873_vm13, %vm1874_vm11  ;;  %v1866_v41 = vsel %vm6680_vm12, %v6442_v52, %v1862_v36  ;;  %v1929_v59 = vmul.f32 %v6650_v37, %v1928_v8  ;;  %v6713_v16 = vld [vmem:[%s5157_s19 + $0x1c8] sm:$0xff]  ;;  %v2084_v53 = vmul.f32 %v6689_v42, %v1916_v0  ;;  %vm1894_vm1 = vweird.f32 %v6538_v51 }
 0x21f   : > { %v6706_v56 = vpop.eup %3507  ;;  %v1876_v25 = vsel %vm6695_vm15, %v6506_v38, %v1872_v27  ;;  %v1942_v33 = vmul.f32 %v6554_v3, %v1941_v21  ;;  %vm1944_vm3 = vweird.f32 %v6554_v3  ;;  %v2079_v52 = vmul.f32 %v6704_v20, %v1866_v41 }
 0x220   : > { %v1892_v8 = vmul.f32 %v6538_v51, %v1891_v24  ;;  %v1920_v38 = vmul.f32 0.5, %v1919_v50  ;;  %v1948_v27 = vmul.f32 %v6706_v56, %v6619_v57  ;;  %v2080_v13 = vmul.f32 %v6713_v16, %v1876_v25 }
 0x221   : > { %v6661_v17 = vpop.permute.xlu2 %2191  ;;  %v1902_v21 = vmul.f32 %v6582_v4, %v1901_v62  ;;  %vm1904_vm2 = vweird.f32 %v6582_v4  ;;  %vm1943_vm4 = vweird.f32 %v6457_v40  ;;  %v1930_v0 = vmul.f32 0.5, %v1929_v59  ;;  %v6746_v62 = vld [vmem:[%s5157_s19 + $0x1d8] sm:$0xff] }
 0x222   : > { %v6720_v36 = vpop.permute.xlu1 %2166  ;;  %vm1893_vm6 = vweird.f32 %v6440_v32  ;;  %vm1945_vm7 = vmor %vm1943_vm4, %vm1944_vm3  ;;  %vm1903_vm9 = vweird.f32 %v6487_v39  ;;  %v1921_v40 = vsub.f32 1.5, %v1920_v38  ;;  %v1949_v41 = vmul.f32 %v6706_v56, %v1948_v27 }
 0x223   : > { %vm1895_vm5 = vmor %vm1893_vm6, %vm1894_vm1  ;;  %v1946_v24 = vsel %vm1945_vm7, %v6554_v3, %v1942_v33  ;;  %v1931_v59 = vsub.f32 1.5, %v1930_v0  ;;  %vm1924_vm8 = vweird.f32 %v6628_v48  ;;  %vm1934_vm10 = vweird.f32 %v6650_v37 }
 0x224   : > { %vm1905_vm11 = vmor %vm1903_vm9, %vm1904_vm2  ;;  %v1896_v32 = vsel %vm1895_vm5, %v6538_v51, %v1892_v8  ;;  %v2087_v39 = vmul.f32 %v6739_v61, %v1946_v24  ;;  %v1950_v38 = vmul.f32 0.5, %v1949_v41  ;;  %vm1923_vm14 = vweird.f32 %v6536_v14 }
 0x225   : > { %2396 = vperm.xlu0 %3371, %v2084_v53   ;;  %v1906_v25 = vsel %vm1905_vm11, %v6582_v4, %v1902_v21  ;;  %v6750_v53 = vld [vmem:[%s5157_s19 + $0x1e0] sm:$0xff]  ;;  %v2082_v3 = vmul.f32 %v6746_v62, %v1896_v32  ;;  %v1932_v4 = vmul.f32 %v6650_v37, %v1931_v59  ;;  %vm1925_vm12 = vmor %vm1923_vm14, %vm1924_vm8  ;;  %vm1933_vm13 = vweird.f32 %v6564_v26  ;;  %v6767_v21 = vld [vmem:[%s5157_s19 + $0x1f0] sm:$0xff] }
 0x226   : > { %2371 = vperm.xlu2 %3373, %v2079_v52   ;;  %2376 = vperm.xlu1 %3372, %v2080_v13   ;;  %v6741_v50 = vpop.permute.xlu0 %2201  ;;  %v1922_v52 = vmul.f32 %v6628_v48, %v1921_v40  ;;  %v2083_v51 = vmul.f32 %v6750_v53, %v1906_v25  ;;  %v1951_v27 = vsub.f32 1.5, %v1950_v38  ;;  %vm1935_vm15 = vmor %vm1933_vm13, %vm1934_vm10  ;;  %v6773_v40 = vld [vmem:[%s5157_s19 + $0x1f8] sm:$0xff]  ;;  %vm1954_vm1 = vweird.f32 %v6706_v56  ;;  %v3555_v59 = vld [vmem:[%s5157_s19 + $0x8] sm:$0xff] }
 0x227   : > { %v1936_v24 = vsel %vm1935_vm15, %v6650_v37, %v1932_v4  ;;  %v3600_v26 = vmov 1   ;;  %vm1953_vm3 = vweird.f32 %v6619_v57  ;;  %v3557_v57 = vld [vmem:[%s5157_s19] sm:$0xff] }
 0x228   : > { %v1926_v13 = vsel %vm1925_vm12, %v6628_v48, %v1922_v52  ;;  %v1952_v32 = vmul.f32 %v6706_v56, %v1951_v27  ;;  %v2086_v48 = vmul.f32 %v6773_v40, %v1936_v24  ;;  %vm1955_vm2 = vmor %vm1953_vm3, %vm1954_vm1  ;;  %v3558_v27 = vld [vmem:[%s5157_s19 + $0x48] sm:$0xff]  ;;  %v3559_v24 = vld [vmem:[%s5157_s19 + $0x10] sm:$0xff] }
 0x229   : > { %v6722_v9 = vpop.permute.xlu2 %2206  ;;  %v2085_v14 = vmul.f32 %v6767_v21, %v1926_v13 }
 0x22a   : > { %v6754_v33 = vpop.permute.xlu1 %2181  ;;  %v1956_v25 = vsel %vm1955_vm2, %v6706_v56, %v1952_v32 }
 0x22d   : > { %2411 = vperm.xlu0 %3371, %v2087_v39   ;;  %v6787_v39 = vld [vmem:[%s5157_s19 + $0x208] sm:$0xff] }
 0x22e   : > { %2386 = vperm.xlu2 %3373, %v2082_v3   ;;  %2391 = vperm.xlu1 %3372, %v2083_v51   ;;  %v6769_v0 = vpop.permute.xlu0 %2216  ;;  %v2088_v52 = vmul.f32 %v6787_v39, %v1956_v25  ;;  %v3556_v51 = vld [vmem:[%s5157_s19 + $0x30] sm:$0xff]  ;;  %v3562_v25 = vld [vmem:[%s5157_s19 + $0x20] sm:$0xff] }
 0x231   : > { %v6761_v8 = vpop.permute.xlu2 %2221 }
 0x232   : > { %v6776_v41 = vpop.permute.xlu1 %2196 }
 0x235   : > { %3375 = vset.pattern.permute.xlu0 %v3600_v26 }
 0x236   : > { %2558 = vperm.xlu0 %3375, %v3555_v59   ;;  %2401 = vperm.xlu2 %3373, %v2085_v14   ;;  %v6789_v3 = vpop.permute.xlu0 %2231  ;;  %v3560_v14 = vld [vmem:[%s5157_s19 + $0x18] sm:$0xff]  ;;  %v3561_v59 = vld [vmem:[%s5157_s19 + $0x60] sm:$0xff] }
 0x237   : > { %2406 = vperm.xlu1 %3372, %v2086_v48  }
 0x239   : > { %v6782_v37 = vpop.permute.xlu2 %2236 }
 0x23a   : > { %7999 = vst [vmem:[#allocation143_spill] sm:$0xff] %v6782_v37  ;;  %v6792_v38 = vpop.permute.xlu1 %2211 }
 0x23e   : > { %2583 = vperm.xlu0 %3375, %v3556_v51   ;;  %2416 = vperm.xlu2 %3373, %v2088_v52  }
 0x23f   : > { %3374 = vset.pattern.permute.xlu1 %v3600_v26  ;;  %v6798_v56 = vpop.permute.xlu0 %2246 }
 0x240   : > { %2553 = vperm.xlu1 %3374, %v3557_v57   ;;  %v3564_v57 = vld [vmem:[%s5157_s19 + $0x78] sm:$0xff] }
 0x241   : > { %v6796_v4 = vpop.permute.xlu2 %2251 }
 0x242   : > { %8000 = vst [vmem:[#allocation144_spill] sm:$0xff] %v6796_v4  ;;  %v6801_v13 = vpop.permute.xlu1 %2226 }
 0x246   : > { %2598 = vperm.xlu0 %3375, %v3558_v27   ;;  %3376 = vset.pattern.permute.xlu2 %v3600_v26  ;;  %v3563_v26 = vld [vmem:[%s5157_s19 + $0x28] sm:$0xff] }
 0x247   : > { %2563 = vperm.xlu2 %3376, %v3559_v24   ;;  %v3565_v24 = vld [vmem:[%s5157_s19 + $0x38] sm:$0xff] }
 0x248   : > { %2568 = vperm.xlu1 %3374, %v3560_v14   ;;  %v3566_v14 = vld [vmem:[%s5157_s19 + $0x40] sm:$0xff] }
 0x249   : > { %v6805_v32 = vpop.permute.xlu2 %2266  ;;  %v6807_v48 = vpop.permute.xlu0 %2261 }
 0x24a   : > { %8001 = vst [vmem:[#allocation145_spill] sm:$0xff] %v6805_v32  ;;  %v3567_v32 = vld [vmem:[%s5157_s19 + $0x90] sm:$0xff] }
 0x24b   : > { %v6811_v52 = vpop.permute.xlu1 %2241 }
 0x24e   : > { %2613 = vperm.xlu0 %3375, %v3561_v59  }
 0x24f   : > { %2573 = vperm.xlu2 %3376, %v3562_v25  }
 0x250   : > { %2578 = vperm.xlu1 %3374, %v3563_v26  }
 0x251   : > { %v6814_v51 = vpop.permute.xlu2 %2281 }
 0x252   : > { %8002 = vst [vmem:[#allocation146_spill] sm:$0xff] %v6814_v51  ;;  %v6817_v27 = vpop.permute.xlu0 %2276  ;;  %v3568_v51 = vld [vmem:[%s5157_s19 + $0x50] sm:$0xff] }
 0x253   : > { %8003 = vst [vmem:[#allocation147_spill] sm:$0xff] %v6817_v27  ;;  %v3574_v27 = vld [vmem:[%s5157_s19 + $0x80] sm:$0xff] }
 0x254   : > { %v6821_v59 = vpop.permute.xlu1 %2256 }
 0x256   : > { %2628 = vperm.xlu0 %3375, %v3564_v57   ;;  %v3569_v57 = vld [vmem:[%s5157_s19 + $0x58] sm:$0xff] }
 0x257   : > { %2588 = vperm.xlu2 %3376, %v3565_v24  }
 0x258   : > { %2593 = vperm.xlu1 %3374, %v3566_v14   ;;  %v3570_v14 = vld [vmem:[%s5157_s19 + $0xa8] sm:$0xff] }
 0x259   : > { %v6823_v25 = vpop.permute.xlu2 %2296 }
 0x25a   : > { %8004 = vst [vmem:[#allocation148_spill] sm:$0xff] %v6823_v25  ;;  %v3571_v25 = vld [vmem:[%s5157_s19 + $0x68] sm:$0xff] }
 0x25c   : > { %v6832_v24 = vpop.permute.xlu1 %2271 }
 0x25d   : > { %8007 = vst [vmem:[#allocation151_spill] sm:$0xff] %v6832_v24  ;;  %v3580_v24 = vld [vmem:[%s5157_s19 + $0xb0] sm:$0xff] }
 0x25e   : > { %2643 = vperm.xlu0 %3375, %v3567_v32   ;;  %v3572_v32 = vld [vmem:[%s5157_s19 + $0x70] sm:$0xff] }
 0x25f   : > { %v6826_v26 = vpop.permute.xlu0 %2291  ;;  %2603 = vperm.xlu2 %3376, %v3568_v51  }
 0x260   : > { %8005 = vst [vmem:[#allocation149_spill] sm:$0xff] %v6826_v26  ;;  %2608 = vperm.xlu1 %3374, %v3569_v57   ;;  %v3573_v57 = vld [vmem:[%s5157_s19 + $0xc0] sm:$0xff] }
 0x261   : > { %v6830_v4 = vpop.permute.xlu2 %2311 }
 0x262   : > { %8006 = vst [vmem:[#allocation150_spill] sm:$0xff] %v6830_v4 }
 0x266   : > { %2658 = vperm.xlu0 %3375, %v3570_v14   ;;  %v3575_v14 = vld [vmem:[%s5157_s19 + $0x88] sm:$0xff] }
 0x267   : > { %v6835_v37 = vpop.permute.xlu0 %2306  ;;  %2618 = vperm.xlu2 %3376, %v3571_v25   ;;  %v6841_v51 = vpop.permute.xlu1 %2286 }
 0x268   : > { %8008 = vst [vmem:[#allocation152_spill] sm:$0xff] %v6835_v37  ;;  %2623 = vperm.xlu1 %3374, %v3572_v32   ;;  %v3576_v32 = vld [vmem:[%s5157_s19 + $0xd8] sm:$0xff] }
 0x269   : > { %v6839_v26 = vpop.permute.xlu2 %2326  ;;  %8010 = vst [vmem:[#allocation154_spill] sm:$0xff] %v6841_v51  ;;  %v3577_v51 = vld [vmem:[%s5157_s19 + $0x98] sm:$0xff] }
 0x26a   : > { %8009 = vst [vmem:[#allocation153_spill] sm:$0xff] %v6839_v26 }
 0x26e   : > { %2673 = vperm.xlu0 %3375, %v3573_v57   ;;  %v3578_v57 = vld [vmem:[%s5157_s19 + $0xa0] sm:$0xff] }
 0x26f   : > { %v6844_v4 = vpop.permute.xlu0 %2321  ;;  %2633 = vperm.xlu2 %3376, %v3574_v27  }
 0x270   : > { %8011 = vst [vmem:[#allocation155_spill] sm:$0xff] %v6844_v4  ;;  %2638 = vperm.xlu1 %3374, %v3575_v14   ;;  %v6850_v25 = vpop.permute.xlu1 %2301  ;;  %v3579_v14 = vld [vmem:[%s5157_s19 + $0xf0] sm:$0xff] }
 0x271   : > { %v6848_v37 = vpop.permute.xlu2 %2341 }
 0x272   : > { %8012 = vst [vmem:[#allocation156_spill] sm:$0xff] %v6848_v37 }
 0x276   : > { %2688 = vperm.xlu0 %3375, %v3576_v32   ;;  %v3581_v32 = vld [vmem:[%s5157_s19 + $0xb8] sm:$0xff] }
 0x277   : > { %v6853_v26 = vpop.permute.xlu0 %2336  ;;  %2648 = vperm.xlu2 %3376, %v3577_v51  }
 0x278   : > { %8013 = vst [vmem:[#allocation157_spill] sm:$0xff] %v6853_v26  ;;  %2653 = vperm.xlu1 %3374, %v3578_v57   ;;  %v6859_v27 = vpop.permute.xlu1 %2316 }
 0x279   : > { %v6857_v4 = vpop.permute.xlu2 %2356  ;;  %8015 = vst [vmem:[#allocation159_spill] sm:$0xff] %v6859_v27 }
 0x27a   : > { %8014 = vst [vmem:[#allocation158_spill] sm:$0xff] %v6857_v4  ;;  %v3582_v4 = vld [vmem:[%s5157_s19 + $0xc8] sm:$0xff] }
 0x27e   : > { %2703 = vperm.xlu0 %3375, %v3579_v14   ;;  %v3583_v14 = vld [vmem:[%s5157_s19 + $0xd0] sm:$0xff] }
 0x27f   : > { %v6862_v37 = vpop.permute.xlu0 %2351  ;;  %2663 = vperm.xlu2 %3376, %v3580_v24  }
 0x280   : > { %8016 = vst [vmem:[#allocation160_spill] sm:$0xff] %v6862_v37  ;;  %2668 = vperm.xlu1 %3374, %v3581_v32   ;;  %v6868_v51 = vpop.permute.xlu1 %2331 }
 0x281   : > { %v6866_v26 = vpop.permute.xlu2 %2371  ;;  %8018 = vst [vmem:[#allocation162_spill] sm:$0xff] %v6868_v51 }
 0x282   : > { %8017 = vst [vmem:[#allocation161_spill] sm:$0xff] %v6866_v26  ;;  %v3584_v26 = vld [vmem:[%s5157_s19 + $0xe0] sm:$0xff] }
 0x286   : > { %2718 = vperm.xlu0 %3375, %v6074_v6   ;;  %v3585_v6 = vld [vmem:[%s5157_s19 + $0xe8] sm:$0xff] }
 0x287   : > { %v6871_v57 = vpop.permute.xlu0 %2366  ;;  %2678 = vperm.xlu2 %3376, %v3582_v4  }
 0x288   : > { %8019 = vst [vmem:[#allocation163_spill] sm:$0xff] %v6871_v57  ;;  %2683 = vperm.xlu1 %3374, %v3583_v14   ;;  %v6877_v24 = vpop.permute.xlu1 %2346  ;;  %v3586_v14 = vld [vmem:[%s5157_s19 + $0xf8] sm:$0xff] }
 0x289   : > { %v6875_v37 = vpop.permute.xlu2 %2386  ;;  %8021 = vst [vmem:[#allocation165_spill] sm:$0xff] %v6877_v24 }
 0x28a   : > { %8020 = vst [vmem:[#allocation164_spill] sm:$0xff] %v6875_v37  ;;  %v3587_v37 = vld [vmem:[%s5157_s19 + $0x100] sm:$0xff] }
 0x28e   : > { %2733 = vperm.xlu0 %3375, %v6157_v5  }
 0x28f   : > { %v6880_v32 = vpop.permute.xlu0 %2381  ;;  %2693 = vperm.xlu2 %3376, %v3584_v26  }
 0x290   : > { %8022 = vst [vmem:[#allocation166_spill] sm:$0xff] %v6880_v32  ;;  %2698 = vperm.xlu1 %3374, %v3585_v6   ;;  %v6886_v51 = vpop.permute.xlu1 %2361  ;;  %v3588_v6 = vld [vmem:[%s5157_s19 + $0x110] sm:$0xff] }
 0x291   : > { %v6884_v57 = vpop.permute.xlu2 %2401  ;;  %8024 = vst [vmem:[#allocation168_spill] sm:$0xff] %v6886_v51 }
 0x292   : > { %8023 = vst [vmem:[#allocation167_spill] sm:$0xff] %v6884_v57  ;;  %v8029_v57 = vld [vmem:[#allocation63_spill] sm:$0xff] }
 0x296   : > { %2748 = vperm.xlu0 %3375, %v6249_v44   ;;  %v8030_v44 = vld [vmem:[#allocation134_spill] sm:$0xff] }
 0x297   : > { %v6889_v4 = vpop.permute.xlu0 %2396  ;;  %2708 = vperm.xlu2 %3376, %v3586_v14   ;;  %v2423_v51 = vmul.f32 %v8030_v44, %v8029_v57  ;;  %v8033_v57 = vld [vmem:[#allocation65_spill] sm:$0xff] }
 0x298   : > { %8025 = vst [vmem:[#allocation169_spill] sm:$0xff] %v6889_v4  ;;  %2713 = vperm.xlu1 %3374, %v3587_v37   ;;  %v6895_v32 = vpop.permute.xlu1 %2376  ;;  %v8031_v4 = vld [vmem:[#allocation60_spill] sm:$0xff] }
 0x299   : > { %v6893_v5 = vpop.permute.xlu2 %2416  ;;  %8027 = vst [vmem:[#allocation171_spill] sm:$0xff] %v6895_v32  ;;  %v2424_v14 = vmul.f32 %v8030_v44, %v8031_v4  ;;  %v8034_v4 = vld [vmem:[#allocation62_spill] sm:$0xff] }
 0x29a   : > { %8026 = vst [vmem:[#allocation170_spill] sm:$0xff] %v6893_v5 }
 0x29e   : > { %2763 = vperm.xlu0 %3375, %v6332_v2  }
 0x29f   : > { %v6898_v26 = vpop.permute.xlu0 %2411  ;;  %2723 = vperm.xlu2 %3376, %v3588_v6   ;;  %v8036_v6 = vld [vmem:[#allocation66_spill] sm:$0xff] }
 0x2a0   : > { %8028 = vst [vmem:[#allocation172_spill] sm:$0xff] %v6898_v26  ;;  %2728 = vperm.xlu1 %3374, %v6140_v1   ;;  %v6906_v37 = vpop.permute.xlu1 %2391  ;;  %v2421_v1 = vmul.f32 %v6261_v18, %v8033_v57  ;;  %v2428_v44 = vmul.f32 %v6356_v47, %v8036_v6  ;;  %v3590_v6 = vld [vmem:[%s5157_s19 + $0x140] sm:$0xff] }
 0x2a1   : > { %8032 = vst [vmem:[#allocation63_spill] sm:$0xff] %v6906_v37  ;;  %v2564_v5 = vpop.permute.xlu2 %2563 }
 0x2a2   : > { %v2885_v24 = vadd.f32 %v2564_v5, %v2423_v51  ;;  %v2886_v32 = vadd.f32 %v2564_v5, %v2424_v14  ;;  %v2422_v51 = vmul.f32 %v6261_v18, %v8034_v4  ;;  %v3589_v5 = vld [vmem:[%s5157_s19 + $0x128] sm:$0xff] }
 0x2a4   : > { %v3017_v27 = vmax.f32 %v2885_v24, 0.0  ;;  %v3018_v2 = vmax.f32 %v2886_v32, 0.0  ;;  %v8035_v24 = vld [vmem:[#allocation69_spill] sm:$0xff] }
 0x2a5   : > { %v2427_v32 = vmul.f32 %v6356_v47, %v8035_v24 }
 0x2a6   : > { %2778 = vperm.xlu0 %3375, %v6417_v49   ;;  %3149 = vst [vmem:[%s6913_s22 + $0x20] sm:$0xff] %v3017_v27 }
 0x2a7   : > { %2738 = vperm.xlu2 %3376, %v3589_v5   ;;  %3150 = vst.msk [vmem:[%s6913_s22 + $0x28] sm:$0xff] %vm306_vm0, %v3018_v2 }
 0x2a8   : > { %v2559_v49 = vpop.permute.xlu0 %2558  ;;  %2743 = vperm.xlu1 %3374, %v6236_v45   ;;  %v8037_v45 = vld [vmem:[#allocation77_spill] sm:$0xff] }
 0x2a9   : > { %v2883_v27 = vadd.f32 %v2559_v49, %v2421_v1  ;;  %v2884_v14 = vadd.f32 %v2559_v49, %v2422_v51  ;;  %v6929_v18 = vpop.permute.xlu1 %2406  ;;  %v2574_v57 = vpop.permute.xlu2 %2573  ;;  %v2431_v47 = vmul.f32 %v6474_v10, %v8037_v45  ;;  %v8038_v1 = vld [vmem:[#allocation74_spill] sm:$0xff]  ;;  %v8040_v49 = vld [vmem:[#allocation73_spill] sm:$0xff] }
 0x2aa   : > { %v2889_v4 = vadd.f32 %v2574_v57, %v2427_v32  ;;  %v2890_v5 = vadd.f32 %v2574_v57, %v2428_v44  ;;  %v2432_v51 = vmul.f32 %v6474_v10, %v8038_v1  ;;  %v8039_v32 = vld [vmem:[#allocation76_spill] sm:$0xff]  ;;  %v8042_v57 = vld [vmem:[#allocation61_spill] sm:$0xff] }
 0x2ab   : > { %v3015_v2 = vmax.f32 %v2883_v27, 0.0  ;;  %v3016_v26 = vmax.f32 %v2884_v14, 0.0  ;;  %v2433_v44 = vmul.f32 %v6303_v22, %v8039_v32  ;;  %v2434_v27 = vmul.f32 %v6303_v22, %v8040_v49 }
 0x2ac   : > { %v3021_v37 = vmax.f32 %v2889_v4, 0.0  ;;  %v3022_v24 = vmax.f32 %v2890_v5, 0.0  ;;  %v2420_v10 = vmul.f32 %v6185_v58, %v8042_v57  ;;  %v8046_v57 = vld [vmem:[#allocation79_spill] sm:$0xff] }
 0x2ad   : > { %3147 = vst [vmem:[%s6913_s22 + $0x10] sm:$0xff] %v3015_v2 }
 0x2ae   : > { %3148 = vst.msk [vmem:[%s6913_s22 + $0x18] sm:$0xff] %vm306_vm0, %v3016_v26  ;;  %2793 = vperm.xlu0 %3375, %v6504_v12   ;;  %v8041_v12 = vld [vmem:[#allocation64_spill] sm:$0xff] }
 0x2af   : > { %2753 = vperm.xlu2 %3376, %v3590_v6   ;;  %3153 = vst [vmem:[%s6913_s22 + $0x40] sm:$0xff] %v3021_v37  ;;  %v2419_v26 = vmul.f32 %v6185_v58, %v8041_v12 }
 0x2b0   : > { %v2584_v14 = vpop.permute.xlu0 %2583  ;;  %2758 = vperm.xlu1 %3374, %v6320_v43   ;;  %3154 = vst.msk [vmem:[%s6913_s22 + $0x48] sm:$0xff] %vm306_vm0, %v3022_v24 }
 0x2b1   : > { %v2893_v37 = vadd.f32 %v2584_v14, %v2431_v47  ;;  %v2894_v4 = vadd.f32 %v2584_v14, %v2432_v51  ;;  %v2589_v5 = vpop.permute.xlu2 %2588  ;;  %v8043_v47 = vld [vmem:[#allocation83_spill] sm:$0xff]  ;;  %v8045_v14 = vld [vmem:[#allocation82_spill] sm:$0xff] }
 0x2b2   : > { %v2554_v2 = vpop.permute.xlu1 %2553  ;;  %v2895_v45 = vadd.f32 %v2589_v5, %v2433_v44  ;;  %v2896_v22 = vadd.f32 %v2589_v5, %v2434_v27  ;;  %v2437_v51 = vmul.f32 %v6580_v15, %v8043_v47  ;;  %v8044_v44 = vld [vmem:[#allocation80_spill] sm:$0xff] }
 0x2b3   : > { %v3025_v1 = vmax.f32 %v2893_v37, 0.0  ;;  %v3026_v6 = vmax.f32 %v2894_v4, 0.0  ;;  %v2881_v43 = vadd.f32 %v2554_v2, %v2419_v26  ;;  %v2882_v32 = vadd.f32 %v2554_v2, %v2420_v10  ;;  %v8047_v37 = vld [vmem:[#allocation71_spill] sm:$0xff]  ;;  %v8048_v5 = vld [vmem:[#allocation68_spill] sm:$0xff] }
 0x2b4   : > { %v3027_v12 = vmax.f32 %v2895_v45, 0.0  ;;  %v3028_v58 = vmax.f32 %v2896_v22, 0.0  ;;  %v2438_v27 = vmul.f32 %v6580_v15, %v8044_v44  ;;  %v2439_v26 = vmul.f32 %v6419_v29, %v8045_v14 }
 0x2b5   : > { %3157 = vst [vmem:[%s6913_s22 + $0x60] sm:$0xff] %v3025_v1  ;;  %v3013_v24 = vmax.f32 %v2881_v43, 0.0  ;;  %v3014_v49 = vmax.f32 %v2882_v32, 0.0  ;;  %v2440_v10 = vmul.f32 %v6419_v29, %v8046_v57  ;;  %v2425_v4 = vmul.f32 %v6142_v54, %v8047_v37 }
 0x2b6   : > { %3158 = vst.msk [vmem:[%s6913_s22 + $0x68] sm:$0xff] %vm306_vm0, %v3026_v6  ;;  %2808 = vperm.xlu0 %3375, %v6578_v31   ;;  %v2426_v15 = vmul.f32 %v6142_v54, %v8048_v5 }
 0x2b7   : > { %3145 = vst [vmem:[%s6913_s22] sm:$0xff] %v3013_v24  ;;  %2768 = vperm.xlu2 %3376, %v6216_v35  }
 0x2b8   : > { %3146 = vst.msk [vmem:[%s6913_s22 + $0x8] sm:$0xff] %vm306_vm0, %v3014_v49  ;;  %v2599_v31 = vpop.permute.xlu0 %2598  ;;  %2773 = vperm.xlu1 %3374, %v6409_v34  }
 0x2b9   : > { %v2899_v2 = vadd.f32 %v2599_v31, %v2437_v51  ;;  %v2900_v35 = vadd.f32 %v2599_v31, %v2438_v27  ;;  %3159 = vst [vmem:[%s6913_s22 + $0x70] sm:$0xff] %v3027_v12  ;;  %v2604_v45 = vpop.permute.xlu2 %2603  ;;  %v8050_v51 = vld [vmem:[#allocation86_spill] sm:$0xff]  ;;  %v8051_v27 = vld [vmem:[#allocation88_spill] sm:$0xff]  ;;  %v8054_v31 = vld [vmem:[#allocation135_spill] sm:$0xff] }
 0x2ba   : > { %3160 = vst.msk [vmem:[%s6913_s22 + $0x78] sm:$0xff] %vm306_vm0, %v3028_v58  ;;  %v2569_v29 = vpop.permute.xlu1 %2568  ;;  %v2901_v22 = vadd.f32 %v2604_v45, %v2439_v26  ;;  %v2902_v1 = vadd.f32 %v2604_v45, %v2440_v10  ;;  %v8049_v58 = vld [vmem:[#allocation89_spill] sm:$0xff]  ;;  %v2444_v44 = vmul.f32 %v6659_v23, %v8050_v51  ;;  %v2445_v14 = vmul.f32 %v6516_v11, %v8051_v27  ;;  %v8053_v10 = vld [vmem:[#allocation70_spill] sm:$0xff]  ;;  %v8060_v51 = vld [vmem:[#allocation59_spill] sm:$0xff] }
 0x2bb   : > { %v3031_v6 = vmax.f32 %v2899_v2, 0.0  ;;  %v3032_v43 = vmax.f32 %v2900_v35, 0.0  ;;  %v2887_v34 = vadd.f32 %v2569_v29, %v2425_v4  ;;  %v2888_v32 = vadd.f32 %v2569_v29, %v2426_v15  ;;  %v8052_v26 = vld [vmem:[#allocation85_spill] sm:$0xff]  ;;  %v8055_v4 = vld [vmem:[#allocation67_spill] sm:$0xff] }
 0x2bc   : > { %v3033_v54 = vmax.f32 %v2901_v22, 0.0  ;;  %v3034_v12 = vmax.f32 %v2902_v1, 0.0  ;;  %v2443_v47 = vmul.f32 %v6659_v23, %v8049_v58  ;;  %v2446_v57 = vmul.f32 %v6516_v11, %v8052_v26  ;;  %v8059_v58 = vld [vmem:[#allocation4_spill] sm:$0xff]  ;;  %v8061_v27 = vld [vmem:[#allocation75_spill] sm:$0xff] }
 0x2bd   : > { %3163 = vst [vmem:[%s6913_s22 + $0x90] sm:$0xff] %v3031_v6  ;;  %v3019_v24 = vmax.f32 %v2887_v34, 0.0  ;;  %v3020_v49 = vmax.f32 %v2888_v32, 0.0  ;;  %v2429_v37 = vmul.f32 %v8054_v31, %v8053_v10  ;;  %v2430_v23 = vmul.f32 %v8054_v31, %v8055_v4  ;;  %v8056_v32 = vld [vmem:[#allocation5_spill] sm:$0xff] }
 0x2be   : > { %3164 = vst.msk [vmem:[%s6913_s22 + $0x98] sm:$0xff] %vm306_vm0, %v3032_v43  ;;  %2823 = vperm.xlu0 %3375, %v6648_v55  }
 0x2bf   : > { %3151 = vst [vmem:[%s6913_s22 + $0x30] sm:$0xff] %v3019_v24  ;;  %2783 = vperm.xlu2 %3376, %v6301_v63   ;;  %v2449_v24 = vmul.f32 %v6720_v36, %v8056_v32 }
 0x2c0   : > { %3152 = vst.msk [vmem:[%s6913_s22 + $0x38] sm:$0xff] %vm306_vm0, %v3020_v49  ;;  %v2614_v55 = vpop.permute.xlu0 %2613  ;;  %2788 = vperm.xlu1 %3374, %v6494_v19   ;;  %v8057_v49 = vld [vmem:[#allocation2_spill] sm:$0xff] }
 0x2c1   : > { %v2905_v5 = vadd.f32 %v2614_v55, %v2443_v47  ;;  %v2906_v63 = vadd.f32 %v2614_v55, %v2444_v44  ;;  %3165 = vst [vmem:[%s6913_s22 + $0xa0] sm:$0xff] %v3033_v54  ;;  %v2619_v15 = vpop.permute.xlu2 %2618  ;;  %v2450_v54 = vmul.f32 %v6720_v36, %v8057_v49  ;;  %v2451_v47 = vmul.f32 %v6603_v30, %v8059_v58  ;;  %v8070_v49 = vld [vmem:[#allocation138_spill] sm:$0xff] }
 0x2c2   : > { %3166 = vst.msk [vmem:[%s6913_s22 + $0xa8] sm:$0xff] %vm306_vm0, %v3034_v12  ;;  %v2579_v11 = vpop.permute.xlu1 %2578  ;;  %v2907_v2 = vadd.f32 %v2619_v15, %v2445_v14  ;;  %v2908_v35 = vadd.f32 %v2619_v15, %v2446_v57  ;;  %v8058_v12 = vld [vmem:[#allocation137_spill] sm:$0xff]  ;;  %v2452_v44 = vmul.f32 %v6603_v30, %v8060_v51  ;;  %v8062_v14 = vld [vmem:[#allocation136_spill] sm:$0xff] }
 0x2c3   : > { %v3037_v45 = vmax.f32 %v2905_v5, 0.0  ;;  %v3038_v29 = vmax.f32 %v2906_v63, 0.0  ;;  %v2891_v19 = vadd.f32 %v2579_v11, %v2429_v37  ;;  %v2892_v22 = vadd.f32 %v2579_v11, %v2430_v23  ;;  %v8063_v57 = vld [vmem:[#allocation72_spill] sm:$0xff] }
 0x2c4   : > { %v3039_v43 = vmax.f32 %v2907_v2, 0.0  ;;  %v3040_v34 = vmax.f32 %v2908_v35, 0.0  ;;  %v2435_v26 = vmul.f32 %v8062_v14, %v8061_v27  ;;  %v2436_v36 = vmul.f32 %v8062_v14, %v8063_v57 }
 0x2c5   : > { %3169 = vst [vmem:[%s6913_s22 + $0xc0] sm:$0xff] %v3037_v45  ;;  %v3023_v1 = vmax.f32 %v2891_v19, 0.0  ;;  %v3024_v6 = vmax.f32 %v2892_v22, 0.0  ;;  %v8064_v45 = vld [vmem:[#allocation11_spill] sm:$0xff]  ;;  %v8065_v19 = vld [vmem:[#allocation8_spill] sm:$0xff] }
 0x2c6   : > { %3170 = vst.msk [vmem:[%s6913_s22 + $0xc8] sm:$0xff] %vm306_vm0, %v3038_v29  ;;  %2838 = vperm.xlu0 %3375, %v6713_v16   ;;  %v2455_v29 = vmul.f32 %v6754_v33, %v8064_v45  ;;  %v2456_v22 = vmul.f32 %v6754_v33, %v8065_v19  ;;  %v8079_v45 = vld [vmem:[#allocation84_spill] sm:$0xff] }
 0x2c7   : > { %3155 = vst [vmem:[%s6913_s22 + $0x50] sm:$0xff] %v3023_v1  ;;  %2798 = vperm.xlu2 %3376, %v8058_v12   ;;  %v8066_v1 = vld [vmem:[#allocation139_spill] sm:$0xff]  ;;  %v8071_v12 = vld [vmem:[#allocation78_spill] sm:$0xff] }
 0x2c8   : > { %3156 = vst.msk [vmem:[%s6913_s22 + $0x58] sm:$0xff] %vm306_vm0, %v3024_v6  ;;  %v2629_v16 = vpop.permute.xlu0 %2628  ;;  %2803 = vperm.xlu1 %3374, %v6571_v60   ;;  %v8067_v6 = vld [vmem:[#allocation10_spill] sm:$0xff]  ;;  %v2442_v33 = vmul.f32 %v8070_v49, %v8071_v12  ;;  %v8080_v12 = vld [vmem:[#allocation23_spill] sm:$0xff] }
 0x2c9   : > { %v2911_v55 = vadd.f32 %v2629_v16, %v2449_v24  ;;  %v2912_v10 = vadd.f32 %v2629_v16, %v2450_v54  ;;  %3171 = vst [vmem:[%s6913_s22 + $0xd0] sm:$0xff] %v3039_v43  ;;  %v2634_v31 = vpop.permute.xlu2 %2633  ;;  %v2457_v43 = vmul.f32 %v6691_v7, %v8067_v6  ;;  %v8069_v24 = vld [vmem:[#allocation81_spill] sm:$0xff] }
 0x2ca   : > { %3172 = vst.msk [vmem:[%s6913_s22 + $0xd8] sm:$0xff] %vm306_vm0, %v3040_v34  ;;  %v2594_v30 = vpop.permute.xlu1 %2593  ;;  %v2913_v37 = vadd.f32 %v2634_v31, %v2451_v47  ;;  %v2914_v4 = vadd.f32 %v2634_v31, %v2452_v44  ;;  %v8068_v34 = vld [vmem:[#allocation7_spill] sm:$0xff]  ;;  %v2441_v54 = vmul.f32 %v8070_v49, %v8069_v24  ;;  %v8072_v31 = vld [vmem:[#allocation17_spill] sm:$0xff] }
 0x2cb   : > { %v3043_v23 = vmax.f32 %v2911_v55, 0.0  ;;  %v3044_v5 = vmax.f32 %v2912_v10, 0.0  ;;  %v2897_v60 = vadd.f32 %v2594_v30, %v2435_v26  ;;  %v2898_v63 = vadd.f32 %v2594_v30, %v2436_v36 }
 0x2cc   : > { %v3045_v2 = vmax.f32 %v2913_v37, 0.0  ;;  %v3046_v35 = vmax.f32 %v2914_v4, 0.0  ;;  %v2458_v32 = vmul.f32 %v6691_v7, %v8068_v34  ;;  %v2461_v30 = vmul.f32 %v6776_v41, %v8072_v31  ;;  %v8073_v37 = vld [vmem:[#allocation14_spill] sm:$0xff] }
 0x2cd   : > { %3175 = vst [vmem:[%s6913_s22 + $0xf0] sm:$0xff] %v3043_v23  ;;  %v3029_v15 = vmax.f32 %v2897_v60, 0.0  ;;  %v3030_v11 = vmax.f32 %v2898_v63, 0.0  ;;  %v2462_v4 = vmul.f32 %v6776_v41, %v8073_v37  ;;  %v8074_v23 = vld [vmem:[#allocation141_spill] sm:$0xff] }
 0x2ce   : > { %3176 = vst.msk [vmem:[%s6913_s22 + $0xf8] sm:$0xff] %vm306_vm0, %v3044_v5  ;;  %2853 = vperm.xlu0 %3375, %v6750_v53   ;;  %v8075_v5 = vld [vmem:[#allocation16_spill] sm:$0xff]  ;;  %v8076_v63 = vld [vmem:[#allocation13_spill] sm:$0xff] }
 0x2cf   : > { %3161 = vst [vmem:[%s6913_s22 + $0x80] sm:$0xff] %v3029_v15  ;;  %2813 = vperm.xlu2 %3376, %v8066_v1   ;;  %v2463_v60 = vmul.f32 %v6741_v50, %v8075_v5  ;;  %v2464_v15 = vmul.f32 %v6741_v50, %v8076_v63 }
 0x2d0   : > { %3162 = vst.msk [vmem:[%s6913_s22 + $0x88] sm:$0xff] %vm306_vm0, %v3030_v11  ;;  %v2644_v53 = vpop.permute.xlu0 %2643  ;;  %2818 = vperm.xlu1 %3374, %v6641_v46   ;;  %v8077_v11 = vld [vmem:[#allocation87_spill] sm:$0xff] }
 0x2d1   : > { %v2917_v58 = vadd.f32 %v2644_v53, %v2455_v29  ;;  %v2918_v47 = vadd.f32 %v2644_v53, %v2456_v22  ;;  %3177 = vst [vmem:[%s6913_s22 + $0x100] sm:$0xff] %v3045_v2  ;;  %v2649_v51 = vpop.permute.xlu2 %2648  ;;  %v8078_v2 = vld [vmem:[#allocation140_spill] sm:$0xff] }
 0x2d2   : > { %3178 = vst.msk [vmem:[%s6913_s22 + $0x108] sm:$0xff] %vm306_vm0, %v3046_v35  ;;  %v2609_v7 = vpop.permute.xlu1 %2608  ;;  %v2919_v44 = vadd.f32 %v2649_v51, %v2457_v43  ;;  %v2920_v16 = vadd.f32 %v2649_v51, %v2458_v32  ;;  %v2447_v35 = vmul.f32 %v8078_v2, %v8077_v11  ;;  %v2448_v41 = vmul.f32 %v8078_v2, %v8079_v45  ;;  %v8082_v51 = vld [vmem:[#allocation22_spill] sm:$0xff] }
 0x2d3   : > { %v3049_v27 = vmax.f32 %v2917_v58, 0.0  ;;  %v3050_v14 = vmax.f32 %v2918_v47, 0.0  ;;  %v2903_v46 = vadd.f32 %v2609_v7, %v2441_v54  ;;  %v2904_v26 = vadd.f32 %v2609_v7, %v2442_v33  ;;  %v8081_v58 = vld [vmem:[#allocation20_spill] sm:$0xff]  ;;  %v8088_v11 = vld [vmem:[#allocation26_spill] sm:$0xff] }
 0x2d4   : > { %v3051_v55 = vmax.f32 %v2919_v44, 0.0  ;;  %v3052_v10 = vmax.f32 %v2920_v16, 0.0  ;;  %v2467_v33 = vmul.f32 %v6792_v38, %v8080_v12  ;;  %v2468_v47 = vmul.f32 %v6792_v38, %v8081_v58  ;;  %v8083_v44 = vld [vmem:[#allocation19_spill] sm:$0xff] }
 0x2d5   : > { %3181 = vst [vmem:[%s6913_s22 + $0x120] sm:$0xff] %v3049_v27  ;;  %v3035_v57 = vmax.f32 %v2903_v46, 0.0  ;;  %v3036_v36 = vmax.f32 %v2904_v26, 0.0  ;;  %v2469_v7 = vmul.f32 %v6769_v0, %v8082_v51  ;;  %v2470_v16 = vmul.f32 %v6769_v0, %v8083_v44  ;;  %v8085_v46 = vld [vmem:[#allocation142_spill] sm:$0xff] }
 0x2d6   : > { %3182 = vst.msk [vmem:[%s6913_s22 + $0x128] sm:$0xff] %vm306_vm0, %v3050_v14  ;;  %2868 = vperm.xlu0 %3375, %v6773_v40   ;;  %v8084_v14 = vld [vmem:[#allocation3_spill] sm:$0xff]  ;;  %v2474_v2 = vmul.f32 %v6801_v13, %v8088_v11 }
 0x2d7   : > { %3167 = vst [vmem:[%s6913_s22 + $0xb0] sm:$0xff] %v3035_v57  ;;  %2828 = vperm.xlu2 %3376, %v8074_v23   ;;  %v2453_v26 = vmul.f32 %v8085_v46, %v8084_v14  ;;  %v8086_v57 = vld [vmem:[#allocation58_spill] sm:$0xff] }
 0x2d8   : > { %3168 = vst.msk [vmem:[%s6913_s22 + $0xb8] sm:$0xff] %vm306_vm0, %v3036_v36  ;;  %v2659_v40 = vpop.permute.xlu0 %2658  ;;  %2833 = vperm.xlu1 %3374, %v6704_v20   ;;  %v2454_v38 = vmul.f32 %v8085_v46, %v8086_v57  ;;  %v8097_v46 = vld [vmem:[#allocation15_spill] sm:$0xff]  ;;  %v8098_v57 = vld [vmem:[#allocation12_spill] sm:$0xff] }
 0x2d9   : > { %v2923_v29 = vadd.f32 %v2659_v40, %v2461_v30  ;;  %v2924_v19 = vadd.f32 %v2659_v40, %v2462_v4  ;;  %3183 = vst [vmem:[%s6913_s22 + $0x130] sm:$0xff] %v3051_v55  ;;  %v2664_v22 = vpop.permute.xlu2 %2663 }
 0x2da   : > { %3184 = vst.msk [vmem:[%s6913_s22 + $0x138] sm:$0xff] %vm306_vm0, %v3052_v10  ;;  %v2624_v50 = vpop.permute.xlu1 %2623  ;;  %v2925_v1 = vadd.f32 %v2664_v22, %v2463_v60  ;;  %v2926_v6 = vadd.f32 %v2664_v22, %v2464_v15  ;;  %v8087_v15 = vld [vmem:[#allocation29_spill] sm:$0xff] }
 0x2db   : > { %v3055_v43 = vmax.f32 %v2923_v29, 0.0  ;;  %v3056_v20 = vmax.f32 %v2924_v19, 0.0  ;;  %v2909_v34 = vadd.f32 %v2624_v50, %v2447_v35  ;;  %v2910_v32 = vadd.f32 %v2624_v50, %v2448_v41  ;;  %v8089_v35 = vld [vmem:[#allocation28_spill] sm:$0xff]  ;;  %v8090_v41 = vld [vmem:[#allocation25_spill] sm:$0xff] }
 0x2dc   : > { %v3057_v49 = vmax.f32 %v2925_v1, 0.0  ;;  %v3058_v54 = vmax.f32 %v2926_v6, 0.0  ;;  %v2473_v40 = vmul.f32 %v6801_v13, %v8087_v15  ;;  %v2475_v45 = vmul.f32 %v6789_v3, %v8089_v35  ;;  %v8091_v22 = vld [vmem:[#allocation9_spill] sm:$0xff]  ;;  %v8092_v1 = vld [vmem:[#allocation6_spill] sm:$0xff] }
 0x2dd   : > { %3187 = vst [vmem:[%s6913_s22 + $0x150] sm:$0xff] %v3055_v43  ;;  %v3041_v53 = vmax.f32 %v2909_v34, 0.0  ;;  %v3042_v24 = vmax.f32 %v2910_v32, 0.0  ;;  %v2476_v29 = vmul.f32 %v6789_v3, %v8090_v41  ;;  %v2459_v50 = vmul.f32 %v6661_v17, %v8091_v22  ;;  %v8103_v35 = vld [vmem:[#allocation21_spill] sm:$0xff]  ;;  %v8104_v41 = vld [vmem:[#allocation18_spill] sm:$0xff] }
 0x2de   : > { %3188 = vst.msk [vmem:[%s6913_s22 + $0x158] sm:$0xff] %vm306_vm0, %v3056_v20  ;;  %v2460_v13 = vmul.f32 %v6661_v17, %v8092_v1 }
 0x2df   : > { %3173 = vst [vmem:[%s6913_s22 + $0xe0] sm:$0xff] %v3041_v53  ;;  %2843 = vperm.xlu2 %3376, %v6626_v28  }
 0x2e0   : > { %3174 = vst.msk [vmem:[%s6913_s22 + $0xe8] sm:$0xff] %vm306_vm0, %v3042_v24  ;;  %v2674_v27 = vpop.permute.xlu0 %2673  ;;  %2848 = vperm.xlu1 %3374, %v6746_v62  }
 0x2e1   : > { %v2929_v36 = vadd.f32 %v2674_v27, %v2467_v33  ;;  %v2930_v28 = vadd.f32 %v2674_v27, %v2468_v47  ;;  %3189 = vst [vmem:[%s6913_s22 + $0x160] sm:$0xff] %v3057_v49  ;;  %v2679_v55 = vpop.permute.xlu2 %2678  ;;  %v8093_v33 = vld [vmem:[#allocation35_spill] sm:$0xff]  ;;  %v8094_v47 = vld [vmem:[#allocation32_spill] sm:$0xff] }
 0x2e2   : > { %3190 = vst.msk [vmem:[%s6913_s22 + $0x168] sm:$0xff] %vm306_vm0, %v3058_v54  ;;  %v2639_v0 = vpop.permute.xlu1 %2638  ;;  %v2931_v10 = vadd.f32 %v2679_v55, %v2469_v7  ;;  %v2932_v31 = vadd.f32 %v2679_v55, %v2470_v16  ;;  %v2479_v58 = vmul.f32 %v6811_v52, %v8093_v33  ;;  %v2480_v51 = vmul.f32 %v6811_v52, %v8094_v47  ;;  %v8095_v7 = vld [vmem:[#allocation34_spill] sm:$0xff]  ;;  %v8096_v16 = vld [vmem:[#allocation31_spill] sm:$0xff] }
 0x2e3   : > { %v3061_v30 = vmax.f32 %v2929_v36, 0.0  ;;  %v3062_v62 = vmax.f32 %v2930_v28, 0.0  ;;  %v2915_v37 = vadd.f32 %v2639_v0, %v2453_v26  ;;  %v2916_v4 = vadd.f32 %v2639_v0, %v2454_v38  ;;  %v8110_v33 = vld [vmem:[#allocation43_spill] sm:$0xff] }
 0x2e4   : > { %v3063_v60 = vmax.f32 %v2931_v10, 0.0  ;;  %v3064_v63 = vmax.f32 %v2932_v31, 0.0  ;;  %v2481_v44 = vmul.f32 %v6798_v56, %v8095_v7  ;;  %v2482_v27 = vmul.f32 %v6798_v56, %v8096_v16  ;;  %v8112_v7 = vld [vmem:[#allocation143_spill] sm:$0xff]  ;;  %v8113_v16 = vld [vmem:[#allocation24_spill] sm:$0xff] }
 0x2e5   : > { %3193 = vst [vmem:[%s6913_s22 + $0x180] sm:$0xff] %v3061_v30  ;;  %v3047_v23 = vmax.f32 %v2915_v37, 0.0  ;;  %v3048_v5 = vmax.f32 %v2916_v4, 0.0  ;;  %v2465_v26 = vmul.f32 %v6722_v9, %v8097_v46  ;;  %v2466_v52 = vmul.f32 %v6722_v9, %v8098_v57  ;;  %v8099_v4 = vld [vmem:[#allocation41_spill] sm:$0xff] }
 0x2e6   : > { %3194 = vst.msk [vmem:[%s6913_s22 + $0x188] sm:$0xff] %vm306_vm0, %v3062_v62 }
 0x2e7   : > { %3179 = vst [vmem:[%s6913_s22 + $0x110] sm:$0xff] %v3047_v23  ;;  %2858 = vperm.xlu2 %3376, %v6689_v42   ;;  %v2485_v23 = vmul.f32 %v6821_v59, %v8099_v4  ;;  %v8117_v4 = vld [vmem:[#allocation52_spill] sm:$0xff] }
 0x2e8   : > { %3180 = vst.msk [vmem:[%s6913_s22 + $0x118] sm:$0xff] %vm306_vm0, %v3048_v5  ;;  %v2689_v19 = vpop.permute.xlu0 %2688  ;;  %2863 = vperm.xlu1 %3374, %v6767_v21   ;;  %v8100_v5 = vld [vmem:[#allocation38_spill] sm:$0xff] }
 0x2e9   : > { %v2935_v6 = vadd.f32 %v2689_v19, %v2473_v40  ;;  %v2936_v42 = vadd.f32 %v2689_v19, %v2474_v2  ;;  %3195 = vst [vmem:[%s6913_s22 + $0x190] sm:$0xff] %v3063_v60  ;;  %v2694_v43 = vpop.permute.xlu2 %2693  ;;  %v2486_v60 = vmul.f32 %v6821_v59, %v8100_v5  ;;  %v8102_v40 = vld [vmem:[#allocation37_spill] sm:$0xff] }
 0x2ea   : > { %3196 = vst.msk [vmem:[%s6913_s22 + $0x198] sm:$0xff] %vm306_vm0, %v3064_v63  ;;  %v2654_v3 = vpop.permute.xlu1 %2653  ;;  %v2937_v20 = vadd.f32 %v2694_v43, %v2475_v45  ;;  %v2938_v34 = vadd.f32 %v2694_v43, %v2476_v29  ;;  %v8101_v63 = vld [vmem:[#allocation40_spill] sm:$0xff]  ;;  %v2488_v11 = vmul.f32 %v6807_v48, %v8102_v40  ;;  %v2471_v45 = vmul.f32 %v6761_v8, %v8103_v35  ;;  %v8120_v40 = vld [vmem:[#allocation33_spill] sm:$0xff]  ;;  %v8122_v35 = vld [vmem:[#allocation30_spill] sm:$0xff] }
 0x2eb   : > { %v3067_v32 = vmax.f32 %v2935_v6, 0.0  ;;  %v3068_v21 = vmax.f32 %v2936_v42, 0.0  ;;  %v2921_v53 = vadd.f32 %v2654_v3, %v2459_v50  ;;  %v2922_v24 = vadd.f32 %v2654_v3, %v2460_v13 }
 0x2ec   : > { %v3069_v17 = vmax.f32 %v2937_v20, 0.0  ;;  %v3070_v12 = vmax.f32 %v2938_v34, 0.0  ;;  %v2487_v15 = vmul.f32 %v6807_v48, %v8101_v63  ;;  %v2472_v29 = vmul.f32 %v6761_v8, %v8104_v41 }
 0x2ed   : > { %3199 = vst [vmem:[%s6913_s22 + $0x1b0] sm:$0xff] %v3067_v32  ;;  %v3053_v49 = vmax.f32 %v2921_v53, 0.0  ;;  %v3054_v54 = vmax.f32 %v2922_v24, 0.0  ;;  %v8105_v32 = vld [vmem:[#allocation47_spill] sm:$0xff]  ;;  %v8107_v24 = vld [vmem:[#allocation44_spill] sm:$0xff] }
 0x2ee   : > { %3200 = vst.msk [vmem:[%s6913_s22 + $0x1b8] sm:$0xff] %vm306_vm0, %v3068_v21  ;;  %v8106_v21 = vld [vmem:[#allocation151_spill] sm:$0xff] }
 0x2ef   : > { %3185 = vst [vmem:[%s6913_s22 + $0x140] sm:$0xff] %v3053_v49  ;;  %2873 = vperm.xlu2 %3376, %v6739_v61   ;;  %v2491_v53 = vmul.f32 %v8106_v21, %v8105_v32  ;;  %v2492_v49 = vmul.f32 %v8106_v21, %v8107_v24  ;;  %v8124_v32 = vld [vmem:[#allocation56_spill] sm:$0xff] }
 0x2f0   : > { %3186 = vst.msk [vmem:[%s6913_s22 + $0x148] sm:$0xff] %vm306_vm0, %v3054_v54  ;;  %v2704_v14 = vpop.permute.xlu0 %2703  ;;  %2878 = vperm.xlu1 %3374, %v6787_v39   ;;  %v8108_v54 = vld [vmem:[#allocation46_spill] sm:$0xff]  ;;  %v2504_v21 = vmul.f32 %v6850_v25, %v8124_v32  ;;  %v8126_v24 = vld [vmem:[#allocation152_spill] sm:$0xff]  ;;  %v8144_v32 = vld [vmem:[#allocation157_spill] sm:$0xff] }
 0x2f1   : > { %v2941_v38 = vadd.f32 %v2704_v14, %v2479_v58  ;;  %v2942_v61 = vadd.f32 %v2704_v14, %v2480_v51  ;;  %3201 = vst [vmem:[%s6913_s22 + $0x1c0] sm:$0xff] %v3069_v17  ;;  %v2709_v36 = vpop.permute.xlu2 %2708  ;;  %v8109_v17 = vld [vmem:[#allocation147_spill] sm:$0xff] }
 0x2f2   : > { %3202 = vst.msk [vmem:[%s6913_s22 + $0x1c8] sm:$0xff] %vm306_vm0, %v3070_v12  ;;  %v2669_v56 = vpop.permute.xlu1 %2668  ;;  %v2943_v28 = vadd.f32 %v2709_v36, %v2481_v44  ;;  %v2944_v55 = vadd.f32 %v2709_v36, %v2482_v27  ;;  %v2493_v12 = vmul.f32 %v8109_v17, %v8108_v54  ;;  %v2494_v58 = vmul.f32 %v8109_v17, %v8110_v33  ;;  %v8111_v51 = vld [vmem:[#allocation27_spill] sm:$0xff] }
 0x2f3   : > { %v3073_v0 = vmax.f32 %v2941_v38, 0.0  ;;  %v3074_v39 = vmax.f32 %v2942_v61, 0.0  ;;  %v2927_v10 = vadd.f32 %v2669_v56, %v2465_v26  ;;  %v2928_v31 = vadd.f32 %v2669_v56, %v2466_v52  ;;  %v8127_v54 = vld [vmem:[#allocation55_spill] sm:$0xff] }
 0x2f4   : > { %v3075_v62 = vmax.f32 %v2943_v28, 0.0  ;;  %v3076_v37 = vmax.f32 %v2944_v55, 0.0  ;;  %v2477_v44 = vmul.f32 %v8112_v7, %v8111_v51  ;;  %v2478_v27 = vmul.f32 %v8112_v7, %v8113_v16  ;;  %v8128_v33 = vld [vmem:[#allocation39_spill] sm:$0xff]  ;;  %v8130_v51 = vld [vmem:[#allocation36_spill] sm:$0xff] }
 0x2f5   : > { %3205 = vst [vmem:[%s6913_s22 + $0x1e0] sm:$0xff] %v3073_v0  ;;  %v3059_v30 = vmax.f32 %v2927_v10, 0.0  ;;  %v3060_v9 = vmax.f32 %v2928_v31, 0.0  ;;  %v8114_v31 = vld [vmem:[#allocation53_spill] sm:$0xff]  ;;  %v2506_v17 = vmul.f32 %v8126_v24, %v8127_v54  ;;  %v8146_v54 = vld [vmem:[#allocation51_spill] sm:$0xff] }
 0x2f6   : > { %3206 = vst.msk [vmem:[%s6913_s22 + $0x1e8] sm:$0xff] %vm306_vm0, %v3074_v39 }
 0x2f7   : > { %3191 = vst [vmem:[%s6913_s22 + $0x170] sm:$0xff] %v3059_v30  ;;  %v8115_v30 = vld [vmem:[#allocation154_spill] sm:$0xff] }
 0x2f8   : > { %3192 = vst.msk [vmem:[%s6913_s22 + $0x178] sm:$0xff] %vm306_vm0, %v3060_v9  ;;  %v2719_v2 = vpop.permute.xlu0 %2718  ;;  %v2497_v9 = vmul.f32 %v8115_v30, %v8114_v31 }
 0x2f9   : > { %v2947_v19 = vadd.f32 %v2719_v2, %v2485_v23  ;;  %v2948_v59 = vadd.f32 %v2719_v2, %v2486_v60  ;;  %3207 = vst [vmem:[%s6913_s22 + $0x1f0] sm:$0xff] %v3075_v62  ;;  %v2724_v22 = vpop.permute.xlu2 %2723  ;;  %v8116_v62 = vld [vmem:[#allocation50_spill] sm:$0xff]  ;;  %v8118_v23 = vld [vmem:[#allocation149_spill] sm:$0xff] }
 0x2fa   : > { %3208 = vst.msk [vmem:[%s6913_s22 + $0x1f8] sm:$0xff] %vm306_vm0, %v3076_v37  ;;  %v2684_v50 = vpop.permute.xlu1 %2683  ;;  %v2949_v48 = vadd.f32 %v2724_v22, %v2487_v15  ;;  %v2950_v1 = vadd.f32 %v2724_v22, %v2488_v11  ;;  %v2498_v37 = vmul.f32 %v8115_v30, %v8116_v62  ;;  %v2499_v5 = vmul.f32 %v8118_v23, %v8117_v4  ;;  %v8119_v60 = vld [vmem:[#allocation49_spill] sm:$0xff]  ;;  %v8121_v11 = vld [vmem:[#allocation144_spill] sm:$0xff] }
 0x2fb   : > { %v3079_v13 = vmax.f32 %v2947_v19, 0.0  ;;  %v3080_v6 = vmax.f32 %v2948_v59, 0.0  ;;  %v2933_v42 = vadd.f32 %v2684_v50, %v2471_v45  ;;  %v2934_v43 = vadd.f32 %v2684_v50, %v2472_v29  ;;  %v8134_v30 = vld [vmem:[#allocation96_spill] sm:$0xff] }
 0x2fc   : > { %v3081_v20 = vmax.f32 %v2949_v48, 0.0  ;;  %v3082_v34 = vmax.f32 %v2950_v1, 0.0  ;;  %v2500_v63 = vmul.f32 %v8118_v23, %v8119_v60  ;;  %v2483_v2 = vmul.f32 %v8121_v11, %v8120_v40  ;;  %v8138_v60 = vld [vmem:[#allocation146_spill] sm:$0xff] }
 0x2fd   : > { %3211 = vst [vmem:[%s6913_s22 + $0x210] sm:$0xff] %v3079_v13  ;;  %v3065_v3 = vmax.f32 %v2933_v42, 0.0  ;;  %v3066_v8 = vmax.f32 %v2934_v43, 0.0  ;;  %v2484_v45 = vmul.f32 %v8121_v11, %v8122_v35 }
 0x2fe   : > { %3212 = vst.msk [vmem:[%s6913_s22 + $0x218] sm:$0xff] %vm306_vm0, %v3080_v6 }
 0x2ff   : > { %3197 = vst [vmem:[%s6913_s22 + $0x1a0] sm:$0xff] %v3065_v3 }
 0x300   : > { %3198 = vst.msk [vmem:[%s6913_s22 + $0x1a8] sm:$0xff] %vm306_vm0, %v3066_v8  ;;  %v2734_v47 = vpop.permute.xlu0 %2733 }
 0x301   : > { %v2953_v14 = vadd.f32 %v2734_v47, %v2491_v53  ;;  %v2954_v46 = vadd.f32 %v2734_v47, %v2492_v49  ;;  %3213 = vst [vmem:[%s6913_s22 + $0x220] sm:$0xff] %v3081_v20  ;;  %v2739_v26 = vpop.permute.xlu2 %2738  ;;  %v8123_v20 = vld [vmem:[#allocation91_spill] sm:$0xff]  ;;  %v8125_v53 = vld [vmem:[#allocation90_spill] sm:$0xff] }
 0x302   : > { %3214 = vst.msk [vmem:[%s6913_s22 + $0x228] sm:$0xff] %vm306_vm0, %v3082_v34  ;;  %v2699_v57 = vpop.permute.xlu1 %2698  ;;  %v2955_v52 = vadd.f32 %v2739_v26, %v2493_v12  ;;  %v2956_v38 = vadd.f32 %v2739_v26, %v2494_v58  ;;  %v2503_v34 = vmul.f32 %v6850_v25, %v8123_v20  ;;  %v2505_v49 = vmul.f32 %v8126_v24, %v8125_v53  ;;  %v8129_v58 = vld [vmem:[#allocation145_spill] sm:$0xff]  ;;  %v8145_v53 = vld [vmem:[#allocation99_spill] sm:$0xff] }
 0x303   : > { %v3085_v61 = vmax.f32 %v2953_v14, 0.0  ;;  %v3086_v36 = vmax.f32 %v2954_v46, 0.0  ;;  %v2939_v56 = vadd.f32 %v2699_v57, %v2477_v44  ;;  %v2940_v28 = vadd.f32 %v2699_v57, %v2478_v27 }
 0x304   : > { %v3087_v39 = vmax.f32 %v2955_v52, 0.0  ;;  %v3088_v10 = vmax.f32 %v2956_v38, 0.0  ;;  %v2489_v47 = vmul.f32 %v8129_v58, %v8128_v33  ;;  %v2490_v7 = vmul.f32 %v8129_v58, %v8130_v51  ;;  %v8148_v33 = vld [vmem:[#allocation48_spill] sm:$0xff] }
 0x305   : > { %3217 = vst [vmem:[%s6913_s22 + $0x240] sm:$0xff] %v3085_v61  ;;  %v3071_v55 = vmax.f32 %v2939_v56, 0.0  ;;  %v3072_v0 = vmax.f32 %v2940_v28, 0.0  ;;  %v2518_v24 = vmul.f32 %v8144_v32, %v8145_v53  ;;  %v8164_v53 = vld [vmem:[#allocation95_spill] sm:$0xff] }
 0x306   : > { %3218 = vst.msk [vmem:[%s6913_s22 + $0x248] sm:$0xff] %vm306_vm0, %v3086_v36 }
 0x307   : > { %3203 = vst [vmem:[%s6913_s22 + $0x1d0] sm:$0xff] %v3071_v55  ;;  %v8131_v55 = vld [vmem:[#allocation97_spill] sm:$0xff] }
 0x308   : > { %3204 = vst.msk [vmem:[%s6913_s22 + $0x1d8] sm:$0xff] %vm306_vm0, %v3072_v0  ;;  %v2749_v15 = vpop.permute.xlu0 %2748  ;;  %v8132_v0 = vld [vmem:[#allocation159_spill] sm:$0xff] }
 0x309   : > { %v2959_v41 = vadd.f32 %v2749_v15, %v2497_v9  ;;  %v2960_v29 = vadd.f32 %v2749_v15, %v2498_v37  ;;  %3219 = vst [vmem:[%s6913_s22 + $0x250] sm:$0xff] %v3087_v39  ;;  %v2754_v19 = vpop.permute.xlu2 %2753  ;;  %v2509_v39 = vmul.f32 %v8132_v0, %v8131_v55  ;;  %v8135_v9 = vld [vmem:[#allocation155_spill] sm:$0xff]  ;;  %v8136_v37 = vld [vmem:[#allocation93_spill] sm:$0xff]  ;;  %v8139_v15 = vld [vmem:[#allocation42_spill] sm:$0xff] }
 0x30a   : > { %3220 = vst.msk [vmem:[%s6913_s22 + $0x258] sm:$0xff] %vm306_vm0, %v3088_v10  ;;  %v2714_v59 = vpop.permute.xlu1 %2713  ;;  %v2961_v22 = vadd.f32 %v2754_v19, %v2499_v5  ;;  %v2962_v50 = vadd.f32 %v2754_v19, %v2500_v63  ;;  %v8133_v10 = vld [vmem:[#allocation94_spill] sm:$0xff]  ;;  %v2511_v62 = vmul.f32 %v8135_v9, %v8134_v30  ;;  %v2512_v4 = vmul.f32 %v8135_v9, %v8136_v37  ;;  %v8137_v5 = vld [vmem:[#allocation45_spill] sm:$0xff] }
 0x30b   : > { %v3091_v48 = vmax.f32 %v2959_v41, 0.0  ;;  %v3092_v1 = vmax.f32 %v2960_v29, 0.0  ;;  %v2945_v13 = vadd.f32 %v2714_v59, %v2483_v2  ;;  %v2946_v6 = vadd.f32 %v2714_v59, %v2484_v45  ;;  %v8151_v55 = vld [vmem:[#allocation106_spill] sm:$0xff]  ;;  %v8154_v30 = vld [vmem:[#allocation105_spill] sm:$0xff] }
 0x30c   : > { %v3093_v3 = vmax.f32 %v2961_v22, 0.0  ;;  %v3094_v8 = vmax.f32 %v2962_v50, 0.0  ;;  %v2510_v31 = vmul.f32 %v8132_v0, %v8133_v10  ;;  %v2495_v63 = vmul.f32 %v8138_v60, %v8137_v5  ;;  %v8153_v10 = vld [vmem:[#allocation160_spill] sm:$0xff]  ;;  %v8155_v37 = vld [vmem:[#allocation57_spill] sm:$0xff]  ;;  %v8157_v5 = vld [vmem:[#allocation54_spill] sm:$0xff] }
 0x30d   : > { %3223 = vst [vmem:[%s6913_s22 + $0x270] sm:$0xff] %v3091_v48  ;;  %v3077_v42 = vmax.f32 %v2945_v13, 0.0  ;;  %v3078_v43 = vmax.f32 %v2946_v6, 0.0  ;;  %v2496_v40 = vmul.f32 %v8138_v60, %v8139_v15  ;;  %v2524_v9 = vmul.f32 %v8153_v10, %v8154_v30  ;;  %v8173_v30 = vld [vmem:[#allocation101_spill] sm:$0xff] }
 0x30e   : > { %3224 = vst.msk [vmem:[%s6913_s22 + $0x278] sm:$0xff] %vm306_vm0, %v3092_v1 }
 0x30f   : > { %3209 = vst [vmem:[%s6913_s22 + $0x200] sm:$0xff] %v3077_v42  ;;  %v8140_v42 = vld [vmem:[#allocation103_spill] sm:$0xff] }
 0x310   : > { %3210 = vst.msk [vmem:[%s6913_s22 + $0x208] sm:$0xff] %vm306_vm0, %v3078_v43  ;;  %v2764_v12 = vpop.permute.xlu0 %2763  ;;  %v8141_v43 = vld [vmem:[#allocation162_spill] sm:$0xff] }
 0x311   : > { %v2965_v44 = vadd.f32 %v2764_v12, %v2503_v34  ;;  %v2966_v25 = vadd.f32 %v2764_v12, %v2504_v21  ;;  %3225 = vst [vmem:[%s6913_s22 + $0x280] sm:$0xff] %v3093_v3  ;;  %v2769_v16 = vpop.permute.xlu2 %2768  ;;  %v2515_v3 = vmul.f32 %v8141_v43, %v8140_v42  ;;  %v8143_v34 = vld [vmem:[#allocation102_spill] sm:$0xff]  ;;  %v8160_v42 = vld [vmem:[#allocation112_spill] sm:$0xff] }
 0x312   : > { %3226 = vst.msk [vmem:[%s6913_s22 + $0x288] sm:$0xff] %vm306_vm0, %v3094_v8  ;;  %v2729_v27 = vpop.permute.xlu1 %2728  ;;  %v2967_v14 = vadd.f32 %v2769_v16, %v2505_v49  ;;  %v2968_v46 = vadd.f32 %v2769_v16, %v2506_v17  ;;  %v8142_v8 = vld [vmem:[#allocation100_spill] sm:$0xff]  ;;  %v2517_v21 = vmul.f32 %v8144_v32, %v8143_v34  ;;  %v8163_v34 = vld [vmem:[#allocation111_spill] sm:$0xff] }
 0x313   : > { %v3097_v26 = vmax.f32 %v2965_v44, 0.0  ;;  %v3098_v57 = vmax.f32 %v2966_v25, 0.0  ;;  %v2951_v52 = vadd.f32 %v2729_v27, %v2489_v47  ;;  %v2952_v38 = vadd.f32 %v2729_v27, %v2490_v7  ;;  %v8147_v17 = vld [vmem:[#allocation148_spill] sm:$0xff] }
 0x314   : > { %v3099_v56 = vmax.f32 %v2967_v14, 0.0  ;;  %v3100_v28 = vmax.f32 %v2968_v46, 0.0  ;;  %v2516_v20 = vmul.f32 %v8141_v43, %v8142_v8  ;;  %v2501_v12 = vmul.f32 %v8147_v17, %v8146_v54  ;;  %v8162_v8 = vld [vmem:[#allocation163_spill] sm:$0xff]  ;;  %v8166_v54 = vld [vmem:[#allocation92_spill] sm:$0xff] }
 0x315   : > { %3229 = vst [vmem:[%s6913_s22 + $0x2a0] sm:$0xff] %v3097_v26  ;;  %v3083_v61 = vmax.f32 %v2951_v52, 0.0  ;;  %v3084_v36 = vmax.f32 %v2952_v38, 0.0  ;;  %v2502_v58 = vmul.f32 %v8147_v17, %v8148_v33  ;;  %v2530_v32 = vmul.f32 %v8162_v8, %v8163_v34  ;;  %v8182_v34 = vld [vmem:[#allocation107_spill] sm:$0xff] }
 0x316   : > { %3230 = vst.msk [vmem:[%s6913_s22 + $0x2a8] sm:$0xff] %vm306_vm0, %v3098_v57 }
 0x317   : > { %3215 = vst [vmem:[%s6913_s22 + $0x230] sm:$0xff] %v3083_v61 }
 0x318   : > { %3216 = vst.msk [vmem:[%s6913_s22 + $0x238] sm:$0xff] %vm306_vm0, %v3084_v36  ;;  %v2779_v23 = vpop.permute.xlu0 %2778  ;;  %v8149_v36 = vld [vmem:[#allocation109_spill] sm:$0xff] }
 0x319   : > { %v2971_v11 = vadd.f32 %v2779_v23, %v2509_v39  ;;  %v2972_v2 = vadd.f32 %v2779_v23, %v2510_v31  ;;  %3231 = vst [vmem:[%s6913_s22 + $0x2b0] sm:$0xff] %v3099_v56  ;;  %v2784_v35 = vpop.permute.xlu2 %2783  ;;  %v8150_v56 = vld [vmem:[#allocation165_spill] sm:$0xff]  ;;  %v8152_v39 = vld [vmem:[#allocation108_spill] sm:$0xff] }
 0x31a   : > { %3232 = vst.msk [vmem:[%s6913_s22 + $0x2b8] sm:$0xff] %vm306_vm0, %v3100_v28  ;;  %v2744_v45 = vpop.permute.xlu1 %2743  ;;  %v2973_v41 = vadd.f32 %v2784_v35, %v2511_v62  ;;  %v2974_v29 = vadd.f32 %v2784_v35, %v2512_v4  ;;  %v2521_v28 = vmul.f32 %v8150_v56, %v8149_v36  ;;  %v2522_v0 = vmul.f32 %v8150_v56, %v8151_v55  ;;  %v8156_v4 = vld [vmem:[#allocation150_spill] sm:$0xff] }
 0x31b   : > { %v3103_v19 = vmax.f32 %v2971_v11, 0.0  ;;  %v3104_v59 = vmax.f32 %v2972_v2, 0.0  ;;  %v2957_v22 = vadd.f32 %v2744_v45, %v2495_v63  ;;  %v2958_v50 = vadd.f32 %v2744_v45, %v2496_v40  ;;  %v8169_v36 = vld [vmem:[#allocation118_spill] sm:$0xff] }
 0x31c   : > { %v3105_v13 = vmax.f32 %v2973_v41, 0.0  ;;  %v3106_v6 = vmax.f32 %v2974_v29, 0.0  ;;  %v2523_v31 = vmul.f32 %v8153_v10, %v8152_v39  ;;  %v2507_v23 = vmul.f32 %v8156_v4, %v8155_v37  ;;  %v8171_v55 = vld [vmem:[#allocation166_spill] sm:$0xff]  ;;  %v8172_v39 = vld [vmem:[#allocation117_spill] sm:$0xff] }
 0x31d   : > { %3235 = vst [vmem:[%s6913_s22 + $0x2d0] sm:$0xff] %v3103_v19  ;;  %v3089_v48 = vmax.f32 %v2957_v22, 0.0  ;;  %v3090_v1 = vmax.f32 %v2958_v50, 0.0  ;;  %v2508_v60 = vmul.f32 %v8156_v4, %v8157_v5  ;;  %v2536_v10 = vmul.f32 %v8171_v55, %v8172_v39  ;;  %v8175_v37 = vld [vmem:[#allocation98_spill] sm:$0xff]  ;;  %v8191_v39 = vld [vmem:[#allocation161_spill] sm:$0xff] }
 0x31e   : > { %3236 = vst.msk [vmem:[%s6913_s22 + $0x2d8] sm:$0xff] %vm306_vm0, %v3104_v59 }
 0x31f   : > { %3221 = vst [vmem:[%s6913_s22 + $0x260] sm:$0xff] %v3089_v48 }
 0x320   : > { %3222 = vst.msk [vmem:[%s6913_s22 + $0x268] sm:$0xff] %vm306_vm0, %v3090_v1  ;;  %v2794_v49 = vpop.permute.xlu0 %2793  ;;  %v8158_v1 = vld [vmem:[#allocation115_spill] sm:$0xff] }
 0x321   : > { %v2977_v47 = vadd.f32 %v2794_v49, %v2515_v3  ;;  %v2978_v51 = vadd.f32 %v2794_v49, %v2516_v20  ;;  %3237 = vst [vmem:[%s6913_s22 + $0x2e0] sm:$0xff] %v3105_v13  ;;  %v2799_v7 = vpop.permute.xlu2 %2798  ;;  %v8159_v13 = vld [vmem:[#allocation168_spill] sm:$0xff]  ;;  %v8161_v3 = vld [vmem:[#allocation114_spill] sm:$0xff] }
 0x322   : > { %3238 = vst.msk [vmem:[%s6913_s22 + $0x2e8] sm:$0xff] %vm306_vm0, %v3106_v6  ;;  %v2759_v44 = vpop.permute.xlu1 %2758  ;;  %v2979_v25 = vadd.f32 %v2799_v7, %v2517_v21  ;;  %v2980_v16 = vadd.f32 %v2799_v7, %v2518_v24  ;;  %v2527_v6 = vmul.f32 %v8159_v13, %v8158_v1  ;;  %v2528_v43 = vmul.f32 %v8159_v13, %v8160_v42  ;;  %v8165_v24 = vld [vmem:[#allocation153_spill] sm:$0xff]  ;;  %v8178_v1 = vld [vmem:[#allocation124_spill] sm:$0xff] }
 0x323   : > { %v3109_v27 = vmax.f32 %v2977_v47, 0.0  ;;  %v3110_v14 = vmax.f32 %v2978_v51, 0.0  ;;  %v2963_v46 = vadd.f32 %v2759_v44, %v2501_v12  ;;  %v2964_v26 = vadd.f32 %v2759_v44, %v2502_v58  ;;  %v8180_v42 = vld [vmem:[#allocation169_spill] sm:$0xff] }
 0x324   : > { %v3111_v38 = vmax.f32 %v2979_v25, 0.0  ;;  %v3112_v61 = vmax.f32 %v2980_v16, 0.0  ;;  %v2529_v20 = vmul.f32 %v8162_v8, %v8161_v3  ;;  %v2513_v49 = vmul.f32 %v8165_v24, %v8164_v53  ;;  %v8181_v3 = vld [vmem:[#allocation123_spill] sm:$0xff]  ;;  %v8184_v53 = vld [vmem:[#allocation104_spill] sm:$0xff] }
 0x325   : > { %3241 = vst [vmem:[%s6913_s22 + $0x300] sm:$0xff] %v3109_v27  ;;  %v3095_v57 = vmax.f32 %v2963_v46, 0.0  ;;  %v3096_v52 = vmax.f32 %v2964_v26, 0.0  ;;  %v2514_v17 = vmul.f32 %v8165_v24, %v8166_v54  ;;  %v2542_v8 = vmul.f32 %v8180_v42, %v8181_v3  ;;  %v8198_v3 = vld [vmem:[#allocation122_spill] sm:$0xff] }
 0x326   : > { %3242 = vst.msk [vmem:[%s6913_s22 + $0x308] sm:$0xff] %vm306_vm0, %v3110_v14 }
 0x327   : > { %3227 = vst [vmem:[%s6913_s22 + $0x290] sm:$0xff] %v3095_v57 }
 0x328   : > { %3228 = vst.msk [vmem:[%s6913_s22 + $0x298] sm:$0xff] %vm306_vm0, %v3096_v52  ;;  %v2809_v62 = vpop.permute.xlu0 %2808  ;;  %v8167_v52 = vld [vmem:[#allocation121_spill] sm:$0xff] }
 0x329   : > { %v2983_v63 = vadd.f32 %v2809_v62, %v2521_v28  ;;  %v2984_v15 = vadd.f32 %v2809_v62, %v2522_v0  ;;  %3243 = vst [vmem:[%s6913_s22 + $0x310] sm:$0xff] %v3111_v38  ;;  %v2814_v40 = vpop.permute.xlu2 %2813  ;;  %v8168_v38 = vld [vmem:[#allocation171_spill] sm:$0xff]  ;;  %v8170_v28 = vld [vmem:[#allocation120_spill] sm:$0xff] }
 0x32a   : > { %3244 = vst.msk [vmem:[%s6913_s22 + $0x318] sm:$0xff] %vm306_vm0, %v3112_v61  ;;  %v2774_v11 = vpop.permute.xlu1 %2773  ;;  %v2985_v2 = vadd.f32 %v2814_v40, %v2523_v31  ;;  %v2986_v35 = vadd.f32 %v2814_v40, %v2524_v9  ;;  %v2533_v61 = vmul.f32 %v8168_v38, %v8167_v52  ;;  %v2534_v56 = vmul.f32 %v8168_v38, %v8169_v36  ;;  %v8174_v9 = vld [vmem:[#allocation156_spill] sm:$0xff] }
 0x32b   : > { %v3115_v45 = vmax.f32 %v2983_v63, 0.0  ;;  %v3116_v41 = vmax.f32 %v2984_v15, 0.0  ;;  %v2969_v29 = vadd.f32 %v2774_v11, %v2507_v23  ;;  %v2970_v19 = vadd.f32 %v2774_v11, %v2508_v60  ;;  %v8187_v38 = vld [vmem:[#allocation132_spill] sm:$0xff] }
 0x32c   : > { %v3117_v50 = vmax.f32 %v2985_v2, 0.0  ;;  %v3118_v48 = vmax.f32 %v2986_v35, 0.0  ;;  %v2535_v0 = vmul.f32 %v8171_v55, %v8170_v28  ;;  %v2519_v62 = vmul.f32 %v8174_v9, %v8173_v30 }
 0x32d   : > { %3247 = vst [vmem:[%s6913_s22 + $0x330] sm:$0xff] %v3115_v45  ;;  %v3101_v59 = vmax.f32 %v2969_v29, 0.0  ;;  %v3102_v22 = vmax.f32 %v2970_v19, 0.0  ;;  %v2520_v4 = vmul.f32 %v8174_v9, %v8175_v37 }
 0x32e   : > { %3248 = vst.msk [vmem:[%s6913_s22 + $0x338] sm:$0xff] %vm306_vm0, %v3116_v41 }
 0x32f   : > { %3233 = vst [vmem:[%s6913_s22 + $0x2c0] sm:$0xff] %v3101_v59 }
 0x330   : > { %3234 = vst.msk [vmem:[%s6913_s22 + $0x2c8] sm:$0xff] %vm306_vm0, %v3102_v22  ;;  %v2824_v21 = vpop.permute.xlu0 %2823  ;;  %v8176_v22 = vld [vmem:[#allocation127_spill] sm:$0xff] }
 0x331   : > { %v2989_v12 = vadd.f32 %v2824_v21, %v2527_v6  ;;  %v2990_v33 = vadd.f32 %v2824_v21, %v2528_v43  ;;  %3249 = vst [vmem:[%s6913_s22 + $0x340] sm:$0xff] %v3117_v50  ;;  %v2829_v58 = vpop.permute.xlu2 %2828  ;;  %v8177_v50 = vld [vmem:[#allocation63_spill] sm:$0xff]  ;;  %v8179_v6 = vld [vmem:[#allocation126_spill] sm:$0xff] }
 0x332   : > { %3250 = vst.msk [vmem:[%s6913_s22 + $0x348] sm:$0xff] %vm306_vm0, %v3118_v48  ;;  %v2789_v47 = vpop.permute.xlu1 %2788  ;;  %v2991_v51 = vadd.f32 %v2829_v58, %v2529_v20  ;;  %v2992_v7 = vadd.f32 %v2829_v58, %v2530_v32  ;;  %v2539_v48 = vmul.f32 %v8177_v50, %v8176_v22  ;;  %v2540_v13 = vmul.f32 %v8177_v50, %v8178_v1  ;;  %v8183_v32 = vld [vmem:[#allocation158_spill] sm:$0xff] }
 0x333   : > { %v3121_v44 = vmax.f32 %v2989_v12, 0.0  ;;  %v3122_v25 = vmax.f32 %v2990_v33, 0.0  ;;  %v2975_v16 = vadd.f32 %v2789_v47, %v2513_v49  ;;  %v2976_v27 = vadd.f32 %v2789_v47, %v2514_v17 }
 0x334   : > { %v3123_v26 = vmax.f32 %v2991_v51, 0.0  ;;  %v3124_v57 = vmax.f32 %v2992_v7, 0.0  ;;  %v2541_v43 = vmul.f32 %v8180_v42, %v8179_v6  ;;  %v2525_v21 = vmul.f32 %v8183_v32, %v8182_v34  ;;  %v8196_v6 = vld [vmem:[#allocation125_spill] sm:$0xff]  ;;  %v8197_v42 = vld [vmem:[#allocation167_spill] sm:$0xff] }
 0x335   : > { %3253 = vst [vmem:[%s6913_s22 + $0x360] sm:$0xff] %v3121_v44  ;;  %v3107_v14 = vmax.f32 %v2975_v16, 0.0  ;;  %v3108_v46 = vmax.f32 %v2976_v27, 0.0  ;;  %v2526_v24 = vmul.f32 %v8183_v32, %v8184_v53 }
 0x336   : > { %3254 = vst.msk [vmem:[%s6913_s22 + $0x368] sm:$0xff] %vm306_vm0, %v3122_v25 }
 0x337   : > { %3239 = vst [vmem:[%s6913_s22 + $0x2f0] sm:$0xff] %v3107_v14 }
 0x338   : > { %3240 = vst.msk [vmem:[%s6913_s22 + $0x2f8] sm:$0xff] %vm306_vm0, %v3108_v46  ;;  %v2839_v31 = vpop.permute.xlu0 %2838  ;;  %v8185_v46 = vld [vmem:[#allocation133_spill] sm:$0xff] }
 0x339   : > { %v2995_v23 = vadd.f32 %v2839_v31, %v2533_v61  ;;  %v2996_v5 = vadd.f32 %v2839_v31, %v2534_v56  ;;  %3255 = vst [vmem:[%s6913_s22 + $0x370] sm:$0xff] %v3123_v26  ;;  %v2844_v60 = vpop.permute.xlu2 %2843  ;;  %v2545_v26 = vmul.f32 %v6929_v18, %v8185_v46  ;;  %v8188_v61 = vld [vmem:[#allocation172_spill] sm:$0xff]  ;;  %v8189_v56 = vld [vmem:[#allocation129_spill] sm:$0xff]  ;;  %v8192_v31 = vld [vmem:[#allocation110_spill] sm:$0xff] }
 0x33a   : > { %3256 = vst.msk [vmem:[%s6913_s22 + $0x378] sm:$0xff] %vm306_vm0, %v3124_v57  ;;  %v2804_v63 = vpop.permute.xlu1 %2803  ;;  %v2997_v15 = vadd.f32 %v2844_v60, %v2535_v0  ;;  %v2998_v40 = vadd.f32 %v2844_v60, %v2536_v10  ;;  %v8186_v57 = vld [vmem:[#allocation130_spill] sm:$0xff]  ;;  %v2547_v36 = vmul.f32 %v8188_v61, %v8187_v38  ;;  %v2548_v28 = vmul.f32 %v8188_v61, %v8189_v56  ;;  %v8190_v0 = vld [vmem:[#allocation113_spill] sm:$0xff] }
 0x33b   : > { %v3127_v11 = vmax.f32 %v2995_v23, 0.0  ;;  %v3128_v2 = vmax.f32 %v2996_v5, 0.0  ;;  %v2981_v35 = vadd.f32 %v2804_v63, %v2519_v62  ;;  %v2982_v45 = vadd.f32 %v2804_v63, %v2520_v4 }
 0x33c   : > { %v3129_v19 = vmax.f32 %v2997_v15, 0.0  ;;  %v3130_v59 = vmax.f32 %v2998_v40, 0.0  ;;  %v2546_v52 = vmul.f32 %v6929_v18, %v8186_v57  ;;  %v2531_v10 = vmul.f32 %v8191_v39, %v8190_v0 }
 0x33d   : > { %3259 = vst [vmem:[%s6913_s22 + $0x390] sm:$0xff] %v3127_v11  ;;  %v3113_v41 = vmax.f32 %v2981_v35, 0.0  ;;  %v3114_v29 = vmax.f32 %v2982_v45, 0.0  ;;  %v2532_v30 = vmul.f32 %v8191_v39, %v8192_v31  ;;  %v8193_v45 = vld [vmem:[#allocation119_spill] sm:$0xff] }
 0x33e   : > { %3260 = vst.msk [vmem:[%s6913_s22 + $0x398] sm:$0xff] %vm306_vm0, %v3128_v2 }
 0x33f   : > { %3245 = vst [vmem:[%s6913_s22 + $0x320] sm:$0xff] %v3113_v41  ;;  %v8194_v41 = vld [vmem:[#allocation164_spill] sm:$0xff] }
 0x340   : > { %3246 = vst.msk [vmem:[%s6913_s22 + $0x328] sm:$0xff] %vm306_vm0, %v3114_v29  ;;  %v2854_v20 = vpop.permute.xlu0 %2853  ;;  %v2537_v29 = vmul.f32 %v8194_v41, %v8193_v45 }
 0x341   : > { %v3001_v49 = vadd.f32 %v2854_v20, %v2539_v48  ;;  %v3002_v54 = vadd.f32 %v2854_v20, %v2540_v13  ;;  %3261 = vst [vmem:[%s6913_s22 + $0x3a0] sm:$0xff] %v3129_v19  ;;  %v2859_v17 = vpop.permute.xlu2 %2858  ;;  %v8195_v19 = vld [vmem:[#allocation116_spill] sm:$0xff] }
 0x342   : > { %3262 = vst.msk [vmem:[%s6913_s22 + $0x3a8] sm:$0xff] %vm306_vm0, %v3130_v59  ;;  %v2819_v12 = vpop.permute.xlu1 %2818  ;;  %v3003_v33 = vadd.f32 %v2859_v17, %v2541_v43  ;;  %v3004_v58 = vadd.f32 %v2859_v17, %v2542_v8  ;;  %v2538_v59 = vmul.f32 %v8194_v41, %v8195_v19  ;;  %v2543_v43 = vmul.f32 %v8197_v42, %v8196_v6  ;;  %v8201_v17 = vld [vmem:[#allocation128_spill] sm:$0xff] }
 0x343   : > { %v3133_v47 = vmax.f32 %v3001_v49, 0.0  ;;  %v3134_v51 = vmax.f32 %v3002_v54, 0.0  ;;  %v2987_v7 = vadd.f32 %v2819_v12, %v2525_v21  ;;  %v2988_v44 = vadd.f32 %v2819_v12, %v2526_v24  ;;  %v8199_v24 = vld [vmem:[#allocation131_spill] sm:$0xff]  ;;  %v8200_v49 = vld [vmem:[#allocation170_spill] sm:$0xff] }
 0x344   : > { %v3135_v27 = vmax.f32 %v3003_v33, 0.0  ;;  %v3136_v14 = vmax.f32 %v3004_v58, 0.0  ;;  %v2544_v8 = vmul.f32 %v8197_v42, %v8198_v3  ;;  %v2549_v54 = vmul.f32 %v8200_v49, %v8199_v24 }
 0x345   : > { %3265 = vst [vmem:[%s6913_s22 + $0x3c0] sm:$0xff] %v3133_v47  ;;  %v3119_v25 = vmax.f32 %v2987_v7, 0.0  ;;  %v3120_v16 = vmax.f32 %v2988_v44, 0.0  ;;  %v2550_v12 = vmul.f32 %v8200_v49, %v8201_v17 }
 0x346   : > { %3266 = vst.msk [vmem:[%s6913_s22 + $0x3c8] sm:$0xff] %vm306_vm0, %v3134_v51 }
 0x347   : > { %3251 = vst [vmem:[%s6913_s22 + $0x350] sm:$0xff] %v3119_v25 }
 0x348   : > { %3252 = vst.msk [vmem:[%s6913_s22 + $0x358] sm:$0xff] %vm306_vm0, %v3120_v16  ;;  %v2869_v55 = vpop.permute.xlu0 %2868 }
 0x349   : > { %v3007_v9 = vadd.f32 %v2869_v55, %v2545_v26  ;;  %v3008_v18 = vadd.f32 %v2869_v55, %v2546_v52  ;;  %3267 = vst [vmem:[%s6913_s22 + $0x3d0] sm:$0xff] %v3135_v27  ;;  %v2874_v62 = vpop.permute.xlu2 %2873 }
 0x34a   : > { %3268 = vst.msk [vmem:[%s6913_s22 + $0x3d8] sm:$0xff] %vm306_vm0, %v3136_v14  ;;  %v2834_v37 = vpop.permute.xlu1 %2833  ;;  %v3009_v4 = vadd.f32 %v2874_v62, %v2547_v36  ;;  %v3010_v23 = vadd.f32 %v2874_v62, %v2548_v28 }
 0x34b   : > { %v3139_v5 = vmax.f32 %v3007_v9, 0.0  ;;  %v3140_v60 = vmax.f32 %v3008_v18, 0.0  ;;  %v2993_v63 = vadd.f32 %v2834_v37, %v2531_v10  ;;  %v2994_v15 = vadd.f32 %v2834_v37, %v2532_v30 }
 0x34c   : > { %v3141_v2 = vmax.f32 %v3009_v4, 0.0  ;;  %v3142_v35 = vmax.f32 %v3010_v23, 0.0 }
 0x34d   : > { %3271 = vst [vmem:[%s6913_s22 + $0x3f0] sm:$0xff] %v3139_v5  ;;  %v3125_v40 = vmax.f32 %v2993_v63, 0.0  ;;  %v3126_v11 = vmax.f32 %v2994_v15, 0.0 }
 0x34e   : > { %3272 = vst.msk [vmem:[%s6913_s22 + $0x3f8] sm:$0xff] %vm306_vm0, %v3140_v60 }
 0x34f   : > { %3257 = vst [vmem:[%s6913_s22 + $0x380] sm:$0xff] %v3125_v40 }
 0x350   : > { %3258 = vst.msk [vmem:[%s6913_s22 + $0x388] sm:$0xff] %vm306_vm0, %v3126_v11 }
 0x351   : > { %3273 = vst [vmem:[%s6913_s22 + $0x400] sm:$0xff] %v3141_v2 }
 0x352   : > { %3274 = vst.msk [vmem:[%s6913_s22 + $0x408] sm:$0xff] %vm306_vm0, %v3142_v35  ;;  %v2849_v22 = vpop.permute.xlu1 %2848 }
 0x353   : > { %v2999_v50 = vadd.f32 %v2849_v22, %v2537_v29  ;;  %v3000_v48 = vadd.f32 %v2849_v22, %v2538_v59 }
 0x355   : > { %v3131_v1 = vmax.f32 %v2999_v50, 0.0  ;;  %v3132_v13 = vmax.f32 %v3000_v48, 0.0 }
 0x357   : > { %3263 = vst [vmem:[%s6913_s22 + $0x3b0] sm:$0xff] %v3131_v1 }
 0x358   : > { %3264 = vst.msk [vmem:[%s6913_s22 + $0x3b8] sm:$0xff] %vm306_vm0, %v3132_v13 }
 0x35a   : > { %v2864_v20 = vpop.permute.xlu1 %2863 }
 0x35b   : > { %v3005_v34 = vadd.f32 %v2864_v20, %v2543_v43  ;;  %v3006_v32 = vadd.f32 %v2864_v20, %v2544_v8 }
 0x35d   : > { %v3137_v21 = vmax.f32 %v3005_v34, 0.0  ;;  %v3138_v53 = vmax.f32 %v3006_v32, 0.0 }
 0x35f   : > { %3269 = vst [vmem:[%s6913_s22 + $0x3e0] sm:$0xff] %v3137_v21 }
 0x360   : > { %3270 = vst.msk [vmem:[%s6913_s22 + $0x3e8] sm:$0xff] %vm306_vm0, %v3138_v53 }
 0x362   : > { %v2879_v33 = vpop.permute.xlu1 %2878 }
 0x363   : > { %v3011_v58 = vadd.f32 %v2879_v33, %v2549_v54  ;;  %v3012_v47 = vadd.f32 %v2879_v33, %v2550_v12 }
 0x365   : > { %v3143_v51 = vmax.f32 %v3011_v58, 0.0  ;;  %v3144_v7 = vmax.f32 %v3012_v47, 0.0 }
 0x367   : > { %3275 = vst [vmem:[%s6913_s22 + $0x410] sm:$0xff] %v3143_v51 }
 0x368   : > { %3276 = vst.msk [vmem:[%s6913_s22 + $0x418] sm:$0xff] %vm306_vm0, %v3144_v7 }
 0x369 PF: > { %s12_s9 = sadd.s32 1, %s3597_s9  }
 0x36a   : > { %p9_p4 = scmp.ge.s32.totalorder %s12_s9, 4  }
 0x36c   :  { %11 = sbr.rel (!%p9_p4) target bundleno = 1 (0x1), region = 61 }

</bundles_post_ra>
